<compile_context>
chip_gen: v7x
topology: tpu7x:2x2x1
jax: 0.10.0
libtpu: 0.0.40
codegen_flags: <defaults>
</compile_context>

<pallas_src>
import functools
import math

import jax
import jax.numpy as jnp
from jax import lax
from jax.experimental import pallas as pl
from jax.experimental.pallas import tpu as pltpu


_NEG_BIG = -1e30     # online-softmax running-max init (finite: no inf-inf NaNs)
_KV_BLOCK = 512      # flash-style kv tile for the online-softmax attention


# ----------------------------- in-kernel helpers -----------------------------

def _layer_norm(v, eps):
    """LayerNorm over the last (channel) axis, biased variance (== F.layer_norm)."""
    mu = jnp.mean(v, axis=-1, keepdims=True)
    var = jnp.mean((v - mu) ** 2, axis=-1, keepdims=True)
    return (v - mu) * lax.rsqrt(var + eps)


def _attention(q, k, v, key_bias, n_heads, dim_head):
    """Online-softmax multi-head attention.

    q:(Tq, H*Dh) f32   k,v:(Tk, H*Dh) f32   key_bias:(1, Tk) additive (0/-1e4).
    Returns (Tq, H*Dh) f32.

    * The 1/sqrt(dim_head) scale is folded into the Q projection weights.
    * kv axis is processed in <=_KV_BLOCK tiles with running (max, sum, acc)
      so a full (Tq,Tk) f32 score tile is never live (v7x 64 MiB VMEM).
    * MXU operands are bf16; softmax statistics / accumulation stay f32.
    """
    tq = q.shape[0]
    tk = k.shape[0]
    blk = min(_KV_BLOCK, tk)
    n_blk = (tk + blk - 1) // blk

    q16 = q.astype(jnp.bfloat16)
    k16 = k.astype(jnp.bfloat16)
    v16 = v.astype(jnp.bfloat16)

    ctx = []
    for hh in range(n_heads):
        sl = slice(hh * dim_head, (hh + 1) * dim_head)
        qh = q16[:, sl]
        m = jnp.full((tq, 1), _NEG_BIG, jnp.float32)
        l = jnp.zeros((tq, 1), jnp.float32)
        acc = jnp.zeros((tq, dim_head), jnp.float32)
        for bi in range(n_blk):
            s0 = bi * blk
            s1 = min(tk, s0 + blk)
            s = lax.dot_general(qh, k16[s0:s1, sl],
                                (((1,), (1,)), ((), ())),
                                preferred_element_type=jnp.float32)   # (Tq, blk)
            s = s + key_bias[:, s0:s1]                                # masked keys
            m_new = jnp.maximum(m, jnp.max(s, axis=-1, keepdims=True))
            alpha = jnp.exp(m - m_new)
            p = jnp.exp(s - m_new)
            l = alpha * l + jnp.sum(p, axis=-1, keepdims=True)
            acc = alpha * acc + jnp.dot(p.astype(jnp.bfloat16), v16[s0:s1, sl],
                                        preferred_element_type=jnp.float32)
            m = m_new
        ctx.append(acc * pl.reciprocal(l, approx=True))               # EUP reciprocal
    # Per-head contexts are lane-concatenated so the caller runs ONE fused
    # (Tq, H*Dh) @ (H*Dh, C) output projection.
    return jnp.concatenate(ctx, axis=-1)


def _conv1d_same(x, w_ref, b, kernel_size):
    """'same'-padded conv1d over time.

    x:(T, Cin) f32   w_ref:(1, K, Cin, Cout) bf16 ref   b:(1, Cout) f32.
    Taps are built with XLU row rotations (pltpu.roll) + an iota edge mask:
    no sublane-offset slice/concat copies, no padded scratch buffers.
    """
    t, c_in = x.shape
    pad = kernel_size // 2
    row = lax.broadcasted_iota(jnp.int32, (t, c_in), 0)
    acc = None
    for kk in range(kernel_size):
        off = kk - pad                                   # tap source-row offset
        if off == 0:
            tap = x
        else:
            rolled = pltpu.roll(x, shift=(-off) % t, axis=0)
            valid = jnp.logical_and(row + off >= 0, row + off < t)
            tap = jnp.where(valid, rolled, jnp.zeros_like(rolled))
        contrib = jnp.dot(tap.astype(jnp.bfloat16), w_ref[0, kk],
                          preferred_element_type=jnp.float32)
        acc = contrib if acc is None else acc + contrib
    return acc + b


# ------------------------------ fused decoder kernel ------------------------------

def decoder_kernel(
    # per-batch inputs
    x_ref, xm_ref, xkm_ref, h_ref, hkm_ref,
    # per-(layer, batch) precomputed AdaLN modulation
    mod_ref,
    # per-layer weights (leading L axis, streamed along the layer grid axis)
    sqkvw_ref, sqkvb_ref, sow_ref, sob_ref,
    cqw_ref, cqb_ref, ckvw_ref, ckvb_ref, cow_ref, cob_ref,
    n2g_ref, n2b_ref,
    fw1_ref, fb1_ref, fw2_ref, fb2_ref,
    # final-norm affine (constant across the grid)
    fng_ref, fnb_ref,
    # output (revisited across the layer axis -> residual lives here)
    o_ref,
    *, n_heads, dim_head, kernel_size,
):
    layer = pl.program_id(1)
    n_layers = pl.num_programs(1)
    inner = n_heads * dim_head

    xm = xm_ref[0]                                     # (T, 1) frame mask (f32)

    @pl.when(layer == 0)
    def _():                                           # Decoder: x = x * x_mask
        o_ref[0] = x_ref[0] * xm

    x = o_ref[0]                                       # (T, C) f32 residual carry
    h16 = h_ref[0]                                     # (Th, C) bf16 encoder output

    # Additive key-side attention biases (no O(T^2) mask tensors in HBM).
    # Padded *query* rows are junk in the torch reference too and are zeroed
    # by the * x_mask at block end.
    self_bias = jnp.where(xkm_ref[0] > 0, 0.0, -1e4)   # (1, T)
    cross_bias = jnp.where(hkm_ref[0] > 0, 0.0, -1e4)  # (1, Th)

    mod = mod_ref[0, 0]                                # (6, C) AdaLN chunks (f32)
    shift_msa, scale_msa, gate_msa = mod[0:1], mod[1:2], mod[2:3]
    shift_mlp, scale_mlp, gate_mlp = mod[3:4], mod[4:5], mod[5:6]

    # ---- self-attention (norm_1: LN eps=1e-6, no affine; AdaLN modulate) ----
    attn_in = _layer_norm(x, 1e-6) * (1.0 + scale_msa) + shift_msa
    qkv = (jnp.dot(attn_in.astype(jnp.bfloat16), sqkvw_ref[0],
                   preferred_element_type=jnp.float32) + sqkvb_ref[0])
    sa = _attention(qkv[:, :inner], qkv[:, inner:2 * inner], qkv[:, 2 * inner:],
                    self_bias, n_heads, dim_head)
    sa = (jnp.dot(sa.astype(jnp.bfloat16), sow_ref[0],
                  preferred_element_type=jnp.float32) + sob_ref[0])
    x = gate_msa * sa + x

    # ---- cross-attention (norm_2: affine LN eps=1e-5; ungated residual) ----
    cross_in = _layer_norm(x, 1e-5) * n2g_ref[0] + n2b_ref[0]
    q = (jnp.dot(cross_in.astype(jnp.bfloat16), cqw_ref[0],
                 preferred_element_type=jnp.float32) + cqb_ref[0])
    kv = (jnp.dot(h16, ckvw_ref[0], preferred_element_type=jnp.float32)
          + ckvb_ref[0])                               # fused K|V projection
    ca = _attention(q, kv[:, :inner], kv[:, inner:], cross_bias,
                    n_heads, dim_head)
    ca = (jnp.dot(ca.astype(jnp.bfloat16), cow_ref[0],
                  preferred_element_type=jnp.float32) + cob_ref[0])
    x = ca + x

    # ---- FFN (norm_3 LN eps=1e-6 + AdaLN; conv1d(k) -> ReLU -> conv1d(k)) ----
    ff_in = _layer_norm(x, 1e-6) * (1.0 + scale_mlp) + shift_mlp
    y = _conv1d_same(ff_in * xm, fw1_ref, fb1_ref[0], kernel_size)
    y = jnp.maximum(y, 0.0) * xm
    ff_out = _conv1d_same(y, fw2_ref, fb2_ref[0], kernel_size) * xm
    x = (gate_mlp * ff_out + x) * xm                   # DecoderBlock: x * x_mask

    # ---- write back the residual; fold the final LayerNorm into last layer ----
    @pl.when(layer < n_layers - 1)
    def _():
        o_ref[0] = x

    @pl.when(layer == n_layers - 1)
    def _():
        # Matches torch: final_norm(x * x_mask).  Padded rows end at fn_b,
        # exactly as in the torch reference (no extra re-mask there either).
        o_ref[0] = _layer_norm(x, 1e-5) * fng_ref[...] + fnb_ref[...]


# --------------------------------- wrappers ---------------------------------

def _batch_spec(arr):
    rest = arr.shape[1:]
    zeros = (0,) * len(rest)
    return pl.BlockSpec((1,) + rest, lambda b, l, _z=zeros: (b,) + _z)


def _layer_spec(arr):
    rest = arr.shape[1:]
    zeros = (0,) * len(rest)
    return pl.BlockSpec((1,) + rest, lambda b, l, _z=zeros: (l,) + _z)


def _const_spec(arr):
    zeros = (0,) * arr.ndim
    return pl.BlockSpec(arr.shape, lambda b, l, _z=zeros: _z)


_LAYER_WEIGHT_KEYS = [
    "sqkv_w", "sqkv_b", "so_w", "so_b",
    "cq_w", "cq_b", "ckv_w", "ckv_b", "co_w", "co_b",
    "n2_g", "n2_b",
    "ff_w1", "ff_b1", "ff_w2", "ff_b2",
]


def _vmem_limit_bytes(T, Th, C, F_ch, inner, ksize):
    """Scoped-VMEM budget: 2x-buffered per-layer weights + resident activations
    + attention/conv working set, with 1.5x headroom (clamped)."""
    bf, f4 = 2, 4
    w_bf16 = (C * 3 * inner + inner * C + C * inner + C * 2 * inner + inner * C
              + ksize * C * F_ch + ksize * F_ch * C) * bf
    w_f32 = (3 * inner + C + inner + 2 * inner + C + 2 * C + F_ch + C + 6 * C) * f4
    resident = (T * C * f4              # output / residual block
                + T * C * f4            # x input block
                + Th * C * bf           # encoder block (bf16)
                + (2 * T + Th) * f4)    # masks
    working = (T * 3 * inner * f4                               # qkv
               + 2 * T * min(_KV_BLOCK, max(T, Th)) * f4        # score tile + exp
               + T * F_ch * f4                                  # conv hidden
               + T * inner * f4)                                # attention context
    est = 2 * (w_bf16 + w_f32) + 2 * resident + working
    return int(min(96 << 20, max(32 << 20, int(est * 1.5))))


def decoder_forward(params, x, x_mask, h, h_mask, utt_emb,
                    *, n_heads, dim_head, kernel_size):
    """x:(B,C,T) x_mask:(B,1,T) h:(B,C,Th) h_mask:(B,1,Th) utt_emb:(B,E) -> (B,C,T)."""
    B, C, T = x.shape
    Th = h.shape[2]
    n_layers = params["sqkv_w"].shape[0]
    inner = n_heads * dim_head
    F_ch = params["ff_w1"].shape[-1]

    xt = jnp.transpose(x, (0, 2, 1)).astype(jnp.float32)            # (B, T, C)
    ht = jnp.transpose(h, (0, 2, 1)).astype(jnp.bfloat16)           # (B, Th, C) K/V operand
    xm_col = jnp.transpose(x_mask, (0, 2, 1)).astype(jnp.float32)   # (B, T, 1)
    xkm = x_mask.astype(jnp.float32)                                # (B, 1, T)
    hkm = h_mask.astype(jnp.float32)                                # (B, 1, Th)

    # AdaLN modulation (Linear -> SiLU -> Linear -> 6 chunks) precomputed for
    # all (layer, batch) pairs in XLA (M=1 matmuls; C x 6C weight never enters
    # the kernel's VMEM/DMA budget).
    hid = jnp.einsum("be,lec->lbc", utt_emb, params["mw1"]) + params["mb1"][:, None, :]
    hid = hid * jax.nn.sigmoid(hid)              # SiLU
    mod = jnp.einsum("lbc,lcf->lbf", hid, params["mw2"]) + params["mb2"][:, None, :]
    mod = mod.reshape(n_layers, B, 6, C)         # (L, B, 6, C)

    weights = [params[k] for k in _LAYER_WEIGHT_KEYS]

    in_specs = (
        [_batch_spec(xt), _batch_spec(xm_col), _batch_spec(xkm),
         _batch_spec(ht), _batch_spec(hkm),
         pl.BlockSpec((1, 1, 6, C), lambda b, l: (l, b, 0, 0))]
        + [_layer_spec(w) for w in weights]
        + [_const_spec(params["fn_g"]), _const_spec(params["fn_b"])]
    )

    kernel = functools.partial(decoder_kernel, n_heads=n_heads,
                               dim_head=dim_head, kernel_size=kernel_size)

    out = pl.pallas_call(
        kernel,
        out_shape=jax.ShapeDtypeStruct((B, T, C), jnp.float32),
        grid_spec=pltpu.PrefetchScalarGridSpec(
            num_scalar_prefetch=0,
            grid=(B, n_layers),                  # layer axis innermost
            in_specs=in_specs,
            # Output block index ignores the layer axis -> the (T, C) residual
            # stays resident in VMEM across all layers of a batch element.
            out_specs=pl.BlockSpec((1, T, C), lambda b, l: (b, 0, 0)),
        ),
        # x is only read at layer 0 and the result overwrites the same (b) slab.
        input_output_aliases={0: 0},
        compiler_params=pltpu.CompilerParams(
            dimension_semantics=("parallel", "arbitrary"),
            vmem_limit_bytes=_vmem_limit_bytes(T, Th, C, F_ch, inner, kernel_size)),
    )(xt, xm_col, xkm, ht, hkm, mod, *weights,
      params["fn_g"], params["fn_b"])

    return jnp.transpose(out, (0, 2, 1))         # back to (B, C, T)


# --------------------------- deterministic init ---------------------------

def init_params(key, C, F_ch, E, n_heads, dim_head, ksize, n_layers):
    inner = n_heads * dim_head
    cnt = [0]
    bf16 = jnp.bfloat16

    def nxt(shape, scale=0.02):
        k = jax.random.fold_in(key, cnt[0])
        cnt[0] += 1
        return jax.random.normal(k, shape, jnp.float32) * scale

    # 1/sqrt(dim_head) softmax scale folded into the Q projection weight/bias
    # columns (zero runtime cost).
    q_scale = 1.0 / math.sqrt(dim_head)
    qkv_col_scale = jnp.concatenate(
        [jnp.full((inner,), q_scale, jnp.float32),
         jnp.ones((2 * inner,), jnp.float32)])

    L = n_layers
    sqkv_w = nxt((L, C, 3 * inner)) * qkv_col_scale
    sqkv_b = nxt((L, 1, 3 * inner)) * qkv_col_scale
    cq_w = nxt((L, C, inner)) * q_scale
    cq_b = nxt((L, 1, inner)) * q_scale

    return {
        # AdaLN modulation MLP (consumed in the XLA wrapper, not the kernel)
        "mw1": nxt((L, E, C)), "mb1": nxt((L, C)),
        "mw2": nxt((L, C, 6 * C)), "mb2": nxt((L, 6 * C)),
        # self-attention: fused Q|K|V projection + output projection (bf16 weights)
        "sqkv_w": sqkv_w.astype(bf16), "sqkv_b": sqkv_b,
        "so_w": nxt((L, inner, C)).astype(bf16), "so_b": nxt((L, 1, C)),
        # cross-attention: Q and fused K|V projections + output projection
        "cq_w": cq_w.astype(bf16), "cq_b": cq_b,
        "ckv_w": nxt((L, C, 2 * inner)).astype(bf16), "ckv_b": nxt((L, 1, 2 * inner)),
        "co_w": nxt((L, inner, C)).astype(bf16), "co_b": nxt((L, 1, C)),
        # norm_2 affine (f32)
        "n2_g": jnp.ones((L, 1, C), jnp.float32),
        "n2_b": jnp.zeros((L, 1, C), jnp.float32),
        # FFN conv stacks: (L, K, Cin, Cout) bf16 weights, f32 biases
        "ff_w1": nxt((L, ksize, C, F_ch)).astype(bf16), "ff_b1": nxt((L, 1, F_ch)),
        "ff_w2": nxt((L, ksize, F_ch, C)).astype(bf16), "ff_b2": nxt((L, 1, C)),
        # final LayerNorm affine (f32)
        "fn_g": jnp.ones((1, C), jnp.float32),
        "fn_b": jnp.zeros((1, C), jnp.float32),
    }


# ----------------------------------- main -----------------------------------

if __name__ == "__main__":
    B, C, F_ch, H = 2, 32, 64, 4
    Dh = C // H
    T, Th, E = 16, 8, 16
    ksize, n_layers = 3, 2

    key = jax.random.PRNGKey(0)
    kx, kh, ku, kp = jax.random.split(key, 4)
    x = jax.random.normal(kx, (B, C, T), jnp.float32)
    h = jax.random.normal(kh, (B, C, Th), jnp.float32)
    utt = jax.random.normal(ku, (B, E), jnp.float32)

    x_lens = jnp.array([T, T - 4])
    h_lens = jnp.array([Th, Th - 2])
    x_mask = (jnp.arange(T)[None, None, :] < x_lens[:, None, None]).astype(jnp.float32)
    h_mask = (jnp.arange(Th)[None, None, :] < h_lens[:, None, None]).astype(jnp.float32)

    params = init_params(kp, C, F_ch, E, H, Dh, ksize, n_layers)

    fwd = jax.jit(functools.partial(decoder_forward, n_heads=H, dim_head=Dh,
                                    kernel_size=ksize))
    out = fwd(params, x, x_mask, h, h_mask, utt)
    jax.block_until_ready(out)
    assert out.shape == (B, C, T)
    assert bool(jnp.isfinite(out).all())
    print("KERNEL_OK")
</pallas_src>

<mosaic_0001>
module attributes {stable_mosaic.version = 11 : i64} {
  func.func @decoder_kernel(%arg0: i32, %arg1: i32, %arg2: memref<1x16x32xf32, #tpu.memory_space<vmem>>, %arg3: memref<1x16x1xf32, #tpu.memory_space<vmem>>, %arg4: memref<1x1x16xf32, #tpu.memory_space<vmem>>, %arg5: memref<1x8x32xbf16, #tpu.memory_space<vmem>>, %arg6: memref<1x1x8xf32, #tpu.memory_space<vmem>>, %arg7: memref<1x1x6x32xf32, #tpu.memory_space<vmem>>, %arg8: memref<1x32x96xbf16, #tpu.memory_space<vmem>>, %arg9: memref<1x1x96xf32, #tpu.memory_space<vmem>>, %arg10: memref<1x32x32xbf16, #tpu.memory_space<vmem>>, %arg11: memref<1x1x32xf32, #tpu.memory_space<vmem>>, %arg12: memref<1x32x32xbf16, #tpu.memory_space<vmem>>, %arg13: memref<1x1x32xf32, #tpu.memory_space<vmem>>, %arg14: memref<1x32x64xbf16, #tpu.memory_space<vmem>>, %arg15: memref<1x1x64xf32, #tpu.memory_space<vmem>>, %arg16: memref<1x32x32xbf16, #tpu.memory_space<vmem>>, %arg17: memref<1x1x32xf32, #tpu.memory_space<vmem>>, %arg18: memref<1x1x32xf32, #tpu.memory_space<vmem>>, %arg19: memref<1x1x32xf32, #tpu.memory_space<vmem>>, %arg20: memref<1x3x32x64xbf16, #tpu.memory_space<vmem>>, %arg21: memref<1x1x64xf32, #tpu.memory_space<vmem>>, %arg22: memref<1x3x64x32xbf16, #tpu.memory_space<vmem>>, %arg23: memref<1x1x32xf32, #tpu.memory_space<vmem>>, %arg24: memref<1x32xf32, #tpu.memory_space<vmem>>, %arg25: memref<1x32xf32, #tpu.memory_space<vmem>>, %arg26: memref<1x16x32xf32, #tpu.memory_space<vmem>>) attributes {dimension_semantics = [#tpu.dimension_semantics<parallel>, #tpu.dimension_semantics<arbitrary>], iteration_bounds = array<i64: 2, 2>, scalar_prefetch = 0 : i64, scratch_operands = 0 : i64, tpu.core_type = #tpu.core_type<tc>, window_params = [{transform_indices = @transform_0, window_bounds = array<i64: 1, 16, 32>}, {transform_indices = @transform_1, window_bounds = array<i64: 1, 16, 1>}, {transform_indices = @transform_2, window_bounds = array<i64: 1, 1, 16>}, {transform_indices = @transform_3, window_bounds = array<i64: 1, 8, 32>}, {transform_indices = @transform_4, window_bounds = array<i64: 1, 1, 8>}, {transform_indices = @transform_5, window_bounds = array<i64: 1, 1, 6, 32>}, {transform_indices = @transform_6, window_bounds = array<i64: 1, 32, 96>}, {transform_indices = @transform_7, window_bounds = array<i64: 1, 1, 96>}, {transform_indices = @transform_8, window_bounds = array<i64: 1, 32, 32>}, {transform_indices = @transform_9, window_bounds = array<i64: 1, 1, 32>}, {transform_indices = @transform_10, window_bounds = array<i64: 1, 32, 32>}, {transform_indices = @transform_11, window_bounds = array<i64: 1, 1, 32>}, {transform_indices = @transform_12, window_bounds = array<i64: 1, 32, 64>}, {transform_indices = @transform_13, window_bounds = array<i64: 1, 1, 64>}, {transform_indices = @transform_14, window_bounds = array<i64: 1, 32, 32>}, {transform_indices = @transform_15, window_bounds = array<i64: 1, 1, 32>}, {transform_indices = @transform_16, window_bounds = array<i64: 1, 1, 32>}, {transform_indices = @transform_17, window_bounds = array<i64: 1, 1, 32>}, {transform_indices = @transform_18, window_bounds = array<i64: 1, 3, 32, 64>}, {transform_indices = @transform_19, window_bounds = array<i64: 1, 1, 64>}, {transform_indices = @transform_20, window_bounds = array<i64: 1, 3, 64, 32>}, {transform_indices = @transform_21, window_bounds = array<i64: 1, 1, 32>}, {pipeline_mode = #tpu.pipeline_mode<synchronous>, transform_indices = @transform_22, window_bounds = array<i64: 1, 32>}, {pipeline_mode = #tpu.pipeline_mode<synchronous>, transform_indices = @transform_23, window_bounds = array<i64: 1, 32>}, {transform_indices = @transform_24, window_bounds = array<i64: 1, 16, 32>}]} {
    %c0 = arith.constant 0 : index
    %c0_0 = arith.constant 0 : index
    %c0_1 = arith.constant 0 : index
    %0 = vector.load %arg3[%c0, %c0_0, %c0_1] : memref<1x16x1xf32, #tpu.memory_space<vmem>>, vector<1x16x1xf32>
    %1 = vector.shape_cast %0 : vector<1x16x1xf32> to vector<16x1xf32>
    %c0_i32 = arith.constant 0 : i32
    %2 = arith.cmpi eq, %arg1, %c0_i32 : i32
    %3 = arith.extui %2 : i1 to i32
    %c0_i32_2 = arith.constant 0 : i32
    %4 = arith.cmpi ne, %3, %c0_i32_2 : i32
    scf.if %4 {
      %c0_197 = arith.constant 0 : index
      %c0_198 = arith.constant 0 : index
      %c0_199 = arith.constant 0 : index
      %498 = vector.load %arg2[%c0_197, %c0_198, %c0_199] : memref<1x16x32xf32, #tpu.memory_space<vmem>>, vector<1x16x32xf32>
      %499 = vector.shape_cast %498 : vector<1x16x32xf32> to vector<16x32xf32>
      %500 = vector.broadcast %1 : vector<16x1xf32> to vector<16x32xf32>
      %501 = arith.mulf %499, %500 : vector<16x32xf32>
      %c0_200 = arith.constant 0 : index
      %c0_201 = arith.constant 0 : index
      %c0_202 = arith.constant 0 : index
      %502 = vector.load %arg26[%c0_200, %c0_201, %c0_202] : memref<1x16x32xf32, #tpu.memory_space<vmem>>, vector<1x16x32xf32>
      %503 = vector.shape_cast %502 : vector<1x16x32xf32> to vector<16x32xf32>
      %504 = vector.shape_cast %501 : vector<16x32xf32> to vector<1x16x32xf32>
      tpu.vector_store %arg26[%c0_200, %c0_201, %c0_202], %504 {strides = array<i32>} : memref<1x16x32xf32, #tpu.memory_space<vmem>>, vector<1x16x32xf32>,
    } else {
    }
    %c0_3 = arith.constant 0 : index
    %c0_4 = arith.constant 0 : index
    %c0_5 = arith.constant 0 : index
    %5 = vector.load %arg26[%c0_3, %c0_4, %c0_5] : memref<1x16x32xf32, #tpu.memory_space<vmem>>, vector<1x16x32xf32>
    %6 = vector.shape_cast %5 : vector<1x16x32xf32> to vector<16x32xf32>
    %c0_6 = arith.constant 0 : index
    %c0_7 = arith.constant 0 : index
    %c0_8 = arith.constant 0 : index
    %7 = vector.load %arg5[%c0_6, %c0_7, %c0_8] : memref<1x8x32xbf16, #tpu.memory_space<vmem>>, vector<1x8x32xbf16>
    %8 = vector.shape_cast %7 : vector<1x8x32xbf16> to vector<8x32xbf16>
    %c0_9 = arith.constant 0 : index
    %c0_10 = arith.constant 0 : index
    %c0_11 = arith.constant 0 : index
    %9 = vector.load %arg4[%c0_9, %c0_10, %c0_11] : memref<1x1x16xf32, #tpu.memory_space<vmem>>, vector<1x1x16xf32>
    %10 = vector.shape_cast %9 : vector<1x1x16xf32> to vector<1x16xf32>
    %cst = arith.constant 0.000000e+00 : f32
    %11 = vector.broadcast %cst : f32 to vector<1x16xf32>
    %12 = arith.cmpf ogt, %10, %11 : vector<1x16xf32>
    %cst_12 = arith.constant 0.000000e+00 : f32
    %cst_13 = arith.constant -1.000000e+04 : f32
    %13 = vector.broadcast %cst_12 : f32 to vector<1x16xf32>
    %14 = vector.broadcast %cst_13 : f32 to vector<1x16xf32>
    %15 = arith.select %12, %13, %14 : vector<1x16xi1>, vector<1x16xf32>
    %c0_14 = arith.constant 0 : index
    %c0_15 = arith.constant 0 : index
    %c0_16 = arith.constant 0 : index
    %16 = vector.load %arg6[%c0_14, %c0_15, %c0_16] : memref<1x1x8xf32, #tpu.memory_space<vmem>>, vector<1x1x8xf32>
    %17 = vector.shape_cast %16 : vector<1x1x8xf32> to vector<1x8xf32>
    %cst_17 = arith.constant 0.000000e+00 : f32
    %18 = vector.broadcast %cst_17 : f32 to vector<1x8xf32>
    %19 = arith.cmpf ogt, %17, %18 : vector<1x8xf32>
    %cst_18 = arith.constant 0.000000e+00 : f32
    %cst_19 = arith.constant -1.000000e+04 : f32
    %20 = vector.broadcast %cst_18 : f32 to vector<1x8xf32>
    %21 = vector.broadcast %cst_19 : f32 to vector<1x8xf32>
    %22 = arith.select %19, %20, %21 : vector<1x8xi1>, vector<1x8xf32>
    %c0_20 = arith.constant 0 : index
    %c0_21 = arith.constant 0 : index
    %c0_22 = arith.constant 0 : index
    %c0_23 = arith.constant 0 : index
    %23 = vector.load %arg7[%c0_20, %c0_21, %c0_22, %c0_23] : memref<1x1x6x32xf32, #tpu.memory_space<vmem>>, vector<1x1x6x32xf32>
    %24 = vector.shape_cast %23 : vector<1x1x6x32xf32> to vector<6x32xf32>
    %25 = vector.extract_strided_slice %24 {offsets = [0, 0], sizes = [1, 32], strides = [1, 1]} : vector<6x32xf32> to vector<1x32xf32>
    %26 = vector.extract_strided_slice %24 {offsets = [1, 0], sizes = [1, 32], strides = [1, 1]} : vector<6x32xf32> to vector<1x32xf32>
    %27 = vector.extract_strided_slice %24 {offsets = [2, 0], sizes = [1, 32], strides = [1, 1]} : vector<6x32xf32> to vector<1x32xf32>
    %28 = vector.extract_strided_slice %24 {offsets = [3, 0], sizes = [1, 32], strides = [1, 1]} : vector<6x32xf32> to vector<1x32xf32>
    %29 = vector.extract_strided_slice %24 {offsets = [4, 0], sizes = [1, 32], strides = [1, 1]} : vector<6x32xf32> to vector<1x32xf32>
    %30 = vector.extract_strided_slice %24 {offsets = [5, 0], sizes = [1, 32], strides = [1, 1]} : vector<6x32xf32> to vector<1x32xf32>
    %cst_24 = arith.constant dense<0.000000e+00> : vector<16xf32>
    %31 = vector.multi_reduction <add>, %6, %cst_24 [1] : vector<16x32xf32> to vector<16xf32>
    %32 = vector.shape_cast %31 : vector<16xf32> to vector<16x1xf32>
    %cst_25 = arith.constant 3.200000e+01 : f32
    %33 = vector.broadcast %cst_25 : f32 to vector<16x1xf32>
    %34 = arith.divf %32, %33 : vector<16x1xf32>
    %35 = vector.broadcast %34 : vector<16x1xf32> to vector<16x32xf32>
    %36 = arith.subf %6, %35 : vector<16x32xf32>
    %37 = arith.mulf %36, %36 : vector<16x32xf32>
    %cst_26 = arith.constant dense<0.000000e+00> : vector<16xf32>
    %38 = vector.multi_reduction <add>, %37, %cst_26 [1] : vector<16x32xf32> to vector<16xf32>
    %39 = vector.shape_cast %38 : vector<16xf32> to vector<16x1xf32>
    %cst_27 = arith.constant 3.200000e+01 : f32
    %40 = vector.broadcast %cst_27 : f32 to vector<16x1xf32>
    %41 = arith.divf %39, %40 : vector<16x1xf32>
    %42 = vector.broadcast %34 : vector<16x1xf32> to vector<16x32xf32>
    %43 = arith.subf %6, %42 : vector<16x32xf32>
    %cst_28 = arith.constant 9.99999997E-7 : f32
    %44 = vector.broadcast %cst_28 : f32 to vector<16x1xf32>
    %45 = arith.addf %41, %44 : vector<16x1xf32>
    %46 = math.rsqrt %45 : vector<16x1xf32>
    %47 = vector.broadcast %46 : vector<16x1xf32> to vector<16x32xf32>
    %48 = arith.mulf %43, %47 : vector<16x32xf32>
    %cst_29 = arith.constant 1.000000e+00 : f32
    %49 = vector.broadcast %cst_29 : f32 to vector<1x32xf32>
    %50 = arith.addf %49, %26 : vector<1x32xf32>
    %51 = vector.broadcast %50 : vector<1x32xf32> to vector<16x32xf32>
    %52 = arith.mulf %48, %51 : vector<16x32xf32>
    %53 = vector.broadcast %25 : vector<1x32xf32> to vector<16x32xf32>
    %54 = arith.addf %52, %53 : vector<16x32xf32>
    %55 = arith.truncf %54 : vector<16x32xf32> to vector<16x32xbf16>
    %c0_30 = arith.constant 0 : index
    %c0_31 = arith.constant 0 : index
    %c0_32 = arith.constant 0 : index
    %56 = vector.load %arg8[%c0_30, %c0_31, %c0_32] : memref<1x32x96xbf16, #tpu.memory_space<vmem>>, vector<1x32x96xbf16>
    %57 = vector.shape_cast %56 : vector<1x32x96xbf16> to vector<32x96xbf16>
    %cst_33 = arith.constant dense<0.000000e+00> : vector<16x96xf32>
    %58 = tpu.matmul %55, %57, %cst_33 {dimension_numbers = #tpu.dot_dimension_numbers<[1], [0], [0], [1], [0, 0, 1, 1], [], []>} : vector<16x32xbf16>, vector<32x96xbf16>, vector<16x96xf32> -> vector<16x96xf32>
    %c0_34 = arith.constant 0 : index
    %c0_35 = arith.constant 0 : index
    %c0_36 = arith.constant 0 : index
    %59 = vector.load %arg9[%c0_34, %c0_35, %c0_36] : memref<1x1x96xf32, #tpu.memory_space<vmem>>, vector<1x1x96xf32>
    %60 = vector.shape_cast %59 : vector<1x1x96xf32> to vector<1x96xf32>
    %61 = vector.broadcast %60 : vector<1x96xf32> to vector<16x96xf32>
    %62 = arith.addf %58, %61 : vector<16x96xf32>
    %63 = vector.extract_strided_slice %62 {offsets = [0, 0], sizes = [16, 32], strides = [1, 1]} : vector<16x96xf32> to vector<16x32xf32>
    %64 = vector.extract_strided_slice %62 {offsets = [0, 32], sizes = [16, 32], strides = [1, 1]} : vector<16x96xf32> to vector<16x32xf32>
    %65 = vector.extract_strided_slice %62 {offsets = [0, 64], sizes = [16, 32], strides = [1, 1]} : vector<16x96xf32> to vector<16x32xf32>
    %66 = arith.truncf %63 : vector<16x32xf32> to vector<16x32xbf16>
    %67 = arith.truncf %64 : vector<16x32xf32> to vector<16x32xbf16>
    %68 = arith.truncf %65 : vector<16x32xf32> to vector<16x32xbf16>
    %69 = vector.extract_strided_slice %66 {offsets = [0, 0], sizes = [16, 8], strides = [1, 1]} : vector<16x32xbf16> to vector<16x8xbf16>
    %cst_37 = arith.constant -1.000000e+30 : f32
    %70 = vector.broadcast %cst_37 : f32 to vector<16x1xf32>
    %cst_38 = arith.constant 0.000000e+00 : f32
    %71 = vector.broadcast %cst_38 : f32 to vector<16x1xf32>
    %cst_39 = arith.constant 0.000000e+00 : f32
    %72 = vector.broadcast %cst_39 : f32 to vector<16x8xf32>
    %73 = vector.extract_strided_slice %67 {offsets = [0, 0], sizes = [16, 8], strides = [1, 1]} : vector<16x32xbf16> to vector<16x8xbf16>
    %cst_40 = arith.constant dense<0.000000e+00> : vector<16x16xf32>
    %74 = tpu.matmul %69, %73, %cst_40 {dimension_numbers = #tpu.dot_dimension_numbers<[1], [1], [0], [0], [0, 0, 1, 0], [], []>} : vector<16x8xbf16>, vector<16x8xbf16>, vector<16x16xf32> -> vector<16x16xf32>
    %75 = vector.broadcast %15 : vector<1x16xf32> to vector<16x16xf32>
    %76 = arith.addf %74, %75 : vector<16x16xf32>
    %cst_41 = arith.constant dense<0xFF800000> : vector<16xf32>
    %77 = vector.multi_reduction <maximumf>, %76, %cst_41 [1] : vector<16x16xf32> to vector<16xf32>
    %78 = vector.shape_cast %77 : vector<16xf32> to vector<16x1xf32>
    %79 = arith.maximumf %70, %78 : vector<16x1xf32>
    %80 = arith.subf %70, %79 : vector<16x1xf32>
    %81 = math.exp %80 : vector<16x1xf32>
    %82 = vector.broadcast %79 : vector<16x1xf32> to vector<16x16xf32>
    %83 = arith.subf %76, %82 : vector<16x16xf32>
    %84 = math.exp %83 : vector<16x16xf32>
    %85 = arith.mulf %81, %71 : vector<16x1xf32>
    %cst_42 = arith.constant dense<0.000000e+00> : vector<16xf32>
    %86 = vector.multi_reduction <add>, %84, %cst_42 [1] : vector<16x16xf32> to vector<16xf32>
    %87 = vector.shape_cast %86 : vector<16xf32> to vector<16x1xf32>
    %88 = arith.addf %85, %87 : vector<16x1xf32>
    %89 = vector.broadcast %81 : vector<16x1xf32> to vector<16x8xf32>
    %90 = arith.mulf %89, %72 : vector<16x8xf32>
    %91 = arith.truncf %84 : vector<16x16xf32> to vector<16x16xbf16>
    %92 = vector.extract_strided_slice %68 {offsets = [0, 0], sizes = [16, 8], strides = [1, 1]} : vector<16x32xbf16> to vector<16x8xbf16>
    %cst_43 = arith.constant dense<0.000000e+00> : vector<16x8xf32>
    %93 = tpu.matmul %91, %92, %cst_43 {dimension_numbers = #tpu.dot_dimension_numbers<[1], [0], [0], [1], [0, 0, 1, 1], [], []>} : vector<16x16xbf16>, vector<16x8xbf16>, vector<16x8xf32> -> vector<16x8xf32>
    %94 = arith.addf %90, %93 : vector<16x8xf32>
    %95 = tpu.reciprocal %88 {approx = true} : vector<16x1xf32> -> vector<16x1xf32>
    %96 = vector.broadcast %95 : vector<16x1xf32> to vector<16x8xf32>
    %97 = arith.mulf %94, %96 : vector<16x8xf32>
    %98 = vector.extract_strided_slice %66 {offsets = [0, 8], sizes = [16, 8], strides = [1, 1]} : vector<16x32xbf16> to vector<16x8xbf16>
    %cst_44 = arith.constant -1.000000e+30 : f32
    %99 = vector.broadcast %cst_44 : f32 to vector<16x1xf32>
    %cst_45 = arith.constant 0.000000e+00 : f32
    %100 = vector.broadcast %cst_45 : f32 to vector<16x1xf32>
    %cst_46 = arith.constant 0.000000e+00 : f32
    %101 = vector.broadcast %cst_46 : f32 to vector<16x8xf32>
    %102 = vector.extract_strided_slice %67 {offsets = [0, 8], sizes = [16, 8], strides = [1, 1]} : vector<16x32xbf16> to vector<16x8xbf16>
    %cst_47 = arith.constant dense<0.000000e+00> : vector<16x16xf32>
    %103 = tpu.matmul %98, %102, %cst_47 {dimension_numbers = #tpu.dot_dimension_numbers<[1], [1], [0], [0], [0, 0, 1, 0], [], []>} : vector<16x8xbf16>, vector<16x8xbf16>, vector<16x16xf32> -> vector<16x16xf32>
    %104 = vector.broadcast %15 : vector<1x16xf32> to vector<16x16xf32>
    %105 = arith.addf %103, %104 : vector<16x16xf32>
    %cst_48 = arith.constant dense<0xFF800000> : vector<16xf32>
    %106 = vector.multi_reduction <maximumf>, %105, %cst_48 [1] : vector<16x16xf32> to vector<16xf32>
    %107 = vector.shape_cast %106 : vector<16xf32> to vector<16x1xf32>
    %108 = arith.maximumf %99, %107 : vector<16x1xf32>
    %109 = arith.subf %99, %108 : vector<16x1xf32>
    %110 = math.exp %109 : vector<16x1xf32>
    %111 = vector.broadcast %108 : vector<16x1xf32> to vector<16x16xf32>
    %112 = arith.subf %105, %111 : vector<16x16xf32>
    %113 = math.exp %112 : vector<16x16xf32>
    %114 = arith.mulf %110, %100 : vector<16x1xf32>
    %cst_49 = arith.constant dense<0.000000e+00> : vector<16xf32>
    %115 = vector.multi_reduction <add>, %113, %cst_49 [1] : vector<16x16xf32> to vector<16xf32>
    %116 = vector.shape_cast %115 : vector<16xf32> to vector<16x1xf32>
    %117 = arith.addf %114, %116 : vector<16x1xf32>
    %118 = vector.broadcast %110 : vector<16x1xf32> to vector<16x8xf32>
    %119 = arith.mulf %118, %101 : vector<16x8xf32>
    %120 = arith.truncf %113 : vector<16x16xf32> to vector<16x16xbf16>
    %121 = vector.extract_strided_slice %68 {offsets = [0, 8], sizes = [16, 8], strides = [1, 1]} : vector<16x32xbf16> to vector<16x8xbf16>
    %cst_50 = arith.constant dense<0.000000e+00> : vector<16x8xf32>
    %122 = tpu.matmul %120, %121, %cst_50 {dimension_numbers = #tpu.dot_dimension_numbers<[1], [0], [0], [1], [0, 0, 1, 1], [], []>} : vector<16x16xbf16>, vector<16x8xbf16>, vector<16x8xf32> -> vector<16x8xf32>
    %123 = arith.addf %119, %122 : vector<16x8xf32>
    %124 = tpu.reciprocal %117 {approx = true} : vector<16x1xf32> -> vector<16x1xf32>
    %125 = vector.broadcast %124 : vector<16x1xf32> to vector<16x8xf32>
    %126 = arith.mulf %123, %125 : vector<16x8xf32>
    %127 = vector.extract_strided_slice %66 {offsets = [0, 16], sizes = [16, 8], strides = [1, 1]} : vector<16x32xbf16> to vector<16x8xbf16>
    %cst_51 = arith.constant -1.000000e+30 : f32
    %128 = vector.broadcast %cst_51 : f32 to vector<16x1xf32>
    %cst_52 = arith.constant 0.000000e+00 : f32
    %129 = vector.broadcast %cst_52 : f32 to vector<16x1xf32>
    %cst_53 = arith.constant 0.000000e+00 : f32
    %130 = vector.broadcast %cst_53 : f32 to vector<16x8xf32>
    %131 = vector.extract_strided_slice %67 {offsets = [0, 16], sizes = [16, 8], strides = [1, 1]} : vector<16x32xbf16> to vector<16x8xbf16>
    %cst_54 = arith.constant dense<0.000000e+00> : vector<16x16xf32>
    %132 = tpu.matmul %127, %131, %cst_54 {dimension_numbers = #tpu.dot_dimension_numbers<[1], [1], [0], [0], [0, 0, 1, 0], [], []>} : vector<16x8xbf16>, vector<16x8xbf16>, vector<16x16xf32> -> vector<16x16xf32>
    %133 = vector.broadcast %15 : vector<1x16xf32> to vector<16x16xf32>
    %134 = arith.addf %132, %133 : vector<16x16xf32>
    %cst_55 = arith.constant dense<0xFF800000> : vector<16xf32>
    %135 = vector.multi_reduction <maximumf>, %134, %cst_55 [1] : vector<16x16xf32> to vector<16xf32>
    %136 = vector.shape_cast %135 : vector<16xf32> to vector<16x1xf32>
    %137 = arith.maximumf %128, %136 : vector<16x1xf32>
    %138 = arith.subf %128, %137 : vector<16x1xf32>
    %139 = math.exp %138 : vector<16x1xf32>
    %140 = vector.broadcast %137 : vector<16x1xf32> to vector<16x16xf32>
    %141 = arith.subf %134, %140 : vector<16x16xf32>
    %142 = math.exp %141 : vector<16x16xf32>
    %143 = arith.mulf %139, %129 : vector<16x1xf32>
    %cst_56 = arith.constant dense<0.000000e+00> : vector<16xf32>
    %144 = vector.multi_reduction <add>, %142, %cst_56 [1] : vector<16x16xf32> to vector<16xf32>
    %145 = vector.shape_cast %144 : vector<16xf32> to vector<16x1xf32>
    %146 = arith.addf %143, %145 : vector<16x1xf32>
    %147 = vector.broadcast %139 : vector<16x1xf32> to vector<16x8xf32>
    %148 = arith.mulf %147, %130 : vector<16x8xf32>
    %149 = arith.truncf %142 : vector<16x16xf32> to vector<16x16xbf16>
    %150 = vector.extract_strided_slice %68 {offsets = [0, 16], sizes = [16, 8], strides = [1, 1]} : vector<16x32xbf16> to vector<16x8xbf16>
    %cst_57 = arith.constant dense<0.000000e+00> : vector<16x8xf32>
    %151 = tpu.matmul %149, %150, %cst_57 {dimension_numbers = #tpu.dot_dimension_numbers<[1], [0], [0], [1], [0, 0, 1, 1], [], []>} : vector<16x16xbf16>, vector<16x8xbf16>, vector<16x8xf32> -> vector<16x8xf32>
    %152 = arith.addf %148, %151 : vector<16x8xf32>
    %153 = tpu.reciprocal %146 {approx = true} : vector<16x1xf32> -> vector<16x1xf32>
    %154 = vector.broadcast %153 : vector<16x1xf32> to vector<16x8xf32>
    %155 = arith.mulf %152, %154 : vector<16x8xf32>
    %156 = vector.extract_strided_slice %66 {offsets = [0, 24], sizes = [16, 8], strides = [1, 1]} : vector<16x32xbf16> to vector<16x8xbf16>
    %cst_58 = arith.constant -1.000000e+30 : f32
    %157 = vector.broadcast %cst_58 : f32 to vector<16x1xf32>
    %cst_59 = arith.constant 0.000000e+00 : f32
    %158 = vector.broadcast %cst_59 : f32 to vector<16x1xf32>
    %cst_60 = arith.constant 0.000000e+00 : f32
    %159 = vector.broadcast %cst_60 : f32 to vector<16x8xf32>
    %160 = vector.extract_strided_slice %67 {offsets = [0, 24], sizes = [16, 8], strides = [1, 1]} : vector<16x32xbf16> to vector<16x8xbf16>
    %cst_61 = arith.constant dense<0.000000e+00> : vector<16x16xf32>
    %161 = tpu.matmul %156, %160, %cst_61 {dimension_numbers = #tpu.dot_dimension_numbers<[1], [1], [0], [0], [0, 0, 1, 0], [], []>} : vector<16x8xbf16>, vector<16x8xbf16>, vector<16x16xf32> -> vector<16x16xf32>
    %162 = vector.broadcast %15 : vector<1x16xf32> to vector<16x16xf32>
    %163 = arith.addf %161, %162 : vector<16x16xf32>
    %cst_62 = arith.constant dense<0xFF800000> : vector<16xf32>
    %164 = vector.multi_reduction <maximumf>, %163, %cst_62 [1] : vector<16x16xf32> to vector<16xf32>
    %165 = vector.shape_cast %164 : vector<16xf32> to vector<16x1xf32>
    %166 = arith.maximumf %157, %165 : vector<16x1xf32>
    %167 = arith.subf %157, %166 : vector<16x1xf32>
    %168 = math.exp %167 : vector<16x1xf32>
    %169 = vector.broadcast %166 : vector<16x1xf32> to vector<16x16xf32>
    %170 = arith.subf %163, %169 : vector<16x16xf32>
    %171 = math.exp %170 : vector<16x16xf32>
    %172 = arith.mulf %168, %158 : vector<16x1xf32>
    %cst_63 = arith.constant dense<0.000000e+00> : vector<16xf32>
    %173 = vector.multi_reduction <add>, %171, %cst_63 [1] : vector<16x16xf32> to vector<16xf32>
    %174 = vector.shape_cast %173 : vector<16xf32> to vector<16x1xf32>
    %175 = arith.addf %172, %174 : vector<16x1xf32>
    %176 = vector.broadcast %168 : vector<16x1xf32> to vector<16x8xf32>
    %177 = arith.mulf %176, %159 : vector<16x8xf32>
    %178 = arith.truncf %171 : vector<16x16xf32> to vector<16x16xbf16>
    %179 = vector.extract_strided_slice %68 {offsets = [0, 24], sizes = [16, 8], strides = [1, 1]} : vector<16x32xbf16> to vector<16x8xbf16>
    %cst_64 = arith.constant dense<0.000000e+00> : vector<16x8xf32>
    %180 = tpu.matmul %178, %179, %cst_64 {dimension_numbers = #tpu.dot_dimension_numbers<[1], [0], [0], [1], [0, 0, 1, 1], [], []>} : vector<16x16xbf16>, vector<16x8xbf16>, vector<16x8xf32> -> vector<16x8xf32>
    %181 = arith.addf %177, %180 : vector<16x8xf32>
    %182 = tpu.reciprocal %175 {approx = true} : vector<16x1xf32> -> vector<16x1xf32>
    %183 = vector.broadcast %182 : vector<16x1xf32> to vector<16x8xf32>
    %184 = arith.mulf %181, %183 : vector<16x8xf32>
    %185 = tpu.concatenate %97, %126, %155, %184 in 1 : vector<16x8xf32>, vector<16x8xf32>, vector<16x8xf32>, vector<16x8xf32> -> vector<16x32xf32>
    %186 = arith.truncf %185 : vector<16x32xf32> to vector<16x32xbf16>
    %c0_65 = arith.constant 0 : index
    %c0_66 = arith.constant 0 : index
    %c0_67 = arith.constant 0 : index
    %187 = vector.load %arg10[%c0_65, %c0_66, %c0_67] : memref<1x32x32xbf16, #tpu.memory_space<vmem>>, vector<1x32x32xbf16>
    %188 = vector.shape_cast %187 : vector<1x32x32xbf16> to vector<32x32xbf16>
    %cst_68 = arith.constant dense<0.000000e+00> : vector<16x32xf32>
    %189 = tpu.matmul %186, %188, %cst_68 {dimension_numbers = #tpu.dot_dimension_numbers<[1], [0], [0], [1], [0, 0, 1, 1], [], []>} : vector<16x32xbf16>, vector<32x32xbf16>, vector<16x32xf32> -> vector<16x32xf32>
    %c0_69 = arith.constant 0 : index
    %c0_70 = arith.constant 0 : index
    %c0_71 = arith.constant 0 : index
    %190 = vector.load %arg11[%c0_69, %c0_70, %c0_71] : memref<1x1x32xf32, #tpu.memory_space<vmem>>, vector<1x1x32xf32>
    %191 = vector.shape_cast %190 : vector<1x1x32xf32> to vector<1x32xf32>
    %192 = vector.broadcast %191 : vector<1x32xf32> to vector<16x32xf32>
    %193 = arith.addf %189, %192 : vector<16x32xf32>
    %194 = vector.broadcast %27 : vector<1x32xf32> to vector<16x32xf32>
    %195 = arith.mulf %194, %193 : vector<16x32xf32>
    %196 = arith.addf %195, %6 : vector<16x32xf32>
    %cst_72 = arith.constant dense<0.000000e+00> : vector<16xf32>
    %197 = vector.multi_reduction <add>, %196, %cst_72 [1] : vector<16x32xf32> to vector<16xf32>
    %198 = vector.shape_cast %197 : vector<16xf32> to vector<16x1xf32>
    %cst_73 = arith.constant 3.200000e+01 : f32
    %199 = vector.broadcast %cst_73 : f32 to vector<16x1xf32>
    %200 = arith.divf %198, %199 : vector<16x1xf32>
    %201 = vector.broadcast %200 : vector<16x1xf32> to vector<16x32xf32>
    %202 = arith.subf %196, %201 : vector<16x32xf32>
    %203 = arith.mulf %202, %202 : vector<16x32xf32>
    %cst_74 = arith.constant dense<0.000000e+00> : vector<16xf32>
    %204 = vector.multi_reduction <add>, %203, %cst_74 [1] : vector<16x32xf32> to vector<16xf32>
    %205 = vector.shape_cast %204 : vector<16xf32> to vector<16x1xf32>
    %cst_75 = arith.constant 3.200000e+01 : f32
    %206 = vector.broadcast %cst_75 : f32 to vector<16x1xf32>
    %207 = arith.divf %205, %206 : vector<16x1xf32>
    %208 = vector.broadcast %200 : vector<16x1xf32> to vector<16x32xf32>
    %209 = arith.subf %196, %208 : vector<16x32xf32>
    %cst_76 = arith.constant 9.99999974E-6 : f32
    %210 = vector.broadcast %cst_76 : f32 to vector<16x1xf32>
    %211 = arith.addf %207, %210 : vector<16x1xf32>
    %212 = math.rsqrt %211 : vector<16x1xf32>
    %213 = vector.broadcast %212 : vector<16x1xf32> to vector<16x32xf32>
    %214 = arith.mulf %209, %213 : vector<16x32xf32>
    %c0_77 = arith.constant 0 : index
    %c0_78 = arith.constant 0 : index
    %c0_79 = arith.constant 0 : index
    %215 = vector.load %arg18[%c0_77, %c0_78, %c0_79] : memref<1x1x32xf32, #tpu.memory_space<vmem>>, vector<1x1x32xf32>
    %216 = vector.shape_cast %215 : vector<1x1x32xf32> to vector<1x32xf32>
    %217 = vector.broadcast %216 : vector<1x32xf32> to vector<16x32xf32>
    %218 = arith.mulf %214, %217 : vector<16x32xf32>
    %c0_80 = arith.constant 0 : index
    %c0_81 = arith.constant 0 : index
    %c0_82 = arith.constant 0 : index
    %219 = vector.load %arg19[%c0_80, %c0_81, %c0_82] : memref<1x1x32xf32, #tpu.memory_space<vmem>>, vector<1x1x32xf32>
    %220 = vector.shape_cast %219 : vector<1x1x32xf32> to vector<1x32xf32>
    %221 = vector.broadcast %220 : vector<1x32xf32> to vector<16x32xf32>
    %222 = arith.addf %218, %221 : vector<16x32xf32>
    %223 = arith.truncf %222 : vector<16x32xf32> to vector<16x32xbf16>
    %c0_83 = arith.constant 0 : index
    %c0_84 = arith.constant 0 : index
    %c0_85 = arith.constant 0 : index
    %224 = vector.load %arg12[%c0_83, %c0_84, %c0_85] : memref<1x32x32xbf16, #tpu.memory_space<vmem>>, vector<1x32x32xbf16>
    %225 = vector.shape_cast %224 : vector<1x32x32xbf16> to vector<32x32xbf16>
    %cst_86 = arith.constant dense<0.000000e+00> : vector<16x32xf32>
    %226 = tpu.matmul %223, %225, %cst_86 {dimension_numbers = #tpu.dot_dimension_numbers<[1], [0], [0], [1], [0, 0, 1, 1], [], []>} : vector<16x32xbf16>, vector<32x32xbf16>, vector<16x32xf32> -> vector<16x32xf32>
    %c0_87 = arith.constant 0 : index
    %c0_88 = arith.constant 0 : index
    %c0_89 = arith.constant 0 : index
    %227 = vector.load %arg13[%c0_87, %c0_88, %c0_89] : memref<1x1x32xf32, #tpu.memory_space<vmem>>, vector<1x1x32xf32>
    %228 = vector.shape_cast %227 : vector<1x1x32xf32> to vector<1x32xf32>
    %229 = vector.broadcast %228 : vector<1x32xf32> to vector<16x32xf32>
    %230 = arith.addf %226, %229 : vector<16x32xf32>
    %c0_90 = arith.constant 0 : index
    %c0_91 = arith.constant 0 : index
    %c0_92 = arith.constant 0 : index
    %231 = vector.load %arg14[%c0_90, %c0_91, %c0_92] : memref<1x32x64xbf16, #tpu.memory_space<vmem>>, vector<1x32x64xbf16>
    %232 = vector.shape_cast %231 : vector<1x32x64xbf16> to vector<32x64xbf16>
    %cst_93 = arith.constant dense<0.000000e+00> : vector<8x64xf32>
    %233 = tpu.matmul %8, %232, %cst_93 {dimension_numbers = #tpu.dot_dimension_numbers<[1], [0], [0], [1], [0, 0, 1, 1], [], []>} : vector<8x32xbf16>, vector<32x64xbf16>, vector<8x64xf32> -> vector<8x64xf32>
    %c0_94 = arith.constant 0 : index
    %c0_95 = arith.constant 0 : index
    %c0_96 = arith.constant 0 : index
    %234 = vector.load %arg15[%c0_94, %c0_95, %c0_96] : memref<1x1x64xf32, #tpu.memory_space<vmem>>, vector<1x1x64xf32>
    %235 = vector.shape_cast %234 : vector<1x1x64xf32> to vector<1x64xf32>
    %236 = vector.broadcast %235 : vector<1x64xf32> to vector<8x64xf32>
    %237 = arith.addf %233, %236 : vector<8x64xf32>
    %238 = vector.extract_strided_slice %237 {offsets = [0, 0], sizes = [8, 32], strides = [1, 1]} : vector<8x64xf32> to vector<8x32xf32>
    %239 = vector.extract_strided_slice %237 {offsets = [0, 32], sizes = [8, 32], strides = [1, 1]} : vector<8x64xf32> to vector<8x32xf32>
    %240 = arith.truncf %230 : vector<16x32xf32> to vector<16x32xbf16>
    %241 = arith.truncf %238 : vector<8x32xf32> to vector<8x32xbf16>
    %242 = arith.truncf %239 : vector<8x32xf32> to vector<8x32xbf16>
    %243 = vector.extract_strided_slice %240 {offsets = [0, 0], sizes = [16, 8], strides = [1, 1]} : vector<16x32xbf16> to vector<16x8xbf16>
    %cst_97 = arith.constant -1.000000e+30 : f32
    %244 = vector.broadcast %cst_97 : f32 to vector<16x1xf32>
    %cst_98 = arith.constant 0.000000e+00 : f32
    %245 = vector.broadcast %cst_98 : f32 to vector<16x1xf32>
    %cst_99 = arith.constant 0.000000e+00 : f32
    %246 = vector.broadcast %cst_99 : f32 to vector<16x8xf32>
    %247 = vector.extract_strided_slice %241 {offsets = [0, 0], sizes = [8, 8], strides = [1, 1]} : vector<8x32xbf16> to vector<8x8xbf16>
    %cst_100 = arith.constant dense<0.000000e+00> : vector<16x8xf32>
    %248 = tpu.matmul %243, %247, %cst_100 {dimension_numbers = #tpu.dot_dimension_numbers<[1], [1], [0], [0], [0, 0, 1, 0], [], []>} : vector<16x8xbf16>, vector<8x8xbf16>, vector<16x8xf32> -> vector<16x8xf32>
    %249 = vector.broadcast %22 : vector<1x8xf32> to vector<16x8xf32>
    %250 = arith.addf %248, %249 : vector<16x8xf32>
    %cst_101 = arith.constant dense<0xFF800000> : vector<16xf32>
    %251 = vector.multi_reduction <maximumf>, %250, %cst_101 [1] : vector<16x8xf32> to vector<16xf32>
    %252 = vector.shape_cast %251 : vector<16xf32> to vector<16x1xf32>
    %253 = arith.maximumf %244, %252 : vector<16x1xf32>
    %254 = arith.subf %244, %253 : vector<16x1xf32>
    %255 = math.exp %254 : vector<16x1xf32>
    %256 = vector.broadcast %253 : vector<16x1xf32> to vector<16x8xf32>
    %257 = arith.subf %250, %256 : vector<16x8xf32>
    %258 = math.exp %257 : vector<16x8xf32>
    %259 = arith.mulf %255, %245 : vector<16x1xf32>
    %cst_102 = arith.constant dense<0.000000e+00> : vector<16xf32>
    %260 = vector.multi_reduction <add>, %258, %cst_102 [1] : vector<16x8xf32> to vector<16xf32>
    %261 = vector.shape_cast %260 : vector<16xf32> to vector<16x1xf32>
    %262 = arith.addf %259, %261 : vector<16x1xf32>
    %263 = vector.broadcast %255 : vector<16x1xf32> to vector<16x8xf32>
    %264 = arith.mulf %263, %246 : vector<16x8xf32>
    %265 = arith.truncf %258 : vector<16x8xf32> to vector<16x8xbf16>
    %266 = vector.extract_strided_slice %242 {offsets = [0, 0], sizes = [8, 8], strides = [1, 1]} : vector<8x32xbf16> to vector<8x8xbf16>
    %cst_103 = arith.constant dense<0.000000e+00> : vector<16x8xf32>
    %267 = tpu.matmul %265, %266, %cst_103 {dimension_numbers = #tpu.dot_dimension_numbers<[1], [0], [0], [1], [0, 0, 1, 1], [], []>} : vector<16x8xbf16>, vector<8x8xbf16>, vector<16x8xf32> -> vector<16x8xf32>
    %268 = arith.addf %264, %267 : vector<16x8xf32>
    %269 = tpu.reciprocal %262 {approx = true} : vector<16x1xf32> -> vector<16x1xf32>
    %270 = vector.broadcast %269 : vector<16x1xf32> to vector<16x8xf32>
    %271 = arith.mulf %268, %270 : vector<16x8xf32>
    %272 = vector.extract_strided_slice %240 {offsets = [0, 8], sizes = [16, 8], strides = [1, 1]} : vector<16x32xbf16> to vector<16x8xbf16>
    %cst_104 = arith.constant -1.000000e+30 : f32
    %273 = vector.broadcast %cst_104 : f32 to vector<16x1xf32>
    %cst_105 = arith.constant 0.000000e+00 : f32
    %274 = vector.broadcast %cst_105 : f32 to vector<16x1xf32>
    %cst_106 = arith.constant 0.000000e+00 : f32
    %275 = vector.broadcast %cst_106 : f32 to vector<16x8xf32>
    %276 = vector.extract_strided_slice %241 {offsets = [0, 8], sizes = [8, 8], strides = [1, 1]} : vector<8x32xbf16> to vector<8x8xbf16>
    %cst_107 = arith.constant dense<0.000000e+00> : vector<16x8xf32>
    %277 = tpu.matmul %272, %276, %cst_107 {dimension_numbers = #tpu.dot_dimension_numbers<[1], [1], [0], [0], [0, 0, 1, 0], [], []>} : vector<16x8xbf16>, vector<8x8xbf16>, vector<16x8xf32> -> vector<16x8xf32>
    %278 = vector.broadcast %22 : vector<1x8xf32> to vector<16x8xf32>
    %279 = arith.addf %277, %278 : vector<16x8xf32>
    %cst_108 = arith.constant dense<0xFF800000> : vector<16xf32>
    %280 = vector.multi_reduction <maximumf>, %279, %cst_108 [1] : vector<16x8xf32> to vector<16xf32>
    %281 = vector.shape_cast %280 : vector<16xf32> to vector<16x1xf32>
    %282 = arith.maximumf %273, %281 : vector<16x1xf32>
    %283 = arith.subf %273, %282 : vector<16x1xf32>
    %284 = math.exp %283 : vector<16x1xf32>
    %285 = vector.broadcast %282 : vector<16x1xf32> to vector<16x8xf32>
    %286 = arith.subf %279, %285 : vector<16x8xf32>
    %287 = math.exp %286 : vector<16x8xf32>
    %288 = arith.mulf %284, %274 : vector<16x1xf32>
    %cst_109 = arith.constant dense<0.000000e+00> : vector<16xf32>
    %289 = vector.multi_reduction <add>, %287, %cst_109 [1] : vector<16x8xf32> to vector<16xf32>
    %290 = vector.shape_cast %289 : vector<16xf32> to vector<16x1xf32>
    %291 = arith.addf %288, %290 : vector<16x1xf32>
    %292 = vector.broadcast %284 : vector<16x1xf32> to vector<16x8xf32>
    %293 = arith.mulf %292, %275 : vector<16x8xf32>
    %294 = arith.truncf %287 : vector<16x8xf32> to vector<16x8xbf16>
    %295 = vector.extract_strided_slice %242 {offsets = [0, 8], sizes = [8, 8], strides = [1, 1]} : vector<8x32xbf16> to vector<8x8xbf16>
    %cst_110 = arith.constant dense<0.000000e+00> : vector<16x8xf32>
    %296 = tpu.matmul %294, %295, %cst_110 {dimension_numbers = #tpu.dot_dimension_numbers<[1], [0], [0], [1], [0, 0, 1, 1], [], []>} : vector<16x8xbf16>, vector<8x8xbf16>, vector<16x8xf32> -> vector<16x8xf32>
    %297 = arith.addf %293, %296 : vector<16x8xf32>
    %298 = tpu.reciprocal %291 {approx = true} : vector<16x1xf32> -> vector<16x1xf32>
    %299 = vector.broadcast %298 : vector<16x1xf32> to vector<16x8xf32>
    %300 = arith.mulf %297, %299 : vector<16x8xf32>
    %301 = vector.extract_strided_slice %240 {offsets = [0, 16], sizes = [16, 8], strides = [1, 1]} : vector<16x32xbf16> to vector<16x8xbf16>
    %cst_111 = arith.constant -1.000000e+30 : f32
    %302 = vector.broadcast %cst_111 : f32 to vector<16x1xf32>
    %cst_112 = arith.constant 0.000000e+00 : f32
    %303 = vector.broadcast %cst_112 : f32 to vector<16x1xf32>
    %cst_113 = arith.constant 0.000000e+00 : f32
    %304 = vector.broadcast %cst_113 : f32 to vector<16x8xf32>
    %305 = vector.extract_strided_slice %241 {offsets = [0, 16], sizes = [8, 8], strides = [1, 1]} : vector<8x32xbf16> to vector<8x8xbf16>
    %cst_114 = arith.constant dense<0.000000e+00> : vector<16x8xf32>
    %306 = tpu.matmul %301, %305, %cst_114 {dimension_numbers = #tpu.dot_dimension_numbers<[1], [1], [0], [0], [0, 0, 1, 0], [], []>} : vector<16x8xbf16>, vector<8x8xbf16>, vector<16x8xf32> -> vector<16x8xf32>
    %307 = vector.broadcast %22 : vector<1x8xf32> to vector<16x8xf32>
    %308 = arith.addf %306, %307 : vector<16x8xf32>
    %cst_115 = arith.constant dense<0xFF800000> : vector<16xf32>
    %309 = vector.multi_reduction <maximumf>, %308, %cst_115 [1] : vector<16x8xf32> to vector<16xf32>
    %310 = vector.shape_cast %309 : vector<16xf32> to vector<16x1xf32>
    %311 = arith.maximumf %302, %310 : vector<16x1xf32>
    %312 = arith.subf %302, %311 : vector<16x1xf32>
    %313 = math.exp %312 : vector<16x1xf32>
    %314 = vector.broadcast %311 : vector<16x1xf32> to vector<16x8xf32>
    %315 = arith.subf %308, %314 : vector<16x8xf32>
    %316 = math.exp %315 : vector<16x8xf32>
    %317 = arith.mulf %313, %303 : vector<16x1xf32>
    %cst_116 = arith.constant dense<0.000000e+00> : vector<16xf32>
    %318 = vector.multi_reduction <add>, %316, %cst_116 [1] : vector<16x8xf32> to vector<16xf32>
    %319 = vector.shape_cast %318 : vector<16xf32> to vector<16x1xf32>
    %320 = arith.addf %317, %319 : vector<16x1xf32>
    %321 = vector.broadcast %313 : vector<16x1xf32> to vector<16x8xf32>
    %322 = arith.mulf %321, %304 : vector<16x8xf32>
    %323 = arith.truncf %316 : vector<16x8xf32> to vector<16x8xbf16>
    %324 = vector.extract_strided_slice %242 {offsets = [0, 16], sizes = [8, 8], strides = [1, 1]} : vector<8x32xbf16> to vector<8x8xbf16>
    %cst_117 = arith.constant dense<0.000000e+00> : vector<16x8xf32>
    %325 = tpu.matmul %323, %324, %cst_117 {dimension_numbers = #tpu.dot_dimension_numbers<[1], [0], [0], [1], [0, 0, 1, 1], [], []>} : vector<16x8xbf16>, vector<8x8xbf16>, vector<16x8xf32> -> vector<16x8xf32>
    %326 = arith.addf %322, %325 : vector<16x8xf32>
    %327 = tpu.reciprocal %320 {approx = true} : vector<16x1xf32> -> vector<16x1xf32>
    %328 = vector.broadcast %327 : vector<16x1xf32> to vector<16x8xf32>
    %329 = arith.mulf %326, %328 : vector<16x8xf32>
    %330 = vector.extract_strided_slice %240 {offsets = [0, 24], sizes = [16, 8], strides = [1, 1]} : vector<16x32xbf16> to vector<16x8xbf16>
    %cst_118 = arith.constant -1.000000e+30 : f32
    %331 = vector.broadcast %cst_118 : f32 to vector<16x1xf32>
    %cst_119 = arith.constant 0.000000e+00 : f32
    %332 = vector.broadcast %cst_119 : f32 to vector<16x1xf32>
    %cst_120 = arith.constant 0.000000e+00 : f32
    %333 = vector.broadcast %cst_120 : f32 to vector<16x8xf32>
    %334 = vector.extract_strided_slice %241 {offsets = [0, 24], sizes = [8, 8], strides = [1, 1]} : vector<8x32xbf16> to vector<8x8xbf16>
    %cst_121 = arith.constant dense<0.000000e+00> : vector<16x8xf32>
    %335 = tpu.matmul %330, %334, %cst_121 {dimension_numbers = #tpu.dot_dimension_numbers<[1], [1], [0], [0], [0, 0, 1, 0], [], []>} : vector<16x8xbf16>, vector<8x8xbf16>, vector<16x8xf32> -> vector<16x8xf32>
    %336 = vector.broadcast %22 : vector<1x8xf32> to vector<16x8xf32>
    %337 = arith.addf %335, %336 : vector<16x8xf32>
    %cst_122 = arith.constant dense<0xFF800000> : vector<16xf32>
    %338 = vector.multi_reduction <maximumf>, %337, %cst_122 [1] : vector<16x8xf32> to vector<16xf32>
    %339 = vector.shape_cast %338 : vector<16xf32> to vector<16x1xf32>
    %340 = arith.maximumf %331, %339 : vector<16x1xf32>
    %341 = arith.subf %331, %340 : vector<16x1xf32>
    %342 = math.exp %341 : vector<16x1xf32>
    %343 = vector.broadcast %340 : vector<16x1xf32> to vector<16x8xf32>
    %344 = arith.subf %337, %343 : vector<16x8xf32>
    %345 = math.exp %344 : vector<16x8xf32>
    %346 = arith.mulf %342, %332 : vector<16x1xf32>
    %cst_123 = arith.constant dense<0.000000e+00> : vector<16xf32>
    %347 = vector.multi_reduction <add>, %345, %cst_123 [1] : vector<16x8xf32> to vector<16xf32>
    %348 = vector.shape_cast %347 : vector<16xf32> to vector<16x1xf32>
    %349 = arith.addf %346, %348 : vector<16x1xf32>
    %350 = vector.broadcast %342 : vector<16x1xf32> to vector<16x8xf32>
    %351 = arith.mulf %350, %333 : vector<16x8xf32>
    %352 = arith.truncf %345 : vector<16x8xf32> to vector<16x8xbf16>
    %353 = vector.extract_strided_slice %242 {offsets = [0, 24], sizes = [8, 8], strides = [1, 1]} : vector<8x32xbf16> to vector<8x8xbf16>
    %cst_124 = arith.constant dense<0.000000e+00> : vector<16x8xf32>
    %354 = tpu.matmul %352, %353, %cst_124 {dimension_numbers = #tpu.dot_dimension_numbers<[1], [0], [0], [1], [0, 0, 1, 1], [], []>} : vector<16x8xbf16>, vector<8x8xbf16>, vector<16x8xf32> -> vector<16x8xf32>
    %355 = arith.addf %351, %354 : vector<16x8xf32>
    %356 = tpu.reciprocal %349 {approx = true} : vector<16x1xf32> -> vector<16x1xf32>
    %357 = vector.broadcast %356 : vector<16x1xf32> to vector<16x8xf32>
    %358 = arith.mulf %355, %357 : vector<16x8xf32>
    %359 = tpu.concatenate %271, %300, %329, %358 in 1 : vector<16x8xf32>, vector<16x8xf32>, vector<16x8xf32>, vector<16x8xf32> -> vector<16x32xf32>
    %360 = arith.truncf %359 : vector<16x32xf32> to vector<16x32xbf16>
    %c0_125 = arith.constant 0 : index
    %c0_126 = arith.constant 0 : index
    %c0_127 = arith.constant 0 : index
    %361 = vector.load %arg16[%c0_125, %c0_126, %c0_127] : memref<1x32x32xbf16, #tpu.memory_space<vmem>>, vector<1x32x32xbf16>
    %362 = vector.shape_cast %361 : vector<1x32x32xbf16> to vector<32x32xbf16>
    %cst_128 = arith.constant dense<0.000000e+00> : vector<16x32xf32>
    %363 = tpu.matmul %360, %362, %cst_128 {dimension_numbers = #tpu.dot_dimension_numbers<[1], [0], [0], [1], [0, 0, 1, 1], [], []>} : vector<16x32xbf16>, vector<32x32xbf16>, vector<16x32xf32> -> vector<16x32xf32>
    %c0_129 = arith.constant 0 : index
    %c0_130 = arith.constant 0 : index
    %c0_131 = arith.constant 0 : index
    %364 = vector.load %arg17[%c0_129, %c0_130, %c0_131] : memref<1x1x32xf32, #tpu.memory_space<vmem>>, vector<1x1x32xf32>
    %365 = vector.shape_cast %364 : vector<1x1x32xf32> to vector<1x32xf32>
    %366 = vector.broadcast %365 : vector<1x32xf32> to vector<16x32xf32>
    %367 = arith.addf %363, %366 : vector<16x32xf32>
    %368 = arith.addf %367, %196 : vector<16x32xf32>
    %cst_132 = arith.constant dense<0.000000e+00> : vector<16xf32>
    %369 = vector.multi_reduction <add>, %368, %cst_132 [1] : vector<16x32xf32> to vector<16xf32>
    %370 = vector.shape_cast %369 : vector<16xf32> to vector<16x1xf32>
    %cst_133 = arith.constant 3.200000e+01 : f32
    %371 = vector.broadcast %cst_133 : f32 to vector<16x1xf32>
    %372 = arith.divf %370, %371 : vector<16x1xf32>
    %373 = vector.broadcast %372 : vector<16x1xf32> to vector<16x32xf32>
    %374 = arith.subf %368, %373 : vector<16x32xf32>
    %375 = arith.mulf %374, %374 : vector<16x32xf32>
    %cst_134 = arith.constant dense<0.000000e+00> : vector<16xf32>
    %376 = vector.multi_reduction <add>, %375, %cst_134 [1] : vector<16x32xf32> to vector<16xf32>
    %377 = vector.shape_cast %376 : vector<16xf32> to vector<16x1xf32>
    %cst_135 = arith.constant 3.200000e+01 : f32
    %378 = vector.broadcast %cst_135 : f32 to vector<16x1xf32>
    %379 = arith.divf %377, %378 : vector<16x1xf32>
    %380 = vector.broadcast %372 : vector<16x1xf32> to vector<16x32xf32>
    %381 = arith.subf %368, %380 : vector<16x32xf32>
    %cst_136 = arith.constant 9.99999997E-7 : f32
    %382 = vector.broadcast %cst_136 : f32 to vector<16x1xf32>
    %383 = arith.addf %379, %382 : vector<16x1xf32>
    %384 = math.rsqrt %383 : vector<16x1xf32>
    %385 = vector.broadcast %384 : vector<16x1xf32> to vector<16x32xf32>
    %386 = arith.mulf %381, %385 : vector<16x32xf32>
    %cst_137 = arith.constant 1.000000e+00 : f32
    %387 = vector.broadcast %cst_137 : f32 to vector<1x32xf32>
    %388 = arith.addf %387, %29 : vector<1x32xf32>
    %389 = vector.broadcast %388 : vector<1x32xf32> to vector<16x32xf32>
    %390 = arith.mulf %386, %389 : vector<16x32xf32>
    %391 = vector.broadcast %28 : vector<1x32xf32> to vector<16x32xf32>
    %392 = arith.addf %390, %391 : vector<16x32xf32>
    %393 = vector.broadcast %1 : vector<16x1xf32> to vector<16x32xf32>
    %394 = arith.mulf %392, %393 : vector<16x32xf32>
    %c0_138 = arith.constant 0 : index
    %c0_139 = arith.constant 0 : index
    %c0_140 = arith.constant 0 : index
    %395 = vector.load %arg21[%c0_138, %c0_139, %c0_140] : memref<1x1x64xf32, #tpu.memory_space<vmem>>, vector<1x1x64xf32>
    %396 = vector.shape_cast %395 : vector<1x1x64xf32> to vector<1x64xf32>
    %397 = tpu.iota {dimensions = array<i32: 0>} : vector<16x32xi32>
    %c1_i32 = arith.constant 1 : i32
    %398 = tpu.dynamic_rotate %394 by %c1_i32 dim 0 : vector<16x32xf32>, i32 -> vector<16x32xf32>
    %c-1_i32 = arith.constant -1 : i32
    %399 = vector.broadcast %c-1_i32 : i32 to vector<16x32xi32>
    %400 = arith.addi %397, %399 : vector<16x32xi32>
    %c0_i32_141 = arith.constant 0 : i32
    %401 = vector.broadcast %c0_i32_141 : i32 to vector<16x32xi32>
    %402 = arith.cmpi sge, %400, %401 : vector<16x32xi32>
    %c-1_i32_142 = arith.constant -1 : i32
    %403 = vector.broadcast %c-1_i32_142 : i32 to vector<16x32xi32>
    %404 = arith.addi %397, %403 : vector<16x32xi32>
    %c16_i32 = arith.constant 16 : i32
    %405 = vector.broadcast %c16_i32 : i32 to vector<16x32xi32>
    %406 = arith.cmpi slt, %404, %405 : vector<16x32xi32>
    %407 = arith.andi %402, %406 : vector<16x32xi1>
    %cst_143 = arith.constant 0.000000e+00 : f32
    %408 = vector.broadcast %cst_143 : f32 to vector<16x32xf32>
    %409 = arith.select %407, %398, %408 : vector<16x32xi1>, vector<16x32xf32>
    %410 = arith.truncf %409 : vector<16x32xf32> to vector<16x32xbf16>
    %c0_144 = arith.constant 0 : index
    %c0_145 = arith.constant 0 : index
    %c0_146 = arith.constant 0 : index
    %c0_147 = arith.constant 0 : index
    %411 = vector.load %arg20[%c0_144, %c0_145, %c0_146, %c0_147] : memref<1x3x32x64xbf16, #tpu.memory_space<vmem>>, vector<1x1x32x64xbf16>
    %412 = vector.shape_cast %411 : vector<1x1x32x64xbf16> to vector<32x64xbf16>
    %cst_148 = arith.constant dense<0.000000e+00> : vector<16x64xf32>
    %413 = tpu.matmul %410, %412, %cst_148 {dimension_numbers = #tpu.dot_dimension_numbers<[1], [0], [0], [1], [0, 0, 1, 1], [], []>} : vector<16x32xbf16>, vector<32x64xbf16>, vector<16x64xf32> -> vector<16x64xf32>
    %414 = arith.truncf %394 : vector<16x32xf32> to vector<16x32xbf16>
    %c0_149 = arith.constant 0 : index
    %c1 = arith.constant 1 : index
    %c0_150 = arith.constant 0 : index
    %c0_151 = arith.constant 0 : index
    %415 = vector.load %arg20[%c0_149, %c1, %c0_150, %c0_151] : memref<1x3x32x64xbf16, #tpu.memory_space<vmem>>, vector<1x1x32x64xbf16>
    %416 = vector.shape_cast %415 : vector<1x1x32x64xbf16> to vector<32x64xbf16>
    %cst_152 = arith.constant dense<0.000000e+00> : vector<16x64xf32>
    %417 = tpu.matmul %414, %416, %cst_152 {dimension_numbers = #tpu.dot_dimension_numbers<[1], [0], [0], [1], [0, 0, 1, 1], [], []>} : vector<16x32xbf16>, vector<32x64xbf16>, vector<16x64xf32> -> vector<16x64xf32>
    %418 = arith.addf %413, %417 : vector<16x64xf32>
    %c15_i32 = arith.constant 15 : i32
    %419 = tpu.dynamic_rotate %394 by %c15_i32 dim 0 : vector<16x32xf32>, i32 -> vector<16x32xf32>
    %c1_i32_153 = arith.constant 1 : i32
    %420 = vector.broadcast %c1_i32_153 : i32 to vector<16x32xi32>
    %421 = arith.addi %397, %420 : vector<16x32xi32>
    %c0_i32_154 = arith.constant 0 : i32
    %422 = vector.broadcast %c0_i32_154 : i32 to vector<16x32xi32>
    %423 = arith.cmpi sge, %421, %422 : vector<16x32xi32>
    %c1_i32_155 = arith.constant 1 : i32
    %424 = vector.broadcast %c1_i32_155 : i32 to vector<16x32xi32>
    %425 = arith.addi %397, %424 : vector<16x32xi32>
    %c16_i32_156 = arith.constant 16 : i32
    %426 = vector.broadcast %c16_i32_156 : i32 to vector<16x32xi32>
    %427 = arith.cmpi slt, %425, %426 : vector<16x32xi32>
    %428 = arith.andi %423, %427 : vector<16x32xi1>
    %cst_157 = arith.constant 0.000000e+00 : f32
    %429 = vector.broadcast %cst_157 : f32 to vector<16x32xf32>
    %430 = arith.select %428, %419, %429 : vector<16x32xi1>, vector<16x32xf32>
    %431 = arith.truncf %430 : vector<16x32xf32> to vector<16x32xbf16>
    %c0_158 = arith.constant 0 : index
    %c2 = arith.constant 2 : index
    %c0_159 = arith.constant 0 : index
    %c0_160 = arith.constant 0 : index
    %432 = vector.load %arg20[%c0_158, %c2, %c0_159, %c0_160] : memref<1x3x32x64xbf16, #tpu.memory_space<vmem>>, vector<1x1x32x64xbf16>
    %433 = vector.shape_cast %432 : vector<1x1x32x64xbf16> to vector<32x64xbf16>
    %cst_161 = arith.constant dense<0.000000e+00> : vector<16x64xf32>
    %434 = tpu.matmul %431, %433, %cst_161 {dimension_numbers = #tpu.dot_dimension_numbers<[1], [0], [0], [1], [0, 0, 1, 1], [], []>} : vector<16x32xbf16>, vector<32x64xbf16>, vector<16x64xf32> -> vector<16x64xf32>
    %435 = arith.addf %418, %434 : vector<16x64xf32>
    %436 = vector.broadcast %396 : vector<1x64xf32> to vector<16x64xf32>
    %437 = arith.addf %435, %436 : vector<16x64xf32>
    %cst_162 = arith.constant 0.000000e+00 : f32
    %438 = vector.broadcast %cst_162 : f32 to vector<16x64xf32>
    %439 = arith.maximumf %437, %438 : vector<16x64xf32>
    %440 = vector.broadcast %1 : vector<16x1xf32> to vector<16x64xf32>
    %441 = arith.mulf %439, %440 : vector<16x64xf32>
    %c0_163 = arith.constant 0 : index
    %c0_164 = arith.constant 0 : index
    %c0_165 = arith.constant 0 : index
    %442 = vector.load %arg23[%c0_163, %c0_164, %c0_165] : memref<1x1x32xf32, #tpu.memory_space<vmem>>, vector<1x1x32xf32>
    %443 = vector.shape_cast %442 : vector<1x1x32xf32> to vector<1x32xf32>
    %444 = tpu.iota {dimensions = array<i32: 0>} : vector<16x64xi32>
    %c1_i32_166 = arith.constant 1 : i32
    %445 = tpu.dynamic_rotate %441 by %c1_i32_166 dim 0 : vector<16x64xf32>, i32 -> vector<16x64xf32>
    %c-1_i32_167 = arith.constant -1 : i32
    %446 = vector.broadcast %c-1_i32_167 : i32 to vector<16x64xi32>
    %447 = arith.addi %444, %446 : vector<16x64xi32>
    %c0_i32_168 = arith.constant 0 : i32
    %448 = vector.broadcast %c0_i32_168 : i32 to vector<16x64xi32>
    %449 = arith.cmpi sge, %447, %448 : vector<16x64xi32>
    %c-1_i32_169 = arith.constant -1 : i32
    %450 = vector.broadcast %c-1_i32_169 : i32 to vector<16x64xi32>
    %451 = arith.addi %444, %450 : vector<16x64xi32>
    %c16_i32_170 = arith.constant 16 : i32
    %452 = vector.broadcast %c16_i32_170 : i32 to vector<16x64xi32>
    %453 = arith.cmpi slt, %451, %452 : vector<16x64xi32>
    %454 = arith.andi %449, %453 : vector<16x64xi1>
    %cst_171 = arith.constant 0.000000e+00 : f32
    %455 = vector.broadcast %cst_171 : f32 to vector<16x64xf32>
    %456 = arith.select %454, %445, %455 : vector<16x64xi1>, vector<16x64xf32>
    %457 = arith.truncf %456 : vector<16x64xf32> to vector<16x64xbf16>
    %c0_172 = arith.constant 0 : index
    %c0_173 = arith.constant 0 : index
    %c0_174 = arith.constant 0 : index
    %c0_175 = arith.constant 0 : index
    %458 = vector.load %arg22[%c0_172, %c0_173, %c0_174, %c0_175] : memref<1x3x64x32xbf16, #tpu.memory_space<vmem>>, vector<1x1x64x32xbf16>
    %459 = vector.shape_cast %458 : vector<1x1x64x32xbf16> to vector<64x32xbf16>
    %cst_176 = arith.constant dense<0.000000e+00> : vector<16x32xf32>
    %460 = tpu.matmul %457, %459, %cst_176 {dimension_numbers = #tpu.dot_dimension_numbers<[1], [0], [0], [1], [0, 0, 1, 1], [], []>} : vector<16x64xbf16>, vector<64x32xbf16>, vector<16x32xf32> -> vector<16x32xf32>
    %461 = arith.truncf %441 : vector<16x64xf32> to vector<16x64xbf16>
    %c0_177 = arith.constant 0 : index
    %c1_178 = arith.constant 1 : index
    %c0_179 = arith.constant 0 : index
    %c0_180 = arith.constant 0 : index
    %462 = vector.load %arg22[%c0_177, %c1_178, %c0_179, %c0_180] : memref<1x3x64x32xbf16, #tpu.memory_space<vmem>>, vector<1x1x64x32xbf16>
    %463 = vector.shape_cast %462 : vector<1x1x64x32xbf16> to vector<64x32xbf16>
    %cst_181 = arith.constant dense<0.000000e+00> : vector<16x32xf32>
    %464 = tpu.matmul %461, %463, %cst_181 {dimension_numbers = #tpu.dot_dimension_numbers<[1], [0], [0], [1], [0, 0, 1, 1], [], []>} : vector<16x64xbf16>, vector<64x32xbf16>, vector<16x32xf32> -> vector<16x32xf32>
    %465 = arith.addf %460, %464 : vector<16x32xf32>
    %c15_i32_182 = arith.constant 15 : i32
    %466 = tpu.dynamic_rotate %441 by %c15_i32_182 dim 0 : vector<16x64xf32>, i32 -> vector<16x64xf32>
    %c1_i32_183 = arith.constant 1 : i32
    %467 = vector.broadcast %c1_i32_183 : i32 to vector<16x64xi32>
    %468 = arith.addi %444, %467 : vector<16x64xi32>
    %c0_i32_184 = arith.constant 0 : i32
    %469 = vector.broadcast %c0_i32_184 : i32 to vector<16x64xi32>
    %470 = arith.cmpi sge, %468, %469 : vector<16x64xi32>
    %c1_i32_185 = arith.constant 1 : i32
    %471 = vector.broadcast %c1_i32_185 : i32 to vector<16x64xi32>
    %472 = arith.addi %444, %471 : vector<16x64xi32>
    %c16_i32_186 = arith.constant 16 : i32
    %473 = vector.broadcast %c16_i32_186 : i32 to vector<16x64xi32>
    %474 = arith.cmpi slt, %472, %473 : vector<16x64xi32>
    %475 = arith.andi %470, %474 : vector<16x64xi1>
    %cst_187 = arith.constant 0.000000e+00 : f32
    %476 = vector.broadcast %cst_187 : f32 to vector<16x64xf32>
    %477 = arith.select %475, %466, %476 : vector<16x64xi1>, vector<16x64xf32>
    %478 = arith.truncf %477 : vector<16x64xf32> to vector<16x64xbf16>
    %c0_188 = arith.constant 0 : index
    %c2_189 = arith.constant 2 : index
    %c0_190 = arith.constant 0 : index
    %c0_191 = arith.constant 0 : index
    %479 = vector.load %arg22[%c0_188, %c2_189, %c0_190, %c0_191] : memref<1x3x64x32xbf16, #tpu.memory_space<vmem>>, vector<1x1x64x32xbf16>
    %480 = vector.shape_cast %479 : vector<1x1x64x32xbf16> to vector<64x32xbf16>
    %cst_192 = arith.constant dense<0.000000e+00> : vector<16x32xf32>
    %481 = tpu.matmul %478, %480, %cst_192 {dimension_numbers = #tpu.dot_dimension_numbers<[1], [0], [0], [1], [0, 0, 1, 1], [], []>} : vector<16x64xbf16>, vector<64x32xbf16>, vector<16x32xf32> -> vector<16x32xf32>
    %482 = arith.addf %465, %481 : vector<16x32xf32>
    %483 = vector.broadcast %443 : vector<1x32xf32> to vector<16x32xf32>
    %484 = arith.addf %482, %483 : vector<16x32xf32>
    %485 = vector.broadcast %1 : vector<16x1xf32> to vector<16x32xf32>
    %486 = arith.mulf %484, %485 : vector<16x32xf32>
    %487 = vector.broadcast %30 : vector<1x32xf32> to vector<16x32xf32>
    %488 = arith.mulf %487, %486 : vector<16x32xf32>
    %489 = arith.addf %488, %368 : vector<16x32xf32>
    %490 = vector.broadcast %1 : vector<16x1xf32> to vector<16x32xf32>
    %491 = arith.mulf %489, %490 : vector<16x32xf32>
    %c1_i32_193 = arith.constant 1 : i32
    %492 = arith.cmpi slt, %arg1, %c1_i32_193 : i32
    %493 = arith.extui %492 : i1 to i32
    %c0_i32_194 = arith.constant 0 : i32
    %494 = arith.cmpi ne, %493, %c0_i32_194 : i32
    scf.if %494 {
      %c0_197 = arith.constant 0 : index
      %c0_198 = arith.constant 0 : index
      %c0_199 = arith.constant 0 : index
      %498 = vector.load %arg26[%c0_197, %c0_198, %c0_199] : memref<1x16x32xf32, #tpu.memory_space<vmem>>, vector<1x16x32xf32>
      %499 = vector.shape_cast %498 : vector<1x16x32xf32> to vector<16x32xf32>
      %500 = vector.shape_cast %491 : vector<16x32xf32> to vector<1x16x32xf32>
      tpu.vector_store %arg26[%c0_197, %c0_198, %c0_199], %500 {strides = array<i32>} : memref<1x16x32xf32, #tpu.memory_space<vmem>>, vector<1x16x32xf32>,
    } else {
    }
    %c1_i32_195 = arith.constant 1 : i32
    %495 = arith.cmpi eq, %arg1, %c1_i32_195 : i32
    %496 = arith.extui %495 : i1 to i32
    %c0_i32_196 = arith.constant 0 : i32
    %497 = arith.cmpi ne, %496, %c0_i32_196 : i32
    scf.if %497 {
      %cst_197 = arith.constant dense<0.000000e+00> : vector<16xf32>
      %498 = vector.multi_reduction <add>, %491, %cst_197 [1] : vector<16x32xf32> to vector<16xf32>
      %499 = vector.shape_cast %498 : vector<16xf32> to vector<16x1xf32>
      %cst_198 = arith.constant 3.200000e+01 : f32
      %500 = vector.broadcast %cst_198 : f32 to vector<16x1xf32>
      %501 = arith.divf %499, %500 : vector<16x1xf32>
      %502 = vector.broadcast %501 : vector<16x1xf32> to vector<16x32xf32>
      %503 = arith.subf %491, %502 : vector<16x32xf32>
      %504 = arith.mulf %503, %503 : vector<16x32xf32>
      %cst_199 = arith.constant dense<0.000000e+00> : vector<16xf32>
      %505 = vector.multi_reduction <add>, %504, %cst_199 [1] : vector<16x32xf32> to vector<16xf32>
      %506 = vector.shape_cast %505 : vector<16xf32> to vector<16x1xf32>
      %cst_200 = arith.constant 3.200000e+01 : f32
      %507 = vector.broadcast %cst_200 : f32 to vector<16x1xf32>
      %508 = arith.divf %506, %507 : vector<16x1xf32>
      %509 = vector.broadcast %501 : vector<16x1xf32> to vector<16x32xf32>
      %510 = arith.subf %491, %509 : vector<16x32xf32>
      %cst_201 = arith.constant 9.99999974E-6 : f32
      %511 = vector.broadcast %cst_201 : f32 to vector<16x1xf32>
      %512 = arith.addf %508, %511 : vector<16x1xf32>
      %513 = math.rsqrt %512 : vector<16x1xf32>
      %514 = vector.broadcast %513 : vector<16x1xf32> to vector<16x32xf32>
      %515 = arith.mulf %510, %514 : vector<16x32xf32>
      %c0_202 = arith.constant 0 : index
      %c0_203 = arith.constant 0 : index
      %516 = vector.load %arg24[%c0_202, %c0_203] : memref<1x32xf32, #tpu.memory_space<vmem>>, vector<1x32xf32>
      %517 = vector.broadcast %516 : vector<1x32xf32> to vector<16x32xf32>
      %518 = arith.mulf %515, %517 : vector<16x32xf32>
      %c0_204 = arith.constant 0 : index
      %c0_205 = arith.constant 0 : index
      %519 = vector.load %arg25[%c0_204, %c0_205] : memref<1x32xf32, #tpu.memory_space<vmem>>, vector<1x32xf32>
      %520 = vector.broadcast %519 : vector<1x32xf32> to vector<16x32xf32>
      %521 = arith.addf %518, %520 : vector<16x32xf32>
      %c0_206 = arith.constant 0 : index
      %c0_207 = arith.constant 0 : index
      %c0_208 = arith.constant 0 : index
      %522 = vector.load %arg26[%c0_206, %c0_207, %c0_208] : memref<1x16x32xf32, #tpu.memory_space<vmem>>, vector<1x16x32xf32>
      %523 = vector.shape_cast %522 : vector<1x16x32xf32> to vector<16x32xf32>
      %524 = vector.shape_cast %521 : vector<16x32xf32> to vector<1x16x32xf32>
      tpu.vector_store %arg26[%c0_206, %c0_207, %c0_208], %524 {strides = array<i32>} : memref<1x16x32xf32, #tpu.memory_space<vmem>>, vector<1x16x32xf32>,
    } else {
    }
    return
  }
  func.func @transform_0(%arg0: i32, %arg1: i32) -> (i32, i32, i32) {
    %c0_i32 = arith.constant 0 : i32
    %c0_i32_0 = arith.constant 0 : i32
    %c0_i32_1 = arith.constant 0 : i32
    return %arg0, %c0_i32, %c0_i32_0 : i32, i32, i32
  }
  func.func @transform_1(%arg0: i32, %arg1: i32) -> (i32, i32, i32) {
    %c0_i32 = arith.constant 0 : i32
    %c0_i32_0 = arith.constant 0 : i32
    %c0_i32_1 = arith.constant 0 : i32
    return %arg0, %c0_i32, %c0_i32_0 : i32, i32, i32
  }
  func.func @transform_2(%arg0: i32, %arg1: i32) -> (i32, i32, i32) {
    %c0_i32 = arith.constant 0 : i32
    %c0_i32_0 = arith.constant 0 : i32
    %c0_i32_1 = arith.constant 0 : i32
    return %arg0, %c0_i32, %c0_i32_0 : i32, i32, i32
  }
  func.func @transform_3(%arg0: i32, %arg1: i32) -> (i32, i32, i32) {
    %c0_i32 = arith.constant 0 : i32
    %c0_i32_0 = arith.constant 0 : i32
    %c0_i32_1 = arith.constant 0 : i32
    return %arg0, %c0_i32, %c0_i32_0 : i32, i32, i32
  }
  func.func @transform_4(%arg0: i32, %arg1: i32) -> (i32, i32, i32) {
    %c0_i32 = arith.constant 0 : i32
    %c0_i32_0 = arith.constant 0 : i32
    %c0_i32_1 = arith.constant 0 : i32
    return %arg0, %c0_i32, %c0_i32_0 : i32, i32, i32
  }
  func.func @transform_5(%arg0: i32, %arg1: i32) -> (i32, i32, i32, i32) {
    %c0_i32 = arith.constant 0 : i32
    %c0_i32_0 = arith.constant 0 : i32
    %c0_i32_1 = arith.constant 0 : i32
    return %arg1, %arg0, %c0_i32, %c0_i32_0 : i32, i32, i32, i32
  }
  func.func @transform_6(%arg0: i32, %arg1: i32) -> (i32, i32, i32) {
    %c0_i32 = arith.constant 0 : i32
    %c0_i32_0 = arith.constant 0 : i32
    %c0_i32_1 = arith.constant 0 : i32
    return %arg1, %c0_i32, %c0_i32_0 : i32, i32, i32
  }
  func.func @transform_7(%arg0: i32, %arg1: i32) -> (i32, i32, i32) {
    %c0_i32 = arith.constant 0 : i32
    %c0_i32_0 = arith.constant 0 : i32
    %c0_i32_1 = arith.constant 0 : i32
    return %arg1, %c0_i32, %c0_i32_0 : i32, i32, i32
  }
  func.func @transform_8(%arg0: i32, %arg1: i32) -> (i32, i32, i32) {
    %c0_i32 = arith.constant 0 : i32
    %c0_i32_0 = arith.constant 0 : i32
    %c0_i32_1 = arith.constant 0 : i32
    return %arg1, %c0_i32, %c0_i32_0 : i32, i32, i32
  }
  func.func @transform_9(%arg0: i32, %arg1: i32) -> (i32, i32, i32) {
    %c0_i32 = arith.constant 0 : i32
    %c0_i32_0 = arith.constant 0 : i32
    %c0_i32_1 = arith.constant 0 : i32
    return %arg1, %c0_i32, %c0_i32_0 : i32, i32, i32
  }
  func.func @transform_10(%arg0: i32, %arg1: i32) -> (i32, i32, i32) {
    %c0_i32 = arith.constant 0 : i32
    %c0_i32_0 = arith.constant 0 : i32
    %c0_i32_1 = arith.constant 0 : i32
    return %arg1, %c0_i32, %c0_i32_0 : i32, i32, i32
  }
  func.func @transform_11(%arg0: i32, %arg1: i32) -> (i32, i32, i32) {
    %c0_i32 = arith.constant 0 : i32
    %c0_i32_0 = arith.constant 0 : i32
    %c0_i32_1 = arith.constant 0 : i32
    return %arg1, %c0_i32, %c0_i32_0 : i32, i32, i32
  }
  func.func @transform_12(%arg0: i32, %arg1: i32) -> (i32, i32, i32) {
    %c0_i32 = arith.constant 0 : i32
    %c0_i32_0 = arith.constant 0 : i32
    %c0_i32_1 = arith.constant 0 : i32
    return %arg1, %c0_i32, %c0_i32_0 : i32, i32, i32
  }
  func.func @transform_13(%arg0: i32, %arg1: i32) -> (i32, i32, i32) {
    %c0_i32 = arith.constant 0 : i32
    %c0_i32_0 = arith.constant 0 : i32
    %c0_i32_1 = arith.constant 0 : i32
    return %arg1, %c0_i32, %c0_i32_0 : i32, i32, i32
  }
  func.func @transform_14(%arg0: i32, %arg1: i32) -> (i32, i32, i32) {
    %c0_i32 = arith.constant 0 : i32
    %c0_i32_0 = arith.constant 0 : i32
    %c0_i32_1 = arith.constant 0 : i32
    return %arg1, %c0_i32, %c0_i32_0 : i32, i32, i32
  }
  func.func @transform_15(%arg0: i32, %arg1: i32) -> (i32, i32, i32) {
    %c0_i32 = arith.constant 0 : i32
    %c0_i32_0 = arith.constant 0 : i32
    %c0_i32_1 = arith.constant 0 : i32
    return %arg1, %c0_i32, %c0_i32_0 : i32, i32, i32
  }
  func.func @transform_16(%arg0: i32, %arg1: i32) -> (i32, i32, i32) {
    %c0_i32 = arith.constant 0 : i32
    %c0_i32_0 = arith.constant 0 : i32
    %c0_i32_1 = arith.constant 0 : i32
    return %arg1, %c0_i32, %c0_i32_0 : i32, i32, i32
  }
  func.func @transform_17(%arg0: i32, %arg1: i32) -> (i32, i32, i32) {
    %c0_i32 = arith.constant 0 : i32
    %c0_i32_0 = arith.constant 0 : i32
    %c0_i32_1 = arith.constant 0 : i32
    return %arg1, %c0_i32, %c0_i32_0 : i32, i32, i32
  }
  func.func @transform_18(%arg0: i32, %arg1: i32) -> (i32, i32, i32, i32) {
    %c0_i32 = arith.constant 0 : i32
    %c0_i32_0 = arith.constant 0 : i32
    %c0_i32_1 = arith.constant 0 : i32
    %c0_i32_2 = arith.constant 0 : i32
    return %arg1, %c0_i32, %c0_i32_0, %c0_i32_1 : i32, i32, i32, i32
  }
  func.func @transform_19(%arg0: i32, %arg1: i32) -> (i32, i32, i32) {
    %c0_i32 = arith.constant 0 : i32
    %c0_i32_0 = arith.constant 0 : i32
    %c0_i32_1 = arith.constant 0 : i32
    return %arg1, %c0_i32, %c0_i32_0 : i32, i32, i32
  }
  func.func @transform_20(%arg0: i32, %arg1: i32) -> (i32, i32, i32, i32) {
    %c0_i32 = arith.constant 0 : i32
    %c0_i32_0 = arith.constant 0 : i32
    %c0_i32_1 = arith.constant 0 : i32
    %c0_i32_2 = arith.constant 0 : i32
    return %arg1, %c0_i32, %c0_i32_0, %c0_i32_1 : i32, i32, i32, i32
  }
  func.func @transform_21(%arg0: i32, %arg1: i32) -> (i32, i32, i32) {
    %c0_i32 = arith.constant 0 : i32
    %c0_i32_0 = arith.constant 0 : i32
    %c0_i32_1 = arith.constant 0 : i32
    return %arg1, %c0_i32, %c0_i32_0 : i32, i32, i32
  }
  func.func @transform_22(%arg0: i32, %arg1: i32) -> (i32, i32) {
    %c0_i32 = arith.constant 0 : i32
    %c0_i32_0 = arith.constant 0 : i32
    %c0_i32_1 = arith.constant 0 : i32
    return %c0_i32, %c0_i32_0 : i32, i32
  }
  func.func @transform_23(%arg0: i32, %arg1: i32) -> (i32, i32) {
    %c0_i32 = arith.constant 0 : i32
    %c0_i32_0 = arith.constant 0 : i32
    %c0_i32_1 = arith.constant 0 : i32
    return %c0_i32, %c0_i32_0 : i32, i32
  }
  func.func @transform_24(%arg0: i32, %arg1: i32) -> (i32, i32, i32) {
    %c0_i32 = arith.constant 0 : i32
    %c0_i32_0 = arith.constant 0 : i32
    %c0_i32_1 = arith.constant 0 : i32
    return %arg0, %c0_i32, %c0_i32_0 : i32, i32, i32
  }
}

</mosaic_0001>

<bundles_post_ra>
// kernel: decoder_forward.1
= control target key start
LH: loop header
LB: loop body
LE: loop exit
PB: predicated region body
PF: predicated region fallthrough
CT: control target
= control target key end

     0   :  { %s4459_s26 = smov 0   ;;  %s4461_s27 = smov 0   ;;  %s5259_s0 = inlined_call_operand.vmem [shape: f32[2,16,32], index: 0, kind: input, shape index: {}, may-alias: {0,24}]   ;;  %s5260_s1 = inlined_call_operand.vmem [shape: f32[2,16,1], index: 1, kind: input, shape index: {}]   ;;  %s5261_s2 = inlined_call_operand.vmem [shape: f32[2,1,16], index: 2, kind: input, shape index: {}]   ;;  %s5262_s3 = inlined_call_operand.vmem [shape: bf16[2,8,32], index: 3, kind: input, shape index: {}]   ;;  %s5263_s4 = inlined_call_operand.vmem [shape: f32[2,1,8], index: 4, kind: input, shape index: {}]   ;;  %s5264_s5 = inlined_call_operand.vmem [shape: f32[2,2,6,32], index: 5, kind: input, shape index: {}]   ;;  %s5265_s6 = inlined_call_operand.vmem [shape: bf16[2,32,96], index: 6, kind: input, shape index: {}]   ;;  %s5266_s7 = inlined_call_operand.vmem [shape: f32[2,1,96], index: 7, kind: input, shape index: {}]   ;;  %s5267_s8 = inlined_call_operand.vmem [shape: bf16[2,32,32], index: 8, kind: input, shape index: {}]   ;;  %s5268_s9 = inlined_call_operand.vmem [shape: f32[2,1,32], index: 9, kind: input, shape index: {}]   ;;  %s5269_s10 = inlined_call_operand.vmem [shape: bf16[2,32,32], index: 10, kind: input, shape index: {}]   ;;  %s5270_s11 = inlined_call_operand.vmem [shape: f32[2,1,32], index: 11, kind: input, shape index: {}]   ;;  %s5271_s12 = inlined_call_operand.vmem [shape: bf16[2,32,64], index: 12, kind: input, shape index: {}]   ;;  %s5272_s13 = inlined_call_operand.vmem [shape: f32[2,1,64], index: 13, kind: input, shape index: {}]   ;;  %s5273_s14 = inlined_call_operand.vmem [shape: bf16[2,32,32], index: 14, kind: input, shape index: {}]   ;;  %s5274_s15 = inlined_call_operand.vmem [shape: f32[2,1,32], index: 15, kind: input, shape index: {}]   ;;  %s5275_s16 = inlined_call_operand.vmem [shape: f32[2,1,32], index: 16, kind: input, shape index: {}]   ;;  %s5276_s17 = inlined_call_operand.vmem [shape: f32[2,1,32], index: 17, kind: input, shape index: {}]   ;;  %s5277_s18 = inlined_call_operand.vmem [shape: bf16[2,3,32,64], index: 18, kind: input, shape index: {}]   ;;  %s5278_s19 = inlined_call_operand.vmem [shape: f32[2,1,64], index: 19, kind: input, shape index: {}]   ;;  %s5279_s20 = inlined_call_operand.vmem [shape: bf16[2,3,64,32], index: 20, kind: input, shape index: {}]   ;;  %s5280_s21 = inlined_call_operand.vmem [shape: f32[2,1,32], index: 21, kind: input, shape index: {}]   ;;  %s5281_s22 = inlined_call_operand.vmem [shape: f32[1,32], index: 22, kind: input, shape index: {}]   ;;  %s5282_s23 = inlined_call_operand.vmem [shape: f32[1,32], index: 23, kind: input, shape index: {}]   ;;  %s5283_s24 = inlined_call_operand.vmem [shape: f32[2,16,32], index: 24, kind: output, shape index: {}, may-alias: {0,24}]  }
   0x1   :  { %5293 = sst [smem:[#allocation13_spill]] %s5259_s0  ;;  %s4463_s28 = smov 0  }
   0x2   :  { %5294 = sst [smem:[#allocation14_spill]] %s5260_s1 }
   0x3   :  { %5295 = sst [smem:[#allocation15_spill]] %s5261_s2 }
   0x4   :  { %5296 = sst [smem:[#allocation16_spill]] %s5262_s3 }
   0x5   :  { %5297 = sst [smem:[#allocation17_spill]] %s5263_s4 }
   0x6   :  { %5298 = sst [smem:[#allocation18_spill]] %s5264_s5  ;;  %s4457_s5 = smov 0  }
   0x7   :  { %5299 = sst [smem:[#allocation19_spill]] %s5265_s6  ;;  %s4465_s6 = smov 0  }
   0x8   :  { %5300 = sst [smem:[#allocation20_spill]] %s5266_s7 }
   0x9   :  { %5301 = sst [smem:[#allocation21_spill]] %s5267_s8 }
   0xa   :  { %5302 = sst [smem:[#allocation22_spill]] %s5269_s10 }
   0xb   :  { %5303 = sst [smem:[#allocation23_spill]] %s5270_s11 }
   0xc   :  { %5304 = sst [smem:[#allocation24_spill]] %s5271_s12 }
   0xd   :  { %5305 = sst [smem:[#allocation25_spill]] %s5273_s14 }
   0xe   :  { %5306 = sst [smem:[#allocation26_spill]] %s5274_s15 }
   0xf   :  { %5307 = sst [smem:[#allocation27_spill]] %s5277_s18 }
  0x10   :  { %5308 = sst [smem:[#allocation28_spill]] %s5279_s20 }
  0x11   :  { %5309 = sst [smem:[#allocation29_spill]] %s5280_s21 }
  0x12   :  { %5310 = sst [smem:[#allocation30_spill]] %s5281_s22 }
  0x13   :  { %5311 = sst [smem:[#allocation31_spill]] %s5282_s23 }
  0x14   :  { %5312 = sst [smem:[#allocation32_spill]] %s5283_s24 }
  0x15 LB: > { %5313 = sst [smem:[#allocation2_spill]] %s4295_s5  ;;  %s43_s2 = sadd.s32 1, %s4303_s27  ;;  %s4311_s6 = sphi %s4465_s6, %s34_s6   ;;  %s4307_s28 = sphi %s4463_s28, %s5371_s28   ;;  %s4303_s27 = sphi %s4461_s27, %s5370_s27   ;;  %s4299_s26 = sphi %s4459_s26, %s5369_s26   ;;  %s4295_s5 = sphi %s4457_s5, %s5368_s5  }
  0x16   : > { %5314 = sst [smem:[#allocation3_spill]] %s4303_s27  ;;  %s46_s29 = sadd.s32 1, %s4307_s28 }
  0x17   : > { %5315 = sst [smem:[#allocation4_spill]] %s4307_s28  ;;  %p44_p0 = scmp.ge.s32.totalorder %s43_s2, 2 }
  0x18   : > { %5316 = sst [smem:[#allocation5_spill]] %s4311_s6  ;;  %p3646_p1 = scmp.ge.s32.totalorder %s4311_s6, 1 }
  0x19   : > { %p866_p2 = scmp.lt.s32.totalorder %s4311_s6, 5  ;;  %s5373_s2 = smov (%p44_p0, %s43_s2), 0 }
  0x1a   : > { %5317 = sst [smem:[#allocation6_spill]] %s5373_s2  ;;  %s5375_s29 = smov (!%p44_p0, %s46_s29), %s4307_s28 }
  0x1b   : > { %p867_p3 = pnand %p3646_p1, %p866_p2  ;;  %p48_p4 = scmp.ge.s32.totalorder %s5375_s29, 2 }
  0x1d   : > { %s5377_s29 = smov (%p48_p4, %s5375_s29), 0  ;;  %870 = sbr.rel (%p867_p3) target bundleno = 4629 (0x1215), region = 116 }
  0x1e   : > { %5318 = sst [smem:[#allocation7_spill]] %s5377_s29 }
  0x24   : > { %p1017_p5 = scmp.lt.s32.totalorder %s4299_s26, 1  ;;  %p1037_p6 = scmp.lt.s32.totalorder %s4295_s5, 1 }
  0x25   : > { %s5321_s29 = sld [smem:[#allocation13_spill]]  ;;  %s5323_s6 = sld [smem:[#allocation14_spill]] }
  0x26   : > { %s5379_s26 = smov (!%p1017_p5, %s4299_s26), 1  ;;  %s5325_s25 = sld [smem:[#allocation16_spill]] }
  0x27   : > { %5319 = sst [smem:[#allocation8_spill]] %s5379_s26  ;;  %s4496_s7 = sshll.u32 %s5379_s26, 4 }
  0x28   : > { %s4493_s0 = scalar_select %p1037_p6, %s4295_s5, 1 }
  0x29   : > { %s3651_s22 = sshll.u32 %s5379_s26, 2  ;;  %s5327_s4 = sld [smem:[#allocation19_spill]] }
  0x2a   : > { %s3652_s27 = sshll.u32 %s4493_s0, 1  ;;  %s5329_s30 = sld [smem:[#allocation18_spill]] }
  0x2b   : > { %s4506_s2 = scalar_lea.vmem %s5321_s29, %s4496_s7  ;;  %s1026_s23 = scalar_lea.vmem %s5323_s6, %s4496_s7 }
  0x2c   : > { %5322 = sst [smem:[#allocation9_spill]] %s4506_s2  ;;  %v4517_v0 = vld [vmem:[%s1026_s23] sm:$0xff]  ;;  %v4519_v1 = vld [vmem:[%s1026_s23 + $0x8] sm:$0xff]  ;;  %s4524_s29 = scalar_lea.vmem %s5325_s25, %s3651_s22 }
  0x2d   : > { %5326 = sst [smem:[#allocation10_spill]] %s4524_s29  ;;  %s1042_s28 = sadd.s32 %s3652_s27, %s5379_s26 }
  0x2e   : > { %s3765_s6 = sshll.u32 %s4493_s0, 4  ;;  %s3653_s20 = sshll.u32 %s1042_s28, 3 }
  0x2f   : > { %s4532_s23 = scalar_lea.vmem %s5327_s4, %s3765_s6  ;;  %s5331_s2 = sld [smem:[#allocation21_spill]] }
  0x30   : > { %5328 = sst [smem:[#allocation11_spill]] %s4532_s23  ;;  %s4537_s22 = scalar_lea.vmem %s5329_s30, %s3653_s20 }
  0x31   : > { %s5332_s10 = sld [smem:[#allocation22_spill]]  ;;  %s5334_s12 = sld [smem:[#allocation24_spill]] }
  0x32   : > { %s5335_s14 = sld [smem:[#allocation25_spill]]  ;;  %s1098_s25 = scalar_lea.vmem %s5278_s19, %s4493_s0 }
  0x33   : > { %s4039_s24 = smul.u32 96, %s4493_s0  ;;  %s5339_s27 = sld [smem:[#allocation27_spill]] }
  0x34   : > { %s5340_s30 = sld [smem:[#allocation32_spill]]  ;;  %s5341_s11 = sld [smem:[#allocation28_spill]] }
  0x35   : > { %s4546_s28 = scalar_lea.vmem %s5331_s2, %s3765_s6  ;;  %s5342_s29 = sld [smem:[#allocation2_spill]] }
  0x37   : > { %s4555_s8 = scalar_lea.vmem %s5332_s10, %s3765_s6  ;;  %s4564_s26 = scalar_lea.vmem %s5334_s12, %s3765_s6 }
  0x38   : > { %s4573_s4 = scalar_lea.vmem %s5335_s14, %s3765_s6  ;;  %s4038_s12 = smul.u32 48, %s4493_s0 }
  0x39   : > { %5336 = sst [smem:[#allocation12_spill]] %s4573_s4  ;;  %s5338_s14 = sld [smem:[#allocation29_spill]] }
  0x3a   : > { %s4600_s15 = scalar_lea.vmem %s5339_s27, %s4038_s12  ;;  %s4606_s18 = scalar_lea.vmem %s5340_s30, %s4496_s7 }
  0x3b   : > { %s4611_s2 = scalar_lea.vmem %s5341_s11, %s4039_s24  ;;  %p3668_p7 = scmp.ne.s32.totalorder %s5342_s29, 0 }
  0x3c   : > { %v4313_v2 = vmov (!%p3668_p7), 0   ;;  %vm1133_vm0 = vcmask (!%p3668_p7), 261120  }
  0x3d   : > { %1118 = sbr.rel (%p3668_p7) target bundleno = 197 (0xc5), region = 120  ;;  %4099 = vset.pattern.permute.xlu0 (!%p3668_p7), %v4313_v2 }
  0x3e   : > { %1123 = vperm.xlu0 (!%p3668_p7), %4099, %v4517_v0  }
  0x3f   : > { %s1106_s4 = scalar_lea.vmem %s5338_s14, %s4493_s0  ;;  %s5343_s14 = sld [smem:[#allocation9_spill]] (!%p3668_p7) }
  0x42   : > { %1128 = vperm.xlu0 (!%p3668_p7), %4099, %v4519_v1  }
  0x45   : > { %v1119_v3 = vld [vmem:[%s5343_s14] sm:$0xff]  ;;  %v1120_v5 = vld [vmem:[%s5343_s14 + $0x8] sm:$0xff] }
  0xbd   : > { %v1124_v4 = vpop.permute.xlu0 %1123 }
  0xbe   : > { %v1131_v6 = vmul.f32 %v1124_v4, %v1119_v3 }
  0xc0   : > { %1134 = vst.msk [vmem:[%s4606_s18] sm:$0xff] %vm1133_vm0, %v1131_v6 }
  0xc1   : > { %v1129_v7 = vpop.permute.xlu0 %1128 }
  0xc2   : > { %v1132_v8 = vmul.f32 %v1129_v7, %v1120_v5 }
  0xc4   : > { %1135 = vst.msk [vmem:[%s4606_s18 + $0x8] sm:$0xff] %vm1133_vm0, %v1132_v8 }
  0xc5 PF: > { %vm1146_vm1 = vcmask 261120   ;;  %s5344_s10 = sld [smem:[#allocation11_spill]]  ;;  %s5345_s11 = sld [smem:[#allocation8_spill]]  ;;  %v4314_v24 = vmov 0.0   ;;  %v1175_v25 = vlaneseq  ;;  %vm4315_vm2 = vmmov 0  }
  0xc6   : > { %3842 = vmatprep.subr.bf16.mxu1 %v4314_v24  ;;  %3856 = vmatprep.subr.bf16.mxu0 %v4314_v24  ;;  %s5346_s27 = sld [smem:[#allocation17_spill]]  ;;  %v4316_v29 = vmov -10000.0   ;;  %v4659_v39 = vld [vmem:[%s4537_s22] sm:$0x3f]  ;;  %s5348_s5 = sld [smem:[#allocation20_spill]]  ;;  %vm1265_vm4 = vcmask 64512  }
  0xc7   : > { %v4621_v9 = vld [vmem:[%s4606_s18] sm:$0xff]  ;;  %3846 = vmatprep.mubr.msk.bf16.mxu1 %vm4315_vm2, %v4314_v24  ;;  %3858 = vmatprep.mubr.msk.bf16.mxu0 %vm4315_vm2, %v4314_v24  ;;  %v4648_v28 = vshrl.u32 %v1175_v25, 7  ;;  %v4662_v40 = vadd.f32 1.0, %v4659_v39  ;;  %s4317_s23 = smov 88   ;;  %s4318_s20 = smov 96   ;;  %vm1313_vm6 = vcmask 130048  }
  0xc8   : > { %v1147_v11 = vsel %vm1146_vm1, %v4621_v9, 0.0  ;;  %s4319_s1 = smov 120   ;;  %s4320_s3 = smov 112   ;;  %vm1831_vm7 = vcmask 195584   ;;  %vm2180_vm8 = vcmask 1043456   ;;  %vm3076_vm13 = vcmask 523264  }
  0xc9   : > { %1148 = vadd.xlane.f32.xlu0 %v1147_v11  ;;  %v4652_v31 = vsub.s32 0, %v4648_v28  ;;  %v1177_v41 = vsub.s32 1, %v4648_v28  ;;  %s4321_s29 = smov 80   ;;  %s4322_s14 = smov 104   ;;  %vm2799_vm9 = vcmp.lt.s32.totalorder %v4648_v28, 1  ;;  %vm2937_vm10 = vcmp.lt.s32.totalorder %v4648_v28, 7 }
  0xca   : > { %s4325_s24 = smov 56   ;;  %s4326_s6 = smov 48  }
  0xcb   : > { %v4624_v10 = vld [vmem:[%s4606_s18 + $0x8] sm:$0xff]  ;;  %v4132_v23 = vld [vmem:[%s5344_s10] sm:$0xff]   ;;  %v1178_v44 = vrot.slane %v4662_v40, %v1177_v41  ;;  %v1184_v48 = vrot.slane %v4659_v39, %v4652_v31  ;;  %s4329_s12 = smov 16   ;;  %s4330_s7 = smov 24  }
  0xcc   : > { %v1150_v12 = vsel %vm1146_vm1, %v4624_v10, 0.0  ;;  %3843 = vmatpush3.bf16.msra.mxu1 %v4132_v23  ;;  %v4133_v26 = vld [vmem:[%s5344_s10 + $0x8] sm:$0xff]   ;;  %s5347_s30 = scalar_lea.vmem %s5346_s27, %s5345_s11  ;;  %s5349_s21 = scalar_lea.vmem %s5348_s5, %s4493_s0 }
  0xcd   : > { %1151 = vadd.xlane.f32.xlu0 %v1150_v12  ;;  %v1142_v27 = vld [vmem:[%s5347_s30] sm:$0x1]  ;;  %3844 = vmatprep.subr.bf16.mxu1 %v4314_v24  ;;  %s4323_s10 = smov 72   ;;  %s5350_s27 = sld [smem:[#allocation15_spill]] }
  0xce   : > { %vm1143_vm3 = vcmp.gt.f32.partialorder %v1142_v27, 0.0  ;;  %v3669_v53 = vld [vmem:[%s5349_s21] ss:$0 sm:$0xff]  ;;  %s4327_s5 = smov 40   ;;  %s4328_s21 = smov 8  }
  0xcf   : > { %v1144_v30 = vsel %vm1143_vm3, 0.0, %v4316_v29 }
  0xd0   : > { %3845 = vmatpush3.bf16.msra.mxu1 %v4133_v26  ;;  %v4656_v32 = vrot.slane %v1144_v30, %v4652_v31 }
  0xd1   : > { %3850 = vmatprep.subr.bf16.mxu1 %v4314_v24 }
  0xd3   : > { %s5351_s30 = scalar_lea.vmem %s5350_s27, %s5345_s11  ;;  %s4324_s11 = smov 64  }
  0xd4   : > { %v1139_v12 = vld [vmem:[%s5351_s30] sm:$0x1]  ;;  %s5352_s30 = scalar_lea.vmem %s5268_s9, %s4493_s0 }
  0xd5   : > { %vm1140_vm5 = vcmp.gt.f32.partialorder %v1139_v12, 0.0 }
 0x156   : > { %v1149_v13 = vpop.xlane.xlu0 %1148 }
 0x157   : > { %v1154_v14 = vmul.f32 0.03125, %v1149_v13  ;;  %v1141_v13 = vsel %vm1140_vm5, 0.0, %v4316_v29 }
 0x159   : > { %v1156_v15 = vsub.f32 %v4621_v9, %v1154_v14  ;;  %v1260_v14 = vrot.slane %v1141_v13, %v4652_v31 }
 0x15a   : > { %v1152_v16 = vpop.xlane.xlu0 %1151 }
 0x15b   : > { %v1155_v17 = vmul.f32 0.03125, %v1152_v16  ;;  %v1158_v18 = vmul.f32 %v1156_v15, %v1156_v15 }
 0x15d   : > { %v1157_v19 = vsub.f32 %v4624_v10, %v1155_v17  ;;  %v1160_v20 = vsel %vm1146_vm1, %v1158_v18, 0.0 }
 0x15e   : > { %1161 = vadd.xlane.f32.xlu1 %v1160_v20 }
 0x15f   : > { %v1159_v21 = vmul.f32 %v1157_v19, %v1157_v19 }
 0x161   : > { %v1163_v22 = vsel %vm1146_vm1, %v1159_v21, 0.0 }
 0x162   : > { %1164 = vadd.xlane.f32.xlu1 %v1163_v22 }
 0x1eb   : > { %v1162_v33 = vpop.xlane.xlu1 %1161 }
 0x1ec   : > { %v1166_v34 = vmul.f32 0.03125, %v1162_v33 }
 0x1ee   : > { %v1168_v35 = vadd.f32 1e-06, %v1166_v34 }
 0x1ef   : > { %v1165_v36 = vpop.xlane.xlu1 %1164 }
 0x1f0   : > { %4160 = vrsqrt.f32 %v1168_v35  ;;  %v1167_v37 = vmul.f32 0.03125, %v1165_v36 }
 0x1f2   : > { %v1169_v38 = vadd.f32 1e-06, %v1167_v37 }
 0x1f4   : > { %4162 = vrsqrt.f32 %v1169_v38 }
 0x1fa   : > { %v4161_v42 = vpop.eup %4160 }
 0x1fb   : > { %v1172_v43 = vmul.f32 %v4161_v42, %v1156_v15 }
 0x1fd   : > { %v1179_v47 = vmul.f32 %v1178_v44, %v1172_v43 }
 0x1fe   : > { %v4163_v45 = vpop.eup %4162 }
 0x1ff   : > { %v1173_v46 = vmul.f32 %v4163_v45, %v1157_v19  ;;  %v1185_v50 = vadd.f32 %v1184_v48, %v1179_v47 }
 0x201   : > { %v1180_v49 = vmul.f32 %v1178_v44, %v1173_v46 }
 0x203   : > { %v1186_v51 = vadd.f32 %v1184_v48, %v1180_v49 }
 0x205   : > { %v1187_v52 = vpack.c.bf16 %v1186_v51, %v1185_v50 }
 0x207   : > { %3847 = vmatmul.mubr.msk.bf16.vlgmr.msra.gmra.mrb[0].mxu1 %vm1146_vm1, %v1187_v52 }
 0x208   : > { %3852 = vmatprep.mubr.msk.bf16.mxu1 %vm4315_vm2, %v4314_v24 }
 0x2da   : > { %v1248_v54 = vpop.f32.mrb[0].mxu1 }
 0x2db   : > { %v3848_v55 = vpop.f32.mrb[1].mxu1  ;;  %v1249_v57 = vadd.f32 %v3669_v53, %v1248_v54 }
 0x2dc   : > { %v1251_v56 = vpop.f32.mrb[2].mxu1 }
 0x2dd   : > { %v1252_v58 = vadd.f32 %v3669_v53, %v1251_v56  ;;  %v3849_v59 = vpop.f32.mrb[3].mxu1 }
 0x2df   : > { %v4676_v60 = vpack.c.bf16 %v1252_v58, %v1249_v57 }
 0x2e1   : > { %1400 = vrot.lane.b32.xlu1 %v4676_v60, %s4317_s23  ;;  %1263 = vrot.lane.b32.xlu0 %v4676_v60, %s4318_s20 }
 0x2e5   : > { %1398 = vrot.lane.b32.xlu1 %v4676_v60, %s4319_s1  ;;  %1533 = vrot.lane.b32.xlu0 %v4676_v60, %s4320_s3 }
 0x2e9   : > { %1535 = vrot.lane.b32.xlu1 %v4676_v60, %s4321_s29  ;;  %1668 = vrot.lane.b32.xlu0 %v4676_v60, %s4322_s14 }
 0x2ed   : > { %1670 = vrot.lane.b32.xlu1 %v4676_v60, %s4323_s10 }
 0x353   : > { %v1264_v61 = vpop.permute.xlu0 %1263  ;;  %v1401_v63 = vpop.permute.xlu1 %1400 }
 0x354   : > { %v1270_v62 = vsel %vm1265_vm4, %v1264_v61, 0  ;;  %v1406_v3 = vsel %vm1265_vm4, %v1401_v63, 0 }
 0x355   : > { %3851 = vmatpush3.bf16.xpose.msra.mxu1 %v1270_v62 }
 0x356   : > { %3862 = vmatprep.subr.bf16.mxu1 %v4314_v24 }
 0x357   : > { %v1399_v2 = vpop.permute.xlu1 %1398  ;;  %v1534_v7 = vpop.permute.xlu0 %1533 }
 0x35b   : > { %v1536_v4 = vpop.permute.xlu1 %1535  ;;  %v1669_v11 = vpop.permute.xlu0 %1668 }
 0x35c   : > { %3853 = vmatmul.mubr.msk.bf16.vlgmr.msra.gmra.mrb[4].mxu1 %vm1265_vm4, %v4676_v60  ;;  %v1541_v5 = vsel %vm1265_vm4, %v1536_v4, 0 }
 0x35d   : > { %3863 = vmatpush3.bf16.xpose.msra.mxu1 %v1406_v3  ;;  %3864 = vmatprep.mubr.msk.bf16.mxu1 %vm4315_vm2, %v4314_v24 }
 0x35e   : > { %3874 = vmatprep.subr.bf16.mxu1 %v4314_v24 }
 0x35f   : > { %v1671_v6 = vpop.permute.xlu1 %1670 }
 0x360   : > { %v1676_v8 = vsel %vm1265_vm4, %v1671_v6, 0 }
 0x364   : > { %3865 = vmatmul.mubr.msk.bf16.vlgmr.msra.gmra.mrb[8].mxu1 %vm1265_vm4, %v1399_v2 }
 0x365   : > { %3875 = vmatpush3.bf16.xpose.msra.mxu1 %v1541_v5  ;;  %3876 = vmatprep.mubr.msk.bf16.mxu1 %vm4315_vm2, %v4314_v24 }
 0x366   : > { %3886 = vmatprep.subr.bf16.mxu1 %v4314_v24 }
 0x36c   : > { %3877 = vmatmul.mubr.msk.bf16.vlgmr.msra.gmra.mrb[12].mxu1 %vm1265_vm4, %v1534_v7 }
 0x36d   : > { %3887 = vmatpush3.bf16.xpose.msra.mxu1 %v1676_v8  ;;  %3888 = vmatprep.mubr.msk.bf16.mxu1 %vm4315_vm2, %v4314_v24 }
 0x36e   : > { %3898 = vmatprep.subr.bf16.mxu1 %v4314_v24 }
 0x374   : > { %3889 = vmatmul.mubr.msk.bf16.vlgmr.msra.gmra.mrb[16].mxu1 %vm1265_vm4, %v1669_v11 }
 0x375   : > { %3902 = vmatprep.mubr.msk.bf16.mxu1 %vm4315_vm2, %v4314_v24 }
 0x42f   : > { %v1306_v15 = vpop.f32.mrb[4].mxu1 }
 0x430   : > { %v1307_v16 = vadd.f32 %v1306_v15, %v1260_v14  ;;  %v3854_v17 = vpop.f32.mrb[5].mxu1 }
 0x431   : > { %v1309_v18 = vpop.f32.mrb[6].mxu1 }
 0x432   : > { %v1310_v19 = vadd.f32 %v1309_v18, %v1260_v14  ;;  %v3855_v20 = vpop.f32.mrb[7].mxu1  ;;  %v1314_v21 = vsel %vm1313_vm6, %v1307_v16, -inf }
 0x433   : > { %1315 = vmax.xlane.f32.xlu1 %v1314_v21 }
 0x434   : > { %v1317_v22 = vsel %vm1313_vm6, %v1310_v19, -inf }
 0x435   : > { %1318 = vmax.xlane.f32.xlu0 %v1317_v22 }
 0x437   : > { %v1442_v23 = vpop.f32.mrb[8].mxu1 }
 0x438   : > { %v1443_v25 = vadd.f32 %v1442_v23, %v1260_v14  ;;  %v3866_v26 = vpop.f32.mrb[9].mxu1 }
 0x439   : > { %v1445_v27 = vpop.f32.mrb[10].mxu1 }
 0x43a   : > { %v1446_v29 = vadd.f32 %v1445_v27, %v1260_v14  ;;  %v3867_v30 = vpop.f32.mrb[11].mxu1  ;;  %v1449_v31 = vsel %vm1313_vm6, %v1443_v25, -inf }
 0x43b   : > { %1450 = vmax.xlane.f32.xlu0 %v1449_v31 }
 0x43c   : > { %v1452_v33 = vsel %vm1313_vm6, %v1446_v29, -inf }
 0x43f   : > { %1453 = vmax.xlane.f32.xlu0 %v1452_v33  ;;  %v1577_v34 = vpop.f32.mrb[12].mxu1 }
 0x440   : > { %v4724_v35 = vadd.f32 %v1577_v34, %v1260_v14  ;;  %v3878_v36 = vpop.f32.mrb[13].mxu1 }
 0x441   : > { %v1580_v37 = vpop.f32.mrb[14].mxu1 }
 0x442   : > { %v4726_v38 = vadd.f32 %v1580_v37, %v1260_v14  ;;  %v3879_v41 = vpop.f32.mrb[15].mxu1  ;;  %v1584_v50 = vsel %vm1313_vm6, %v4724_v35, -inf }
 0x444   : > { %1345 = vrot.lane.b32.xlu1 %v4676_v60, %s4324_s11  ;;  %v1587_v42 = vsel %vm1313_vm6, %v4726_v38, -inf  ;;  %s5353_s11 = sld [smem:[#allocation10_spill]] }
 0x445   : > { %1588 = vmax.xlane.f32.xlu0 %v1587_v42 }
 0x447   : > { %v1712_v43 = vpop.f32.mrb[16].mxu1 }
 0x448   : > { %v4731_v44 = vadd.f32 %v1712_v43, %v1260_v14  ;;  %v3890_v45 = vpop.f32.mrb[17].mxu1 }
 0x449   : > { %v1715_v46 = vpop.f32.mrb[18].mxu1 }
 0x44a   : > { %v4733_v47 = vadd.f32 %v1715_v46, %v1260_v14  ;;  %v3891_v48 = vpop.f32.mrb[19].mxu1  ;;  %v1719_v51 = vsel %vm1313_vm6, %v4731_v44, -inf }
 0x44c   : > { %v1722_v49 = vsel %vm1313_vm6, %v4733_v47, -inf }
 0x44d   : > { %1723 = vmax.xlane.f32.xlu0 %v1722_v49 }
 0x463   : > { %1480 = vrot.lane.b32.xlu0 %v4676_v60, %s4325_s24  ;;  %s5354_s24 = scalar_lea.vmem %s5275_s16, %s4493_s0 }
 0x468   : > { %1585 = vmax.xlane.f32.xlu1 %v1584_v50 }
 0x46c   : > { %1720 = vmax.xlane.f32.xlu1 %v1719_v51 }
 0x47d   : > { %1615 = vrot.lane.b32.xlu1 %v4676_v60, %s4326_s6 }
 0x481   : > { %1750 = vrot.lane.b32.xlu1 %v4676_v60, %s4327_s5 }
 0x4c0   : > { %v4744_v52 = vpop.xlane.xlu1 %1315 }
 0x4c1   : > { %v1320_v53 = vmax.f32 %v4744_v52, -1e+30 }
 0x4c2   : > { %v4747_v54 = vpop.xlane.xlu0 %1318 }
 0x4c3   : > { %v1328_v55 = vsub.f32 %v1307_v16, %v1320_v53  ;;  %v1321_v56 = vmax.f32 %v4747_v54, -1e+30 }
 0x4c4   : > { %v1346_v57 = vpop.permute.xlu1 %1345 }
 0x4c5   : > { %v1330_v58 = vmul.f32 1.442695, %v1328_v55  ;;  %v1329_v59 = vsub.f32 %v1310_v19, %v1321_v56  ;;  %3857 = vmatpush3.bf16.msra.mxu0 %v1346_v57  ;;  %v1322_v57 = vsub.f32 -1e+30, %v1320_v53 }
 0x4c6   : > { %3868 = vmatprep.subr.bf16.mxu0 %v4314_v24 }
 0x4c7   : > { %v1332_v60 = vmul.f32 1.442695, %v1329_v59  ;;  %4164 = vpow2.f32 %v1330_v58  ;;  %v1324_v58 = vmul.f32 1.442695, %v1322_v57  ;;  %v1323_v59 = vsub.f32 -1e+30, %v1321_v56 }
 0x4c8   : > { %v4755_v61 = vpop.xlane.xlu0 %1450 }
 0x4c9   : > { %v1455_v62 = vmax.f32 %v4755_v61, -1e+30  ;;  %4166 = vpow2.f32 %v1332_v60  ;;  %v1326_v60 = vmul.f32 1.442695, %v1323_v59 }
 0x4cb   : > { %v1463_v63 = vsub.f32 %v1443_v25, %v1455_v62 }
 0x4cc   : > { %v4760_v2 = vpop.xlane.xlu0 %1453 }
 0x4cd   : > { %v1465_v3 = vmul.f32 1.442695, %v1463_v63  ;;  %v1456_v4 = vmax.f32 %v4760_v2, -1e+30  ;;  %v1457_v63 = vsub.f32 -1e+30, %v1455_v62 }
 0x4cf   : > { %v1464_v5 = vsub.f32 %v1446_v29, %v1456_v4  ;;  %4168 = vpow2.f32 %v1465_v3 }
 0x4d1   : > { %v1467_v6 = vmul.f32 1.442695, %v1464_v5  ;;  %v4165_v7 = vpop.eup %4164  ;;  %v1458_v5 = vsub.f32 -1e+30, %v1456_v4 }
 0x4d2   : > { %v4768_v12 = vpop.xlane.xlu0 %1588  ;;  %v1336_v49 = vsel %vm1313_vm6, %v4165_v7, 0.0 }
 0x4d3   : > { %v4765_v8 = vpop.eup %4166  ;;  %4170 = vpow2.f32 %v1467_v6  ;;  %v1591_v20 = vmax.f32 %v4768_v12, -1e+30  ;;  %v1459_v6 = vmul.f32 1.442695, %v1457_v63  ;;  %v1461_v52 = vmul.f32 1.442695, %v1458_v5 }
 0x4d4   : > { %v1344_v11 = vpack.c.bf16 %v4765_v8, %v4165_v7  ;;  %v1339_v55 = vsel %vm1313_vm6, %v4765_v8, 0.0 }
 0x4d5   : > { %v1599_v21 = vsub.f32 %v4726_v38, %v1591_v20  ;;  %v1593_v59 = vsub.f32 -1e+30, %v1591_v20 }
 0x4d6   : > { %3859 = vmatmul.mubr.msk.bf16.vlgmr.msra.gmra.mrb[0].mxu0 %vm1313_vm6, %v1344_v11 }
 0x4d7   : > { %3870 = vmatprep.mubr.msk.bf16.mxu0 %vm4315_vm2, %v4314_v24  ;;  %v1602_v26 = vmul.f32 1.442695, %v1599_v21 }
 0x4d9   : > { %v4169_v13 = vpop.eup %4168  ;;  %4172 = vpow2.f32 %v1602_v26 }
 0x4da   : > { %v4773_v14 = vpop.xlane.xlu0 %1723  ;;  %v1471_v15 = vsel %vm1313_vm6, %v4169_v13, 0.0 }
 0x4db   : > { %1472 = vadd.xlane.f32.xlu1 %v1471_v15  ;;  %v1726_v25 = vmax.f32 %v4773_v14, -1e+30 }
 0x4dd   : > { %v4171_v16 = vpop.eup %4170  ;;  %v1734_v33 = vsub.f32 %v4733_v47, %v1726_v25 }
 0x4de   : > { %v1481_v17 = vpop.permute.xlu0 %1480  ;;  %v1474_v18 = vsel %vm1313_vm6, %v4171_v16, 0.0  ;;  %v1479_v19 = vpack.c.bf16 %v4171_v16, %v4169_v13 }
 0x4df   : > { %3869 = vmatpush3.bf16.msra.mxu0 %v1481_v17  ;;  %1475 = vadd.xlane.f32.xlu0 %v1474_v18  ;;  %v1737_v38 = vmul.f32 1.442695, %v1734_v33 }
 0x4e0   : > { %3880 = vmatprep.subr.bf16.mxu0 %v4314_v24 }
 0x4e2   : > { %3871 = vmatmul.mubr.msk.bf16.vlgmr.msra.gmra.mrb[4].mxu0 %vm1313_vm6, %v1479_v19 }
 0x4e3   : > { %3882 = vmatprep.mubr.msk.bf16.mxu0 %vm4315_vm2, %v4314_v24 }
 0x4f5   : > { %v4785_v22 = vpop.xlane.xlu1 %1585 }
 0x4f6   : > { %v1590_v23 = vmax.f32 %v4785_v22, -1e+30 }
 0x4f8   : > { %v1598_v27 = vsub.f32 %v4724_v35, %v1590_v23  ;;  %v4173_v35 = vpop.eup %4172  ;;  %v1592_v57 = vsub.f32 -1e+30, %v1590_v23 }
 0x4f9   : > { %v4792_v29 = vpop.xlane.xlu1 %1720  ;;  %v1609_v47 = vsel %vm1313_vm6, %v4173_v35, 0.0 }
 0x4fa   : > { %v1600_v30 = vmul.f32 1.442695, %v1598_v27  ;;  %v1725_v31 = vmax.f32 %v4792_v29, -1e+30  ;;  %v1594_v63 = vmul.f32 1.442695, %v1592_v57 }
 0x4fc   : > { %v1733_v34 = vsub.f32 %v4731_v44, %v1725_v31  ;;  %4174 = vpow2.f32 %v1600_v30  ;;  %v1727_v5 = vsub.f32 -1e+30, %v1725_v31 }
 0x4fd   : > { %v1616_v36 = vpop.permute.xlu1 %1615 }
 0x4fe   : > { %v1735_v37 = vmul.f32 1.442695, %v1733_v34  ;;  %3881 = vmatpush3.bf16.msra.mxu0 %v1616_v36  ;;  %v1729_v22 = vmul.f32 1.442695, %v1727_v5 }
 0x4ff   : > { %3892 = vmatprep.subr.bf16.mxu0 %v4314_v24 }
 0x500   : > { %4176 = vpow2.f32 %v1735_v37 }
 0x501   : > { %4178 = vpow2.f32 %v1737_v38  ;;  %v1751_v45 = vpop.permute.xlu1 %1750 }
 0x502   : > { %4180 = vpow2.f32 %v1324_v58 }
 0x503   : > { %4182 = vpow2.f32 %v1326_v60 }
 0x504   : > { %4184 = vpow2.f32 %v1459_v6  ;;  %v1728_v6 = vsub.f32 -1e+30, %v1726_v25 }
 0x505   : > { %4186 = vpow2.f32 %v1461_v52 }
 0x506   : > { %v4175_v41 = vpop.eup %4174  ;;  %v1731_v23 = vmul.f32 1.442695, %v1728_v6 }
 0x507   : > { %v1606_v42 = vsel %vm1313_vm6, %v4175_v41, 0.0  ;;  %v1614_v43 = vpack.c.bf16 %v4173_v35, %v4175_v41 }
 0x508   : > { %1607 = vadd.xlane.f32.xlu0 %v1606_v42 }
 0x509   : > { %3883 = vmatmul.mubr.msk.bf16.vlgmr.msra.gmra.mrb[8].mxu0 %vm1313_vm6, %v1614_v43 }
 0x50a   : > { %v4177_v46 = vpop.eup %4176  ;;  %3893 = vmatpush3.bf16.msra.mxu0 %v1751_v45  ;;  %3894 = vmatprep.mubr.msk.bf16.mxu0 %vm4315_vm2, %v4314_v24 }
 0x50b   : > { %v1741_v44 = vsel %vm1313_vm6, %v4177_v46, 0.0  ;;  %3906 = vmatprep.subr.bf16.mxu0 %v4314_v24  ;;  %v4179_v48 = vpop.eup %4178 }
 0x50c   : > { %1742 = vadd.xlane.f32.xlu1 %v1741_v44  ;;  %1610 = vadd.xlane.f32.xlu0 %v1609_v47  ;;  %v1744_v50 = vsel %vm1313_vm6, %v4179_v48, 0.0  ;;  %v1749_v51 = vpack.c.bf16 %v4179_v48, %v4177_v46  ;;  %v4181_v53 = vpop.eup %4180 }
 0x50d   : > { %v1334_v56 = vmul.f32 0.0, %v4181_v53  ;;  %v4183_v13 = vpop.eup %4182 }
 0x50e   : > { %v1335_v2 = vmul.f32 0.0, %v4183_v13  ;;  %v4185_v17 = vpop.eup %4184 }
 0x50f   : > { %v4187_v18 = vpop.eup %4186  ;;  %v1469_v19 = vmul.f32 0.0, %v4185_v17 }
 0x510   : > { %1337 = vadd.xlane.f32.xlu1 %v1336_v49  ;;  %1745 = vadd.xlane.f32.xlu0 %v1744_v50  ;;  %v1470_v26 = vmul.f32 0.0, %v4187_v18 }
 0x511   : > { %3895 = vmatmul.mubr.msk.bf16.vlgmr.msra.gmra.mrb[12].mxu0 %vm1313_vm6, %v1749_v51 }
 0x512   : > { %3910 = vmatprep.mubr.msk.bf16.mxu0 %vm4315_vm2, %v4314_v24 }
 0x514   : > { %1340 = vadd.xlane.f32.xlu0 %v1339_v55 }
 0x568   : > { %v1473_v7 = vpop.xlane.xlu1 %1472 }
 0x569   : > { %v1477_v21 = vadd.f32 %v1473_v7, %v1469_v19 }
 0x56c   : > { %v1476_v3 = vpop.xlane.xlu0 %1475 }
 0x56d   : > { %v1478_v33 = vadd.f32 %v1476_v3, %v1470_v26  ;;  %v1596_v3 = vmul.f32 1.442695, %v1593_v59 }
 0x595   : > { %v4824_v8 = vpop.xlane.xlu0 %1607 }
 0x599   : > { %v4826_v11 = vpop.xlane.xlu1 %1742  ;;  %v1611_v54 = vpop.xlane.xlu0 %1610 }
 0x59d   : > { %v1338_v61 = vpop.xlane.xlu1 %1337  ;;  %v4828_v62 = vpop.xlane.xlu0 %1745 }
 0x59e   : > { %v1342_v15 = vadd.f32 %v1338_v61, %v1334_v56 }
 0x5a0   : > { %4188 = vrcp.f32 %v1342_v15  ;;  %v4134_v15 = vld [vmem:[%s4546_s28] sm:$0xff]  }
 0x5a1   : > { %v1341_v4 = vpop.xlane.xlu0 %1340  ;;  %3899 = vmatpush3.bf16.msra.mxu1 %v4134_v15 }
 0x5a2   : > { %v1343_v16 = vadd.f32 %v1341_v4, %v1335_v2  ;;  %3900 = vmatprep.subr.bf16.mxu1 %v4314_v24 }
 0x5a4   : > { %4190 = vrcp.f32 %v1343_v16 }
 0x5a5   : > { %4192 = vrcp.f32 %v1477_v21 }
 0x5a6   : > { %4194 = vrcp.f32 %v1478_v33 }
 0x5a7   : > { %4196 = vpow2.f32 %v1594_v63 }
 0x5a8   : > { %4198 = vpow2.f32 %v1596_v3 }
 0x5a9   : > { %v1385_v27 = vpop.f32.mrb[0].mxu0  ;;  %4200 = vpow2.f32 %v1729_v22 }
 0x5aa   : > { %v4189_v30 = vpop.eup %4188  ;;  %v1392_v34 = vadd.f32 %v1385_v27, %v1334_v56  ;;  %v3860_v36 = vpop.f32.mrb[1].mxu0  ;;  %4202 = vpow2.f32 %v1731_v23 }
 0x5ab   : > { %v1388_v37 = vpop.f32.mrb[2].mxu0 }
 0x5ac   : > { %v4830_v38 = vmul.f32 %v4189_v30, %v1392_v34  ;;  %v1393_v35 = vadd.f32 %v1388_v37, %v1335_v2  ;;  %v3861_v41 = vpop.f32.mrb[3].mxu0 }
 0x5ae   : > { %v4191_v42 = vpop.eup %4190 }
 0x5af   : > { %v4832_v43 = vmul.f32 %v4191_v42, %v1393_v35  ;;  %v4193_v47 = vpop.eup %4192 }
 0x5b0   : > { %v4195_v55 = vpop.eup %4194 }
 0x5b1   : > { %v4197_v12 = vpop.eup %4196 }
 0x5b2   : > { %v4199_v20 = vpop.eup %4198  ;;  %v1604_v7 = vmul.f32 0.0, %v4197_v12 }
 0x5b3   : > { %v1605_v53 = vmul.f32 0.0, %v4199_v20  ;;  %v4201_v13 = vpop.eup %4200 }
 0x5b4   : > { %v1612_v52 = vadd.f32 %v4824_v8, %v1604_v7  ;;  %v4203_v29 = vpop.eup %4202  ;;  %v1739_v31 = vmul.f32 0.0, %v4201_v13 }
 0x5b5   : > { %v1520_v45 = vpop.f32.mrb[4].mxu0  ;;  %v1613_v56 = vadd.f32 %v1611_v54, %v1605_v53  ;;  %v1740_v25 = vmul.f32 0.0, %v4203_v29 }
 0x5b6   : > { %v1527_v46 = vadd.f32 %v1520_v45, %v1469_v19  ;;  %v3872_v44 = vpop.f32.mrb[5].mxu0  ;;  %4204 = vrcp.f32 %v1612_v52  ;;  %v1747_v14 = vadd.f32 %v4826_v11, %v1739_v31 }
 0x5b7   : > { %v1523_v48 = vpop.f32.mrb[6].mxu0  ;;  %4206 = vrcp.f32 %v1613_v56  ;;  %v1748_v61 = vadd.f32 %v4828_v62, %v1740_v25 }
 0x5b8   : > { %v1531_v49 = vmul.f32 %v4193_v47, %v1527_v46  ;;  %v1528_v50 = vadd.f32 %v1523_v48, %v1470_v26  ;;  %v3873_v51 = vpop.f32.mrb[7].mxu0  ;;  %4208 = vrcp.f32 %v1747_v14  ;;  %v4135_v26 = vld [vmem:[%s4546_s28 + $0x8] sm:$0xff]   ;;  %s5355_s28 = scalar_lea.vmem %s5276_s17, %s4493_s0 }
 0x5b9   : > { %4210 = vrcp.f32 %v1748_v61  ;;  %3901 = vmatpush3.bf16.msra.mxu1 %v4135_v26  ;;  %v4139_v26 = vld [vmem:[%s4555_s8 + $0x8] sm:$0xff]  }
 0x5ba   : > { %v1532_v58 = vmul.f32 %v4195_v55, %v1528_v50  ;;  %3914 = vmatprep.subr.bf16.mxu1 %v4314_v24 }
 0x5bc   : > { %v4100_v60 = vpack.i.bf16 %v1532_v58, %v1531_v49 }
 0x5be   : > { %4101 = vrot.lane.b32.xlu1 %v4100_v60, %s4328_s21 }
 0x5c0   : > { %v4205_v8 = vpop.eup %4204 }
 0x5c1   : > { %v4207_v21 = vpop.eup %4206 }
 0x5c2   : > { %v4209_v34 = vpop.eup %4208 }
 0x5c3   : > { %v4211_v42 = vpop.eup %4210 }
 0x5dc   : > { %v1655_v2 = vpop.f32.mrb[8].mxu0 }
 0x5dd   : > { %v1662_v4 = vadd.f32 %v1655_v2, %v1604_v7  ;;  %v3884_v16 = vpop.f32.mrb[9].mxu0 }
 0x5de   : > { %v1658_v54 = vpop.f32.mrb[10].mxu0 }
 0x5df   : > { %v1666_v17 = vmul.f32 %v4205_v8, %v1662_v4  ;;  %v1663_v18 = vadd.f32 %v1658_v54, %v1605_v53  ;;  %v3885_v19 = vpop.f32.mrb[11].mxu0 }
 0x5e0   : > { %v4137_v19 = vld [vmem:[%s4564_s26 + $0x8] sm:$0xff]  }
 0x5e1   : > { %v1667_v11 = vmul.f32 %v4207_v21, %v1663_v18  ;;  %v4136_v18 = vld [vmem:[%s4564_s26] sm:$0xff]  }
 0x5e2   : > { %v4138_v21 = vld [vmem:[%s4555_s8] sm:$0xff]  }
 0x5e3   : > { %v4105_v27 = vpack.i.bf16 %v1667_v11, %v1666_v17  ;;  %3907 = vmatpush3.bf16.msra.mxu0 %v4138_v21  ;;  %v1138_v11 = vld [vmem:[%s5353_s11] sm:$0xf]  ;;  %s5356_s11 = scalar_lea.vmem %s5272_s13, %s4493_s0 }
 0x5e4   : > { %v1790_v62 = vpop.f32.mrb[12].mxu0  ;;  %3908 = vmatprep.subr.bf16.mxu0 %v4314_v24 }
 0x5e5   : > { %v1797_v30 = vadd.f32 %v1790_v62, %v1739_v31  ;;  %v3896_v33 = vpop.f32.mrb[13].mxu0  ;;  %4106 = vrot.lane.b32.xlu0 %v4105_v27, %s4329_s12 }
 0x5e6   : > { %v1793_v36 = vpop.f32.mrb[14].mxu0 }
 0x5e7   : > { %v1801_v37 = vmul.f32 %v4209_v34, %v1797_v30  ;;  %v1798_v35 = vadd.f32 %v1793_v36, %v1740_v25  ;;  %v3897_v41 = vpop.f32.mrb[15].mxu0  ;;  %3909 = vmatpush3.bf16.msra.mxu0 %v4139_v26 }
 0x5e8   : > { %3922 = vmatprep.subr.bf16.mxu0 %v4314_v24 }
 0x5e9   : > { %v1802_v45 = vmul.f32 %v4211_v42, %v1798_v35  ;;  %v3685_v35 = vld [vmem:[%s5354_s24] ss:$0 sm:$0xff]  ;;  %s5357_s24 = sld [smem:[#allocation23_spill]] }
 0x5eb   : > { %v4110_v46 = vpack.i.bf16 %v1802_v45, %v1801_v37 }
 0x5ed   : > { %4111 = vrot.lane.b32.xlu1 %v4110_v46, %s4330_s7 }
 0x5ef   : > { %s5358_s6 = scalar_lea.vmem %s5357_s24, %s4493_s0 }
 0x630   : > { %v4102_v44 = vpop.permute.xlu1 %4101 }
 0x631   : > { %v4104_v48 = vunpack.i.h.bf16 %v4102_v44  ;;  %v4103_v49 = vunpack.i.l.bf16 %v4102_v44  ;;  %v3686_v44 = vld [vmem:[%s5355_s28] ss:$0 sm:$0xff] }
 0x633   : > { %v1827_v57 = vsel %vm1265_vm4, %v4830_v38, %v4103_v49  ;;  %v1828_v58 = vsel %vm1265_vm4, %v4832_v43, %v4104_v48  ;;  %v1904_v38 = vsub.s32 2, %v4648_v28  ;;  %v3681_v43 = vld [vmem:[%s5352_s30] ss:$0 sm:$0xff] }
 0x635   : > { %v1905_v23 = vrot.slane %v4659_v39, %v1904_v38 }
 0x657   : > { %v4107_v47 = vpop.permute.xlu0 %4106 }
 0x658   : > { %v4109_v50 = vunpack.i.h.bf16 %v4107_v47  ;;  %v4108_v51 = vunpack.i.l.bf16 %v4107_v47 }
 0x65a   : > { %v1830_v63 = vsel %vm1313_vm6, %v1828_v58, %v4109_v50  ;;  %v1829_v3 = vsel %vm1313_vm6, %v1827_v57, %v4108_v51  ;;  %v3691_v51 = vld [vmem:[%s5356_s11] ss:$0 sm:$0xff] }
 0x65f   : > { %v4112_v55 = vpop.permute.xlu1 %4111 }
 0x660   : > { %v4114_v59 = vunpack.i.h.bf16 %v4112_v55  ;;  %v4113_v60 = vunpack.i.l.bf16 %v4112_v55 }
 0x662   : > { %v1832_v5 = vsel %vm1831_vm7, %v1829_v3, %v4113_v60  ;;  %v1833_v6 = vsel %vm1831_vm7, %v1830_v63, %v4114_v59 }
 0x663   : > { %v1834_v22 = vpack.c.bf16 %v1833_v6, %v1832_v5  ;;  %v3687_v5 = vld [vmem:[%s5358_s6] ss:$0 sm:$0xff] }
 0x665   : > { %3903 = vmatmul.mubr.msk.bf16.vlgmr.msra.gmra.mrb[20].mxu1 %vm1146_vm1, %v1834_v22 }
 0x666   : > { %3918 = vmatprep.mubr.msk.bf16.mxu1 %vm4315_vm2, %v4314_v24  ;;  %3915 = vmatpush3.bf16.msra.mxu1 %v4136_v18 }
 0x667   : > { %3916 = vmatprep.subr.bf16.mxu1 %v4314_v24 }
 0x66a   : > { %3917 = vmatpush3.bf16.msra.mxu1 %v4137_v19 }
 0x66b   : > { %3928 = vmatprep.subr.bf16.mxu1 %v4314_v24 }
 0x66d   : > { %3919 = vmatmul.mubr.msk.bf16.vlgmr.msra.gmra.mrb[24].mxu1 %vm1146_vm1, %v1138_v11 }
 0x66e   : > { %3930 = vmatprep.mubr.msk.bf16.mxu1 %vm4315_vm2, %v4314_v24 }
 0x738   : > { %v1895_v12 = vpop.f32.mrb[20].mxu1 }
 0x739   : > { %v1896_v20 = vadd.f32 %v3681_v43, %v1895_v12  ;;  %v3904_v7 = vpop.f32.mrb[21].mxu1 }
 0x73a   : > { %v1898_v52 = vpop.f32.mrb[22].mxu1 }
 0x73b   : > { %v1906_v53 = vmul.f32 %v1905_v23, %v1896_v20  ;;  %v1899_v56 = vadd.f32 %v3681_v43, %v1898_v52  ;;  %v3905_v13 = vpop.f32.mrb[23].mxu1 }
 0x73d   : > { %v4871_v29 = vadd.f32 %v1906_v53, %v4621_v9  ;;  %v1907_v31 = vmul.f32 %v1905_v23, %v1899_v56 }
 0x73f   : > { %v4874_v14 = vadd.f32 %v1907_v31, %v4624_v10  ;;  %v1910_v25 = vsel %vm1146_vm1, %v4871_v29, 0.0 }
 0x740   : > { %1911 = vadd.xlane.f32.xlu1 %v1910_v25  ;;  %v2082_v55 = vpop.f32.mrb[24].mxu1 }
 0x741   : > { %v1913_v39 = vsel %vm1146_vm1, %v4874_v14, 0.0  ;;  %v2083_v57 = vadd.f32 %v3691_v51, %v2082_v55  ;;  %v3920_v58 = vpop.f32.mrb[25].mxu1 }
 0x742   : > { %1914 = vadd.xlane.f32.xlu0 %v1913_v39  ;;  %v2085_v59 = vpop.f32.mrb[26].mxu1 }
 0x743   : > { %v4914_v60 = vpack.c.bf16 %v2083_v57, %v2083_v57  ;;  %v3921_v63 = vpop.f32.mrb[27].mxu1 }
 0x745   : > { %v2100_v3 = vsel %vm1265_vm4, %v4914_v60, 0 }
 0x7cd   : > { %v1912_v61 = vpop.xlane.xlu1 %1911 }
 0x7ce   : > { %v1916_v15 = vmul.f32 0.03125, %v1912_v61 }
 0x7cf   : > { %v1915_v2 = vpop.xlane.xlu0 %1914 }
 0x7d0   : > { %v1918_v9 = vsub.f32 %v4871_v29, %v1916_v15  ;;  %v1917_v4 = vmul.f32 0.03125, %v1915_v2 }
 0x7d2   : > { %v1919_v10 = vsub.f32 %v4874_v14, %v1917_v4  ;;  %v1920_v16 = vmul.f32 %v1918_v9, %v1918_v9 }
 0x7d4   : > { %v1922_v8 = vsel %vm1146_vm1, %v1920_v16, 0.0  ;;  %v1921_v54 = vmul.f32 %v1919_v10, %v1919_v10 }
 0x7d5   : > { %1923 = vadd.xlane.f32.xlu0 %v1922_v8 }
 0x7d6   : > { %v1925_v17 = vsel %vm1146_vm1, %v1921_v54, 0.0 }
 0x7d7   : > { %1926 = vadd.xlane.f32.xlu1 %v1925_v17 }
 0x7eb   : > { %2234 = vrot.lane.b32.xlu0 %v4914_v60, %s4319_s1 }
 0x7ef   : > { %2508 = vrot.lane.b32.xlu0 %v4914_v60, %s4322_s14 }
 0x862   : > { %v1924_v27 = vpop.xlane.xlu0 %1923 }
 0x863   : > { %v1928_v62 = vmul.f32 0.03125, %v1924_v27 }
 0x864   : > { %v1927_v30 = vpop.xlane.xlu1 %1926 }
 0x865   : > { %v1930_v33 = vadd.f32 1e-05, %v1928_v62  ;;  %v1929_v34 = vmul.f32 0.03125, %v1927_v30 }
 0x866   : > { %v2235_v43 = vpop.permute.xlu0 %2234 }
 0x867   : > { %4212 = vrsqrt.f32 %v1930_v33  ;;  %v1931_v36 = vadd.f32 1e-05, %v1929_v34  ;;  %v2240_v52 = vsel %vm1265_vm4, %v2235_v43, 0 }
 0x869   : > { %4214 = vrsqrt.f32 %v1931_v36 }
 0x86a   : > { %v2509_v31 = vpop.permute.xlu0 %2508 }
 0x86b   : > { %v2514_v39 = vsel %vm1265_vm4, %v2509_v31, 0 }
 0x871   : > { %v4213_v37 = vpop.eup %4212 }
 0x872   : > { %v1934_v41 = vmul.f32 %v4213_v37, %v1918_v9 }
 0x873   : > { %v4215_v42 = vpop.eup %4214 }
 0x874   : > { %v1943_v45 = vmul.f32 %v3685_v35, %v1934_v41  ;;  %v1935_v46 = vmul.f32 %v4215_v42, %v1919_v10 }
 0x876   : > { %v1944_v47 = vmul.f32 %v3685_v35, %v1935_v46  ;;  %v1952_v48 = vadd.f32 %v3686_v44, %v1943_v45 }
 0x878   : > { %v1953_v49 = vadd.f32 %v3686_v44, %v1944_v47 }
 0x87a   : > { %v1954_v50 = vpack.c.bf16 %v1953_v49, %v1952_v48 }
 0x87c   : > { %3911 = vmatmul.mubr.msk.bf16.vlgmr.msra.gmra.mrb[16].mxu0 %vm1146_vm1, %v1954_v50 }
 0x87d   : > { %3924 = vmatprep.mubr.msk.bf16.mxu0 %vm4315_vm2, %v4314_v24  ;;  %3923 = vmatpush3.bf16.xpose.msra.mxu0 %v2100_v3 }
 0x87e   : > { %3934 = vmatprep.subr.bf16.mxu0 %v4314_v24 }
 0x94f   : > { %v2015_v6 = vpop.f32.mrb[16].mxu0 }
 0x950   : > { %v3912_v22 = vpop.f32.mrb[17].mxu0  ;;  %v2016_v23 = vadd.f32 %v3687_v5, %v2015_v6 }
 0x951   : > { %v2018_v38 = vpop.f32.mrb[18].mxu0 }
 0x952   : > { %v2019_v12 = vadd.f32 %v3687_v5, %v2018_v38  ;;  %v3913_v20 = vpop.f32.mrb[19].mxu0 }
 0x954   : > { %v2088_v7 = vpack.c.bf16 %v2019_v12, %v2016_v23 }
 0x956   : > { %2232 = vrot.lane.b32.xlu1 %v2088_v7, %s4319_s1  ;;  %3925 = vmatmul.mubr.msk.bf16.vlgmr.msra.gmra.mrb[20].mxu0 %vm1265_vm4, %v2088_v7 }
 0x957   : > { %3935 = vmatpush3.bf16.xpose.msra.mxu0 %v2240_v52  ;;  %3936 = vmatprep.mubr.msk.bf16.mxu0 %vm4315_vm2, %v4314_v24 }
 0x958   : > { %3946 = vmatprep.subr.bf16.mxu0 %v4314_v24 }
 0x95a   : > { %2371 = vrot.lane.b32.xlu1 %v4914_v60, %s4320_s3 }
 0x95e   : > { %2369 = vrot.lane.b32.xlu1 %v2088_v7, %s4320_s3  ;;  %s5360_s3 = sld [smem:[#allocation26_spill]] }
 0x962   : > { %2506 = vrot.lane.b32.xlu1 %v2088_v7, %s4322_s14 }
 0x9c8   : > { %v2233_v53 = vpop.permute.xlu1 %2232 }
 0x9c9   : > { %3937 = vmatmul.mubr.msk.bf16.vlgmr.msra.gmra.mrb[24].mxu0 %vm1265_vm4, %v2233_v53 }
 0x9ca   : > { %3948 = vmatprep.mubr.msk.bf16.mxu0 %vm4315_vm2, %v4314_v24 }
 0x9cc   : > { %v2372_v56 = vpop.permute.xlu1 %2371 }
 0x9cd   : > { %v2377_v13 = vsel %vm1265_vm4, %v2372_v56, 0 }
 0x9ce   : > { %3947 = vmatpush3.bf16.xpose.msra.mxu0 %v2377_v13 }
 0x9cf   : > { %3958 = vmatprep.subr.bf16.mxu0 %v4314_v24 }
 0x9d0   : > { %v2370_v25 = vpop.permute.xlu1 %2369 }
 0x9d4   : > { %v2507_v61 = vpop.permute.xlu1 %2506 }
 0x9d5   : > { %3949 = vmatmul.mubr.msk.bf16.vlgmr.msra.gmra.mrb[28].mxu0 %vm1265_vm4, %v2370_v25 }
 0x9d6   : > { %3959 = vmatpush3.bf16.xpose.msra.mxu0 %v2514_v39  ;;  %3960 = vmatprep.mubr.msk.bf16.mxu0 %vm4315_vm2, %v4314_v24 }
 0x9d7   : > { %3970 = vmatprep.subr.bf16.mxu0 %v4314_v24 }
 0x9dd   : > { %3961 = vmatmul.mubr.msk.bf16.vlgmr.msra.gmra.mrb[32].mxu0 %vm1265_vm4, %v2507_v61 }
 0x9de   : > { %3974 = vmatprep.mubr.msk.bf16.mxu0 %vm4315_vm2, %v4314_v24 }
 0xa29   : > { %v2136_v15 = vpop.f32.mrb[20].mxu0 }
 0xa2a   : > { %v2137_v2 = vadd.f32 %v2136_v15, %v4656_v32  ;;  %v3926_v9 = vpop.f32.mrb[21].mxu0 }
 0xa2b   : > { %v2139_v4 = vpop.f32.mrb[22].mxu0 }
 0xa2c   : > { %v2140_v10 = vadd.f32 %v2139_v4, %v4656_v32  ;;  %v3927_v16 = vpop.f32.mrb[23].mxu0  ;;  %v2143_v8 = vsel %vm1265_vm4, %v2137_v2, -inf }
 0xa2d   : > { %2144 = vmax.xlane.f32.xlu0 %v2143_v8 }
 0xa2e   : > { %v2146_v54 = vsel %vm1265_vm4, %v2140_v10, -inf }
 0xa2f   : > { %2147 = vmax.xlane.f32.xlu1 %v2146_v54 }
 0xa9c   : > { %v2276_v17 = vpop.f32.mrb[24].mxu0 }
 0xa9d   : > { %v2277_v18 = vadd.f32 %v2276_v17, %v4656_v32  ;;  %v3938_v19 = vpop.f32.mrb[25].mxu0 }
 0xa9e   : > { %v2279_v21 = vpop.f32.mrb[26].mxu0 }
 0xa9f   : > { %v2280_v11 = vadd.f32 %v2279_v21, %v4656_v32  ;;  %v3939_v26 = vpop.f32.mrb[27].mxu0  ;;  %v2283_v27 = vsel %vm1265_vm4, %v2277_v18, -inf }
 0xaa0   : > { %2284 = vmax.xlane.f32.xlu0 %v2283_v27 }
 0xaa1   : > { %v2286_v62 = vsel %vm1265_vm4, %v2280_v11, -inf }
 0xaa4   : > { %2287 = vmax.xlane.f32.xlu0 %v2286_v62 }
 0xaa8   : > { %v2413_v30 = vpop.f32.mrb[28].mxu0 }
 0xaa9   : > { %v2414_v33 = vadd.f32 %v2413_v30, %v4656_v32  ;;  %v3950_v34 = vpop.f32.mrb[29].mxu0 }
 0xaaa   : > { %v2416_v36 = vpop.f32.mrb[30].mxu0 }
 0xaab   : > { %v2417_v37 = vadd.f32 %v2416_v36, %v4656_v32  ;;  %v3951_v35 = vpop.f32.mrb[31].mxu0  ;;  %v2420_v41 = vsel %vm1265_vm4, %v2414_v33, -inf }
 0xaac   : > { %2421 = vmax.xlane.f32.xlu0 %v2420_v41 }
 0xaad   : > { %v2423_v42 = vsel %vm1265_vm4, %v2417_v37, -inf }
 0xaae   : > { %2424 = vmax.xlane.f32.xlu1 %v2423_v42 }
 0xab0   : > { %v2550_v45 = vpop.f32.mrb[32].mxu0 }
 0xab1   : > { %v2551_v46 = vadd.f32 %v2550_v45, %v4656_v32  ;;  %v3962_v44 = vpop.f32.mrb[33].mxu0 }
 0xab2   : > { %v2553_v47 = vpop.f32.mrb[34].mxu0 }
 0xab3   : > { %v3963_v48 = vpop.f32.mrb[35].mxu0  ;;  %v2557_v49 = vsel %vm1265_vm4, %v2551_v46, -inf  ;;  %v4972_v50 = vadd.f32 %v2553_v47, %v4656_v32 }
 0xab4   : > { %2558 = vmax.xlane.f32.xlu0 %v2557_v49 }
 0xab5   : > { %v2560_v51 = vsel %vm1265_vm4, %v4972_v50, -inf }
 0xaba   : > { %v4978_v55 = vpop.xlane.xlu0 %2144 }
 0xabb   : > { %v2149_v3 = vmax.f32 %v4978_v55, -1e+30 }
 0xabc   : > { %v4980_v57 = vpop.xlane.xlu1 %2147 }
 0xabd   : > { %v2150_v63 = vmax.f32 %v4980_v57, -1e+30  ;;  %v2157_v43 = vsub.f32 %v2137_v2, %v2149_v3 }
 0xabf   : > { %2314 = vrot.lane.b32.xlu1 %v4914_v60, %s4317_s23  ;;  %v2158_v22 = vsub.f32 %v2140_v10, %v2150_v63  ;;  %v2159_v20 = vmul.f32 1.442695, %v2157_v43  ;;  %v2151_v43 = vsub.f32 -1e+30, %v2149_v3  ;;  %s5359_s23 = sld [smem:[#allocation12_spill]] }
 0xac1   : > { %v2161_v12 = vmul.f32 1.442695, %v2158_v22 }
 0xac3   : > { %2451 = vrot.lane.b32.xlu1 %v4914_v60, %s4321_s29  ;;  %s5361_s29 = scalar_lea.vmem %s5360_s3, %s4493_s0  ;;  %s5363_s0 = sld [smem:[#allocation2_spill]] }
 0xac9   : > { %p3757_p8 = scmp.ge.s32.totalorder %s5363_s0, 1 }
 0xaca   : > { %2175 = vrot.lane.b32.xlu0 %v4914_v60, %s4318_s20 }
 0xae7   : > { %2561 = vmax.xlane.f32.xlu1 %v2560_v51 }
 0xaf8   : > { %2588 = vrot.lane.b32.xlu1 %v4914_v60, %s4323_s10 }
 0xb2d   : > { %v4982_v58 = vpop.xlane.xlu0 %2284 }
 0xb2e   : > { %v2289_v59 = vmax.f32 %v4982_v58, -1e+30 }
 0xb30   : > { %v2297_v32 = vsub.f32 %v2277_v18, %v2289_v59 }
 0xb31   : > { %v4989_v5 = vpop.xlane.xlu0 %2287 }
 0xb32   : > { %v2299_v6 = vmul.f32 1.442695, %v2297_v32  ;;  %v2290_v60 = vmax.f32 %v4989_v5, -1e+30 }
 0xb34   : > { %v2298_v38 = vsub.f32 %v2280_v11, %v2290_v60  ;;  %4216 = vpow2.f32 %v2299_v6 }
 0xb36   : > { %v2301_v23 = vmul.f32 1.442695, %v2298_v38 }
 0xb38   : > { %4218 = vpow2.f32 %v2301_v23 }
 0xb39   : > { %v4998_v7 = vpop.xlane.xlu0 %2421  ;;  %4220 = vpow2.f32 %v2161_v12  ;;  %v2153_v12 = vmul.f32 1.442695, %v2151_v43 }
 0xb3a   : > { %v2426_v52 = vmax.f32 %v4998_v7, -1e+30  ;;  %4222 = vpow2.f32 %v2159_v20  ;;  %v2291_v20 = vsub.f32 -1e+30, %v2289_v59 }
 0xb3b   : > { %v5001_v53 = vpop.xlane.xlu1 %2424 }
 0xb3c   : > { %v2434_v56 = vsub.f32 %v2414_v33, %v2426_v52  ;;  %v2427_v13 = vmax.f32 %v5001_v53, -1e+30  ;;  %v2428_v55 = vsub.f32 -1e+30, %v2426_v52 }
 0xb3e   : > { %v2436_v31 = vmul.f32 1.442695, %v2434_v56  ;;  %v2435_v25 = vsub.f32 %v2417_v37, %v2427_v13  ;;  %v4217_v39 = vpop.eup %4216  ;;  %v2429_v58 = vsub.f32 -1e+30, %v2427_v13  ;;  %v2430_v57 = vmul.f32 1.442695, %v2428_v55 }
 0xb3f   : > { %v2305_v15 = vsel %vm1265_vm4, %v4217_v39, 0.0  ;;  %v2315_v21 = vpop.permute.xlu1 %2314 }
 0xb40   : > { %v2438_v61 = vmul.f32 1.442695, %v2435_v25  ;;  %4224 = vpow2.f32 %v2436_v31  ;;  %2306 = vadd.xlane.f32.xlu0 %v2305_v15  ;;  %v2320_v26 = vsel %vm2180_vm8, %v2315_v21, 0  ;;  %v2152_v31 = vsub.f32 -1e+30, %v2150_v63 }
 0xb41   : > { %v5009_v2 = vpop.xlane.xlu0 %2558  ;;  %v2292_v25 = vsub.f32 -1e+30, %v2290_v60  ;;  %v2432_v5 = vmul.f32 1.442695, %v2429_v58 }
 0xb42   : > { %v2563_v9 = vmax.f32 %v5009_v2, -1e+30  ;;  %v4219_v4 = vpop.eup %4218  ;;  %4226 = vpow2.f32 %v2438_v61  ;;  %v2155_v61 = vmul.f32 1.442695, %v2152_v31 }
 0xb43   : > { %v2308_v16 = vsel %vm1265_vm4, %v4219_v4, 0.0  ;;  %v4221_v8 = vpop.eup %4220  ;;  %v2452_v33 = vpop.permute.xlu1 %2451  ;;  %v2313_v36 = vpack.c.bf16 %v4219_v4, %v4217_v39  ;;  %v2293_v39 = vmul.f32 1.442695, %v2291_v20  ;;  %v2295_v15 = vmul.f32 1.442695, %v2292_v25  ;;  %v4140_v25 = vld [vmem:[%s5359_s23] sm:$0xff]  }
 0xb44   : > { %v2571_v10 = vsub.f32 %v2551_v46, %v2563_v9  ;;  %2309 = vadd.xlane.f32.xlu1 %v2308_v16  ;;  %v4223_v19 = vpop.eup %4222  ;;  %v2457_v37 = vsel %vm2180_vm8, %v2452_v33, 0  ;;  %3971 = vmatpush3.bf16.msra.mxu0 %v4140_v25 }
 0xb45   : > { %v2176_v54 = vpop.permute.xlu0 %2175  ;;  %v2173_v11 = vpack.c.bf16 %v4221_v8, %v4223_v19  ;;  %v2165_v42 = vsel %vm1265_vm4, %v4223_v19, 0.0  ;;  %3972 = vmatprep.subr.bf16.mxu0 %v4314_v24 }
 0xb46   : > { %v2573_v17 = vmul.f32 1.442695, %v2571_v10  ;;  %v2182_v18 = vsel %vm2180_vm8, %v2176_v54, 0 }
 0xb47   : > { %3929 = vmatpush3.bf16.msra.mxu1 %v2182_v18 }
 0xb48   : > { %3940 = vmatprep.subr.bf16.mxu1 %v4314_v24  ;;  %4228 = vpow2.f32 %v2573_v17 }
 0xb4a   : > { %3931 = vmatmul.mubr.msk.bf16.vlgmr.msra.gmra.mrb[28].mxu1 %vm1265_vm4, %v2173_v11  ;;  %v4225_v27 = vpop.eup %4224 }
 0xb4b   : > { %3941 = vmatpush3.bf16.msra.mxu1 %v2320_v26  ;;  %3942 = vmatprep.mubr.msk.bf16.mxu1 %vm4315_vm2, %v4314_v24  ;;  %v2442_v62 = vsel %vm1265_vm4, %v4225_v27, 0.0 }
 0xb4c   : > { %3952 = vmatprep.subr.bf16.mxu1 %v4314_v24  ;;  %v4227_v30 = vpop.eup %4226  ;;  %2443 = vadd.xlane.f32.xlu0 %v2442_v62 }
 0xb4d   : > { %v2445_v34 = vsel %vm1265_vm4, %v4227_v30, 0.0  ;;  %v2450_v45 = vpack.c.bf16 %v4227_v30, %v4225_v27 }
 0xb50   : > { %2446 = vadd.xlane.f32.xlu0 %v2445_v34 }
 0xb52   : > { %3943 = vmatmul.mubr.msk.bf16.vlgmr.msra.gmra.mrb[32].mxu1 %vm1265_vm4, %v2313_v36  ;;  %v4229_v35 = vpop.eup %4228 }
 0xb53   : > { %3953 = vmatpush3.bf16.msra.mxu1 %v2457_v37  ;;  %3954 = vmatprep.mubr.msk.bf16.mxu1 %vm4315_vm2, %v4314_v24  ;;  %v2579_v41 = vsel %vm1265_vm4, %v4229_v35, 0.0 }
 0xb54   : > { %3964 = vmatprep.subr.bf16.mxu1 %v4314_v24  ;;  %2580 = vadd.xlane.f32.xlu0 %v2579_v41 }
 0xb58   : > { %2166 = vadd.xlane.f32.xlu0 %v2165_v42 }
 0xb5a   : > { %3955 = vmatmul.mubr.msk.bf16.vlgmr.msra.gmra.mrb[36].mxu1 %vm1265_vm4, %v2450_v45 }
 0xb5b   : > { %3966 = vmatprep.mubr.msk.bf16.mxu1 %vm4315_vm2, %v4314_v24 }
 0xb74   : > { %v5034_v46 = vpop.xlane.xlu1 %2561 }
 0xb75   : > { %v2564_v44 = vmax.f32 %v5034_v46, -1e+30 }
 0xb77   : > { %v2572_v47 = vsub.f32 %v4972_v50, %v2564_v44  ;;  %v2168_v50 = vsel %vm1265_vm4, %v4221_v8, 0.0 }
 0xb78   : > { %v2589_v48 = vpop.permute.xlu1 %2588 }
 0xb79   : > { %v2575_v49 = vmul.f32 1.442695, %v2572_v47  ;;  %v2594_v51 = vsel %vm2180_vm8, %v2589_v48, 0 }
 0xb7a   : > { %3965 = vmatpush3.bf16.msra.mxu1 %v2594_v51 }
 0xb7b   : > { %3978 = vmatprep.subr.bf16.mxu1 %v4314_v24  ;;  %4230 = vpow2.f32 %v2575_v49 }
 0xb7c   : > { %4232 = vpow2.f32 %v2153_v12 }
 0xb7d   : > { %4234 = vpow2.f32 %v2293_v39 }
 0xb7e   : > { %4236 = vpow2.f32 %v2155_v61 }
 0xb7f   : > { %4238 = vpow2.f32 %v2295_v15 }
 0xb80   : > { %4240 = vpow2.f32 %v2430_v57 }
 0xb81   : > { %4242 = vpow2.f32 %v2432_v5 }
 0xb85   : > { %v4231_v32 = vpop.eup %4230 }
 0xb86   : > { %v2582_v6 = vsel %vm1265_vm4, %v4231_v32, 0.0  ;;  %v2587_v22 = vpack.c.bf16 %v4231_v32, %v4229_v35  ;;  %v4233_v3 = vpop.eup %4232 }
 0xb87   : > { %2583 = vadd.xlane.f32.xlu1 %v2582_v6  ;;  %v2163_v63 = vmul.f32 0.0, %v4233_v3  ;;  %v4235_v16 = vpop.eup %4234 }
 0xb88   : > { %3967 = vmatmul.mubr.msk.bf16.vlgmr.msra.gmra.mrb[40].mxu1 %vm1265_vm4, %v2587_v22  ;;  %v4237_v8 = vpop.eup %4236  ;;  %v2303_v52 = vmul.f32 0.0, %v4235_v16 }
 0xb89   : > { %3982 = vmatprep.mubr.msk.bf16.mxu1 %vm4315_vm2, %v4314_v24  ;;  %v4239_v7 = vpop.eup %4238  ;;  %v2164_v17 = vmul.f32 0.0, %v4237_v8 }
 0xb8a   : > { %v2304_v19 = vmul.f32 0.0, %v4239_v7  ;;  %v4241_v11 = vpop.eup %4240 }
 0xb8b   : > { %2169 = vadd.xlane.f32.xlu1 %v2168_v50  ;;  %v4243_v27 = vpop.eup %4242  ;;  %v2440_v34 = vmul.f32 0.0, %v4241_v11 }
 0xb8c   : > { %v2441_v45 = vmul.f32 0.0, %v4243_v27 }
 0xbcd   : > { %v2307_v38 = vpop.xlane.xlu0 %2306 }
 0xbce   : > { %v2311_v18 = vadd.f32 %v2307_v38, %v2303_v52 }
 0xbd1   : > { %v2310_v60 = vpop.xlane.xlu1 %2309 }
 0xbd2   : > { %v2312_v21 = vadd.f32 %v2310_v60, %v2304_v19  ;;  %v2565_v60 = vsub.f32 -1e+30, %v2563_v9 }
 0xbd4   : > { %v2567_v16 = vmul.f32 1.442695, %v2565_v60 }
 0xbd9   : > { %v2444_v23 = vpop.xlane.xlu0 %2443 }
 0xbda   : > { %v2448_v42 = vadd.f32 %v2444_v23, %v2440_v34 }
 0xbdd   : > { %v2447_v56 = vpop.xlane.xlu0 %2446 }
 0xbde   : > { %v2449_v47 = vadd.f32 %v2447_v56, %v2441_v45 }
 0xbe1   : > { %v5055_v4 = vpop.xlane.xlu0 %2580 }
 0xbe5   : > { %v2167_v59 = vpop.xlane.xlu0 %2166 }
 0xbe6   : > { %v2171_v10 = vadd.f32 %v2167_v59, %v2163_v63 }
 0xbe8   : > { %4244 = vrcp.f32 %v2171_v10  ;;  %v2566_v10 = vsub.f32 -1e+30, %v2564_v44 }
 0xbea   : > { %v2569_v8 = vmul.f32 1.442695, %v2566_v10  ;;  %v4143_v10 = vld [vmem:[%s4600_s15 + $0x18] sm:$0xff]  }
 0xbf2   : > { %v4245_v33 = vpop.eup %4244 }
 0xc14   : > { %v5061_v54 = vpop.xlane.xlu1 %2583 }
 0xc18   : > { %v2170_v53 = vpop.xlane.xlu1 %2169 }
 0xc19   : > { %v2172_v13 = vadd.f32 %v2170_v53, %v2164_v17 }
 0xc1b   : > { %4246 = vrcp.f32 %v2172_v13  ;;  %v4141_v13 = vld [vmem:[%s5359_s23 + $0x8] sm:$0xff]  }
 0xc1c   : > { %4248 = vrcp.f32 %v2311_v18  ;;  %3973 = vmatpush3.bf16.msra.mxu0 %v4141_v13  ;;  %v2777_v13 = vsub.s32 3, %v4648_v28 }
 0xc1d   : > { %v2218_v26 = vpop.f32.mrb[28].mxu1  ;;  %4250 = vrcp.f32 %v2312_v21  ;;  %3986 = vmatprep.subr.bf16.mxu0 %v4314_v24 }
 0xc1e   : > { %v2225_v62 = vadd.f32 %v2218_v26, %v2163_v63  ;;  %v3932_v30 = vpop.f32.mrb[29].mxu1  ;;  %4252 = vrcp.f32 %v2448_v42 }
 0xc1f   : > { %v2221_v36 = vpop.f32.mrb[30].mxu1  ;;  %4254 = vrcp.f32 %v2449_v47 }
 0xc20   : > { %v5063_v37 = vmul.f32 %v4245_v33, %v2225_v62  ;;  %v2226_v35 = vadd.f32 %v2221_v36, %v2164_v17  ;;  %v3933_v41 = vpop.f32.mrb[31].mxu1  ;;  %4256 = vpow2.f32 %v2567_v16  ;;  %v4144_v16 = vld [vmem:[%s4600_s15] sm:$0xff]  }
 0xc21   : > { %4258 = vpow2.f32 %v2569_v8  ;;  %v4145_v8 = vld [vmem:[%s4600_s15 + $0x8] sm:$0xff]  }
 0xc25   : > { %v2356_v48 = vpop.f32.mrb[32].mxu1  ;;  %v4247_v49 = vpop.eup %4246 }
 0xc26   : > { %v2363_v51 = vadd.f32 %v2356_v48, %v2303_v52  ;;  %v3944_v32 = vpop.f32.mrb[33].mxu1  ;;  %v4249_v6 = vpop.eup %4248  ;;  %v2230_v22 = vmul.f32 %v4247_v49, %v2226_v35 }
 0xc27   : > { %v2359_v50 = vpop.f32.mrb[34].mxu1  ;;  %v4251_v20 = vpop.eup %4250 }
 0xc28   : > { %v2367_v38 = vmul.f32 %v4249_v6, %v2363_v51  ;;  %v2364_v43 = vadd.f32 %v2359_v50, %v2304_v19  ;;  %v3945_v12 = vpop.f32.mrb[35].mxu1  ;;  %v4253_v15 = vpop.eup %4252 }
 0xc29   : > { %v4255_v59 = vpop.eup %4254 }
 0xc2a   : > { %v2368_v31 = vmul.f32 %v4251_v20, %v2364_v43  ;;  %v4257_v7 = vpop.eup %4256 }
 0xc2b   : > { %v4259_v52 = vpop.eup %4258  ;;  %v2577_v17 = vmul.f32 0.0, %v4257_v7 }
 0xc2c   : > { %v4115_v39 = vpack.i.bf16 %v2368_v31, %v2367_v38  ;;  %v2578_v19 = vmul.f32 0.0, %v4259_v52 }
 0xc2d   : > { %v2493_v23 = vpop.f32.mrb[36].mxu1  ;;  %v2585_v18 = vadd.f32 %v5055_v4, %v2577_v17 }
 0xc2e   : > { %v2500_v61 = vadd.f32 %v2493_v23, %v2440_v34  ;;  %4116 = vrot.lane.b32.xlu0 %v4115_v39, %s4328_s21  ;;  %v3956_v56 = vpop.f32.mrb[37].mxu1  ;;  %v2586_v53 = vadd.f32 %v5061_v54, %v2578_v19 }
 0xc2f   : > { %v2496_v55 = vpop.f32.mrb[38].mxu1  ;;  %4260 = vrcp.f32 %v2585_v18 }
 0xc30   : > { %v2504_v3 = vmul.f32 %v4253_v15, %v2500_v61  ;;  %v2501_v58 = vadd.f32 %v2496_v55, %v2441_v45  ;;  %v3957_v57 = vpop.f32.mrb[39].mxu1  ;;  %4262 = vrcp.f32 %v2586_v53  ;;  %v4331_v15 = vmov 0  }
 0xc31   : > { %4130 = vset.pattern.permute.xlu1 %v4331_v15  ;;  %4131 = vset.pattern.permute.xlu0 %v4331_v15  ;;  %v2771_v53 = vsub.s32 4, %v4648_v28  ;;  %v4152_v15 = vld [vmem:[%s4611_s2 + $0x8] sm:$0xff]  }
 0xc32   : > { %v2505_v63 = vmul.f32 %v4255_v59, %v2501_v58 }
 0xc34   : > { %v4120_v5 = vpack.i.bf16 %v2505_v63, %v2504_v3 }
 0xc36   : > { %4121 = vrot.lane.b32.xlu1 %v4120_v5, %s4329_s12 }
 0xc39   : > { %v4261_v44 = vpop.eup %4260 }
 0xc3a   : > { %v4263_v62 = vpop.eup %4262 }
 0xc5b   : > { %v2630_v2 = vpop.f32.mrb[40].mxu1 }
 0xc5c   : > { %v2637_v9 = vadd.f32 %v2630_v2, %v2577_v17  ;;  %v3968_v46 = vpop.f32.mrb[41].mxu1  ;;  %v2772_v2 = vrot.slane %v4662_v40, %v2771_v53  ;;  %v5131_v40 = vadd.s32 4294967295, %v4648_v28 }
 0xc5d   : > { %v2633_v21 = vpop.f32.mrb[42].mxu1  ;;  %v5121_v46 = vld [vmem:[%s4537_s22] sm:$0x3f] }
 0xc5e   : > { %v2641_v11 = vmul.f32 %v4261_v44, %v2637_v9  ;;  %v2638_v26 = vadd.f32 %v2633_v21, %v2578_v19  ;;  %v3969_v27 = vpop.f32.mrb[43].mxu1  ;;  %v2778_v44 = vrot.slane %v5121_v46, %v2777_v13  ;;  %vm2804_vm11 = vcmp.ge.s32.totalorder %v5131_v40, 0  ;;  %v4159_v40 = vld [vmem:[%s4611_s2 + $0x58] sm:$0xff]  }
 0xc60   : > { %v2642_v30 = vmul.f32 %v4263_v62, %v2638_v26 }
 0xc62   : > { %v4125_v4 = vpack.i.bf16 %v2642_v30, %v2641_v11 }
 0xc64   : > { %4126 = vrot.lane.b32.xlu1 %v4125_v4, %s4330_s7 }
 0xca0   : > { %v4117_v54 = vpop.permute.xlu0 %4116 }
 0xca1   : > { %v4119_v34 = vunpack.i.h.bf16 %v4117_v54  ;;  %v4118_v36 = vunpack.i.l.bf16 %v4117_v54  ;;  %v2796_v54 = vadd.s32 8, %v4648_v28 }
 0xca3   : > { %v2668_v45 = vsel %vm1265_vm4, %v2230_v22, %v4119_v34  ;;  %v2667_v47 = vsel %vm1265_vm4, %v5063_v37, %v4118_v36  ;;  %v3703_v37 = vld [vmem:[%s5361_s29] ss:$0 sm:$0xff] }
 0xca8   : > { %v4122_v33 = vpop.permute.xlu1 %4121 }
 0xca9   : > { %v4124_v35 = vunpack.i.h.bf16 %v4122_v33  ;;  %v4123_v41 = vunpack.i.l.bf16 %v4122_v33 }
 0xcab   : > { %v2670_v51 = vsel %vm1313_vm6, %v2668_v45, %v4124_v35  ;;  %v2669_v32 = vsel %vm1313_vm6, %v2667_v47, %v4123_v41  ;;  %v5134_v41 = vadd.s32 1, %v2796_v54  ;;  %v4146_v45 = vld [vmem:[%s4600_s15 + $0x20] sm:$0xff]  }
 0xcad   : > { %vm2945_vm12 = vcmp.lt.s32.totalorder %v5134_v41, 16 }
 0xcd6   : > { %v4127_v42 = vpop.permute.xlu1 %4126 }
 0xcd7   : > { %v4129_v48 = vunpack.i.h.bf16 %v4127_v42  ;;  %v4128_v49 = vunpack.i.l.bf16 %v4127_v42 }
 0xcd9   : > { %v2672_v6 = vsel %vm1831_vm7, %v2670_v51, %v4129_v48  ;;  %v2671_v50 = vsel %vm1831_vm7, %v2669_v32, %v4128_v49 }
 0xcda   : > { %v2673_v38 = vpack.c.bf16 %v2672_v6, %v2671_v50 }
 0xcdc   : > { %3975 = vmatmul.mubr.msk.bf16.vlgmr.msra.gmra.mrb[36].mxu0 %vm1146_vm1, %v2673_v38 }
 0xcdd   : > { %3990 = vmatprep.mubr.msk.bf16.mxu0 %vm4315_vm2, %v4314_v24  ;;  %3987 = vmatpush3.bf16.msra.mxu0 %v4144_v16 }
 0xcde   : > { %3988 = vmatprep.subr.bf16.mxu0 %v4314_v24 }
 0xce1   : > { %3989 = vmatpush3.bf16.msra.mxu0 %v4145_v8  ;;  %v3724_v8 = vld [vmem:[%s1098_s25] ss:$0 sm:$0xff] }
 0xce2   : > { %4002 = vmatprep.subr.bf16.mxu0 %v4314_v24 }
 0xdaf   : > { %v2734_v22 = vpop.f32.mrb[36].mxu0 }
 0xdb0   : > { %v2735_v43 = vadd.f32 %v3703_v37, %v2734_v22  ;;  %v3976_v12 = vpop.f32.mrb[37].mxu0 }
 0xdb1   : > { %v2737_v20 = vpop.f32.mrb[38].mxu0 }
 0xdb2   : > { %v5094_v31 = vadd.f32 %v2735_v43, %v4871_v29  ;;  %v2738_v25 = vadd.f32 %v3703_v37, %v2737_v20  ;;  %v3977_v39 = vpop.f32.mrb[39].mxu0  ;;  %v4147_v37 = vld [vmem:[%s4600_s15 + $0x28] sm:$0xff]  }
 0xdb3   : > { %v4149_v39 = vld [vmem:[%s4611_s2 + $0x28] sm:$0xff]  }
 0xdb4   : > { %v5097_v23 = vadd.f32 %v2738_v25, %v4874_v14  ;;  %v2743_v61 = vsel %vm1146_vm1, %v5094_v31, 0.0  ;;  %v4148_v25 = vld [vmem:[%s4611_s2 + $0x20] sm:$0xff]  }
 0xdb5   : > { %2744 = vadd.xlane.f32.xlu1 %v2743_v61  ;;  %v4150_v61 = vld [vmem:[%s4611_s2] sm:$0xff]  }
 0xdb6   : > { %v2746_v56 = vsel %vm1146_vm1, %v5097_v23, 0.0 }
 0xdb7   : > { %2747 = vadd.xlane.f32.xlu0 %v2746_v56  ;;  %v4151_v56 = vld [vmem:[%s4611_s2 + $0x30] sm:$0xff]  }
 0xdc6   : > { %2783 = vperm.xlu1 %4130, %v4517_v0   ;;  %v4142_v0 = vld [vmem:[%s4600_s15 + $0x10] sm:$0xff]  }
 0xdc7   : > { %3979 = vmatpush3.bf16.msra.mxu1 %v4142_v0 }
 0xdc8   : > { %3980 = vmatprep.subr.bf16.mxu1 %v4314_v24 }
 0xdcb   : > { %3981 = vmatpush3.bf16.msra.mxu1 %v4143_v10 }
 0xdcc   : > { %3994 = vmatprep.subr.bf16.mxu1 %v4314_v24 }
 0xe42   : > { %v2745_v29 = vpop.xlane.xlu1 %2744 }
 0xe43   : > { %v2749_v55 = vmul.f32 0.03125, %v2745_v29  ;;  %v4153_v29 = vld [vmem:[%s4611_s2 + $0x38] sm:$0xff]  }
 0xe44   : > { %v2748_v14 = vpop.xlane.xlu0 %2747 }
 0xe45   : > { %v2751_v3 = vsub.f32 %v5094_v31, %v2749_v55  ;;  %v2750_v58 = vmul.f32 0.03125, %v2748_v14  ;;  %v4154_v55 = vld [vmem:[%s4611_s2 + $0x10] sm:$0xff]   ;;  %v4156_v14 = vld [vmem:[%s4611_s2 + $0x18] sm:$0xff]  }
 0xe46   : > { %v5124_v27 = vpop.permute.xlu1 %2783 }
 0xe47   : > { %v2752_v57 = vsub.f32 %v5097_v23, %v2750_v58  ;;  %v2753_v59 = vmul.f32 %v2751_v3, %v2751_v3 }
 0xe49   : > { %v2755_v63 = vsel %vm1146_vm1, %v2753_v59, 0.0  ;;  %v2754_v5 = vmul.f32 %v2752_v57, %v2752_v57 }
 0xe4a   : > { %2756 = vadd.xlane.f32.xlu0 %v2755_v63 }
 0xe4b   : > { %v2758_v60 = vsel %vm1146_vm1, %v2754_v5, 0.0 }
 0xe4e   : > { %2759 = vadd.xlane.f32.xlu0 %v2758_v60 }
 0xe64   : > { %2788 = vperm.xlu0 %4131, %v4519_v1  }
 0xed7   : > { %v2757_v7 = vpop.xlane.xlu0 %2756 }
 0xed8   : > { %v2761_v52 = vmul.f32 0.03125, %v2757_v7 }
 0xeda   : > { %v2763_v1 = vadd.f32 1e-06, %v2761_v52 }
 0xedb   : > { %v2760_v17 = vpop.xlane.xlu0 %2759 }
 0xedc   : > { %4264 = vrsqrt.f32 %v2763_v1  ;;  %v2762_v18 = vmul.f32 0.03125, %v2760_v17 }
 0xede   : > { %v2764_v19 = vadd.f32 1e-06, %v2762_v18 }
 0xee0   : > { %4266 = vrsqrt.f32 %v2764_v19 }
 0xee3   : > { %v5128_v34 = vpop.permute.xlu0 %2788 }
 0xee6   : > { %v4265_v9 = vpop.eup %4264 }
 0xee7   : > { %v2767_v21 = vmul.f32 %v4265_v9, %v2751_v3 }
 0xee9   : > { %v2773_v11 = vmul.f32 %v2772_v2, %v2767_v21 }
 0xeea   : > { %v4267_v26 = vpop.eup %4266 }
 0xeeb   : > { %v2779_v62 = vadd.f32 %v2778_v44, %v2773_v11  ;;  %v2768_v30 = vmul.f32 %v4267_v26, %v2752_v57  ;;  %v4155_v26 = vld [vmem:[%s4611_s2 + $0x40] sm:$0xff]  }
 0xeed   : > { %v2774_v4 = vmul.f32 %v2772_v2, %v2768_v30  ;;  %v2791_v33 = vmul.f32 %v5124_v27, %v2779_v62 }
 0xeef   : > { %v2780_v36 = vadd.f32 %v2778_v44, %v2774_v4  ;;  %v2797_v42 = vrot.slane %v2791_v33, 7  ;;  %v2935_v47 = vrot.slane %v2791_v33, 1 }
 0xef1   : > { %v2792_v35 = vmul.f32 %v5128_v34, %v2780_v36 }
 0xef3   : > { %v2798_v48 = vrot.slane %v2792_v35, 7  ;;  %v2817_v49 = vpack.c.bf16 %v2792_v35, %v2791_v33  ;;  %v2936_v51 = vrot.slane %v2792_v35, 1 }
 0xef5   : > { %v2800_v32 = vsel %vm2799_vm9, %v2797_v42, %v2798_v48  ;;  %v2801_v6 = vsel %vm2799_vm9, %v2798_v48, %v2797_v42  ;;  %v2939_v50 = vsel %vm2937_vm10, %v2936_v51, %v2935_v47  ;;  %3983 = vmatmul.mubr.msk.bf16.vlgmr.msra.gmra.mrb[44].mxu1 %vm1146_vm1, %v2817_v49  ;;  %v2938_v43 = vsel %vm2937_vm10, %v2935_v47, %v2936_v51  ;;  %v4157_v47 = vld [vmem:[%s4611_s2 + $0x48] sm:$0xff]  }
 0xef6   : > { %3995 = vmatpush3.bf16.msra.mxu1 %v4146_v45  ;;  %v2810_v38 = vsel %vm2804_vm11, %v2801_v6, 0.0  ;;  %3998 = vmatprep.mubr.msk.bf16.mxu1 %vm4315_vm2, %v4314_v24  ;;  %v2949_v12 = vsel %vm2945_vm12, %v2939_v50, 0.0 }
 0xef7   : > { %v2812_v22 = vpack.c.bf16 %v2800_v32, %v2810_v38  ;;  %3996 = vmatprep.subr.bf16.mxu1 %v4314_v24  ;;  %v2950_v20 = vpack.c.bf16 %v2949_v12, %v2938_v43  ;;  %v4158_v32 = vld [vmem:[%s4611_s2 + $0x50] sm:$0xff]  }
 0xef9   : > { %3991 = vmatmul.mubr.msk.bf16.vlgmr.msra.gmra.mrb[40].mxu0 %vm1146_vm1, %v2812_v22 }
 0xefa   : > { %3997 = vmatpush3.bf16.msra.mxu1 %v4147_v37  ;;  %4010 = vmatprep.mubr.msk.bf16.mxu0 %vm4315_vm2, %v4314_v24 }
 0xefb   : > { %4014 = vmatprep.subr.bf16.mxu1 %v4314_v24  ;;  %4003 = vmatpush3.bf16.msra.mxu0 %v4148_v25 }
 0xefc   : > { %4004 = vmatprep.subr.bf16.mxu0 %v4314_v24 }
 0xefd   : > { %3999 = vmatmul.mubr.msk.bf16.vlgmr.msra.gmra.mrb[48].mxu1 %vm1146_vm1, %v2950_v20 }
 0xefe   : > { %4022 = vmatprep.mubr.msk.bf16.mxu1 %vm4315_vm2, %v4314_v24  ;;  %4015 = vmatpush3.bf16.msra.mxu1 %v4150_v61 }
 0xeff   : > { %4005 = vmatpush3.bf16.msra.mxu0 %v4149_v39  ;;  %4016 = vmatprep.subr.bf16.mxu1 %v4314_v24  ;;  %v3287_v39 = vsub.s32 5, %v4648_v28 }
 0xf00   : > { %4006 = vmatprep.subr.bf16.mxu0 %v4314_v24 }
 0xf02   : > { %4017 = vmatpush3.bf16.msra.mxu1 %v4152_v15 }
 0xf03   : > { %4007 = vmatpush3.bf16.msra.mxu0 %v4151_v56  ;;  %4018 = vmatprep.subr.bf16.mxu1 %v4314_v24 }
 0xf04   : > { %4008 = vmatprep.subr.bf16.mxu0 %v4314_v24 }
 0xf06   : > { %4019 = vmatpush3.bf16.msra.mxu1 %v4154_v55 }
 0xf07   : > { %4009 = vmatpush3.bf16.msra.mxu0 %v4153_v29  ;;  %4020 = vmatprep.subr.bf16.mxu1 %v4314_v24 }
 0xf08   : > { %4026 = vmatprep.subr.bf16.mxu0 %v4314_v24 }
 0xf0a   : > { %4021 = vmatpush3.bf16.msra.mxu1 %v4156_v14  ;;  %v3288_v14 = vrot.slane %v5121_v46, %v3287_v39 }
 0xfc8   : > { %v2872_v3 = vpop.f32.mrb[44].mxu1 }
 0xfc9   : > { %v3984_v58 = vpop.f32.mrb[45].mxu1 }
 0xfca   : > { %v2875_v57 = vpop.f32.mrb[46].mxu1 }
 0xfcb   : > { %v3985_v59 = vpop.f32.mrb[47].mxu1 }
 0xfcc   : > { %v2928_v63 = vpop.f32.mrb[40].mxu0 }
 0xfcd   : > { %v2929_v5 = vadd.f32 %v2928_v63, %v2872_v3  ;;  %v3992_v60 = vpop.f32.mrb[41].mxu0 }
 0xfce   : > { %v2931_v0 = vpop.f32.mrb[42].mxu0 }
 0xfcf   : > { %v2932_v10 = vadd.f32 %v2931_v0, %v2875_v57  ;;  %v3993_v16 = vpop.f32.mrb[43].mxu0 }
 0xfd0   : > { %v3005_v7 = vpop.f32.mrb[48].mxu1 }
 0xfd1   : > { %v3012_v52 = vadd.f32 %v3005_v7, %v2929_v5  ;;  %v4000_v1 = vpop.f32.mrb[49].mxu1 }
 0xfd2   : > { %v3008_v17 = vpop.f32.mrb[50].mxu1 }
 0xfd3   : > { %v3020_v18 = vadd.f32 %v3724_v8, %v3012_v52  ;;  %v3013_v19 = vadd.f32 %v3008_v17, %v2932_v10  ;;  %v4001_v53 = vpop.f32.mrb[51].mxu1 }
 0xfd5   : > { %v3022_v13 = vmax.f32 %v3020_v18, 0.0  ;;  %v3021_v2 = vadd.f32 %v3724_v8, %v3013_v19 }
 0xfd7   : > { %v3024_v9 = vmul.f32 %v3022_v13, %v5124_v27  ;;  %v3023_v44 = vmax.f32 %v3021_v2, 0.0 }
 0xfd9   : > { %v3025_v21 = vmul.f32 %v3023_v44, %v5128_v34  ;;  %v3027_v11 = vrot.slane %v3024_v9, 7  ;;  %v3189_v62 = vrot.slane %v3024_v9, 1 }
 0xfdb   : > { %v3028_v30 = vrot.slane %v3025_v21, 7  ;;  %v3042_v4 = vpack.c.bf16 %v3025_v21, %v3024_v9  ;;  %v3190_v54 = vrot.slane %v3025_v21, 1 }
 0xfdd   : > { %4011 = vmatmul.mubr.msk.bf16.vlgmr.msra.gmra.mrb[44].mxu0 %vm3076_vm13, %v3042_v4  ;;  %v3029_v33 = vsel %vm2799_vm9, %v3027_v11, %v3028_v30  ;;  %v3030_v36 = vsel %vm2799_vm9, %v3028_v30, %v3027_v11  ;;  %v3191_v35 = vsel %vm2937_vm10, %v3189_v62, %v3190_v54  ;;  %v3192_v42 = vsel %vm2937_vm10, %v3190_v54, %v3189_v62 }
 0xfde   : > { %4027 = vmatpush3.bf16.msra.mxu0 %v4155_v26  ;;  %v3031_v45 = vsel %vm2804_vm11, %v3030_v36, 0.0  ;;  %4034 = vmatprep.mubr.msk.bf16.mxu0 %vm4315_vm2, %v4314_v24  ;;  %v3194_v48 = vsel %vm2945_vm12, %v3192_v42, 0.0 }
 0xfdf   : > { %4028 = vmatprep.subr.bf16.mxu0 %v4314_v24  ;;  %v3033_v49 = vpack.c.bf16 %v3029_v33, %v3031_v45  ;;  %v3195_v51 = vpack.c.bf16 %v3194_v48, %v3191_v35 }
 0xfe1   : > { %4023 = vmatmul.mubr.msk.bf16.vlgmr.msra.gmra.mrb[52].mxu1 %vm3076_vm13, %v3033_v49 }
 0xfe2   : > { %4029 = vmatpush3.bf16.msra.mxu0 %v4157_v47 }
 0xfe3   : > { %4030 = vmatprep.subr.bf16.mxu0 %v4314_v24 }
 0xfe6   : > { %4031 = vmatpush3.bf16.msra.mxu0 %v4158_v32 }
 0xfe7   : > { %4032 = vmatprep.subr.bf16.mxu0 %v4314_v24  ;;  %v3756_v24 = vld [vmem:[%s1106_s4] ss:$0 sm:$0xff] }
 0xfea   : > { %4033 = vmatpush3.bf16.msra.mxu0 %v4159_v40 }
 0xfed   : > { %4035 = vmatmul.mubr.msk.bf16.vlgmr.msra.gmra.mrb[48].mxu0 %vm3076_vm13, %v3195_v51 }
0x10b0   : > { %v3114_v41 = vpop.f32.mrb[44].mxu0 }
0x10b1   : > { %v4012_v6 = vpop.f32.mrb[45].mxu0 }
0x10b2   : > { %v3117_v50 = vpop.f32.mrb[46].mxu0 }
0x10b3   : > { %v4013_v38 = vpop.f32.mrb[47].mxu0 }
0x10b4   : > { %v3182_v37 = vpop.f32.mrb[52].mxu1 }
0x10b5   : > { %v3183_v22 = vadd.f32 %v3182_v37, %v3114_v41  ;;  %v4024_v43 = vpop.f32.mrb[53].mxu1 }
0x10b6   : > { %v3185_v12 = vpop.f32.mrb[54].mxu1 }
0x10b7   : > { %v3186_v20 = vadd.f32 %v3185_v12, %v3117_v50  ;;  %v4025_v25 = vpop.f32.mrb[55].mxu1 }
0x10c0   : > { %v3266_v61 = vpop.f32.mrb[48].mxu0 }
0x10c1   : > { %v3273_v56 = vadd.f32 %v3266_v61, %v3183_v22  ;;  %v4036_v15 = vpop.f32.mrb[49].mxu0 }
0x10c2   : > { %v3269_v29 = vpop.f32.mrb[50].mxu0 }
0x10c3   : > { %v3281_v55 = vadd.f32 %v3756_v24, %v3273_v56  ;;  %v3274_v3 = vadd.f32 %v3269_v29, %v3186_v20  ;;  %v4037_v58 = vpop.f32.mrb[51].mxu0 }
0x10c5   : > { %v3283_v57 = vmul.f32 %v3281_v55, %v5124_v27  ;;  %v3282_v59 = vadd.f32 %v3756_v24, %v3274_v3 }
0x10c7   : > { %v3289_v63 = vmul.f32 %v3288_v14, %v3283_v57  ;;  %v3284_v28 = vmul.f32 %v3282_v59, %v5128_v34  ;;  %3298 = sbr.rel (%p3757_p8) target bundleno = 4304 (0x10d0), region = 124 }
0x10c9   : > { %v3291_v5 = vadd.f32 %v3289_v63, %v5094_v31  ;;  %v3290_v60 = vmul.f32 %v3288_v14, %v3284_v28 }
0x10cb   : > { %v3293_v0 = vmul.f32 %v3291_v5, %v5124_v27  ;;  %v3292_v10 = vadd.f32 %v3290_v60, %v5097_v23 }
0x10cd   : > { %v3294_v16 = vmul.f32 %v3292_v10, %v5128_v34  ;;  %3299 = vst.msk [vmem:[%s4606_s18] sm:$0xff] (!%p3757_p8), %vm1146_vm1, %v3293_v0 }
0x10cf   : > { %3300 = vst.msk [vmem:[%s4606_s18 + $0x8] sm:$0xff] %vm1146_vm1, %v3294_v16 }
0x10d0 PF: > { %s5364_s4 = sld [smem:[#allocation2_spill]] }
0x10d6   : > { %p3758_p9 = scmp.ne.s32.totalorder %s5364_s4, 1 }
0x10d7   : > { %v3305_v31 = vsel (!%p3758_p9), %vm1146_vm1, %v3293_v0, 0.0  ;;  %v3308_v23 = vsel (!%p3758_p9), %vm1146_vm1, %v3294_v16, 0.0  ;;  %s5365_s12 = sld [smem:[#allocation30_spill]] (!%p3758_p9)  ;;  %s5366_s28 = sld [smem:[#allocation31_spill]] (!%p3758_p9) }
0x10d8   : > { %3304 = sbr.rel (%p3758_p9) target bundleno = 4629 (0x1215), region = 128  ;;  %3306 = vadd.xlane.f32.xlu0 (!%p3758_p9), %v3305_v31 }
0x10dc   : > { %3309 = vadd.xlane.f32.xlu0 (!%p3758_p9), %v3308_v23 }
0x10dd   : > { %v3759_v26 = vld [vmem:[%s5365_s12] ss:$0 sm:$0xff] (!%p3758_p9) }
0x10de   : > { %v3760_v30 = vld [vmem:[%s5366_s28] ss:$0 sm:$0xff] (!%p3758_p9) }
0x1165   : > { %v3307_v46 = vpop.xlane.xlu0 %3306 }
0x1166   : > { %v3311_v27 = vmul.f32 0.03125, %v3307_v46 }
0x1168   : > { %v3313_v34 = vsub.f32 %v3293_v0, %v3311_v27 }
0x1169   : > { %v3310_v8 = vpop.xlane.xlu0 %3309 }
0x116a   : > { %v3312_v7 = vmul.f32 0.03125, %v3310_v8  ;;  %v3315_v52 = vmul.f32 %v3313_v34, %v3313_v34 }
0x116c   : > { %v3314_v1 = vsub.f32 %v3294_v16, %v3312_v7  ;;  %v3317_v17 = vsel %vm1146_vm1, %v3315_v52, 0.0 }
0x116d   : > { %3318 = vadd.xlane.f32.xlu1 %v3317_v17 }
0x116e   : > { %v3316_v18 = vmul.f32 %v3314_v1, %v3314_v1 }
0x1170   : > { %v3320_v19 = vsel %vm1146_vm1, %v3316_v18, 0.0 }
0x1171   : > { %3321 = vadd.xlane.f32.xlu1 %v3320_v19 }
0x11fa   : > { %v3319_v53 = vpop.xlane.xlu1 %3318 }
0x11fb   : > { %v3323_v13 = vmul.f32 0.03125, %v3319_v53 }
0x11fd   : > { %v3325_v2 = vadd.f32 1e-05, %v3323_v13 }
0x11fe   : > { %v3322_v9 = vpop.xlane.xlu1 %3321 }
0x11ff   : > { %4269 = vrsqrt.f32 %v3325_v2  ;;  %v3324_v44 = vmul.f32 0.03125, %v3322_v9 }
0x1201   : > { %v3326_v21 = vadd.f32 1e-05, %v3324_v44 }
0x1203   : > { %4271 = vrsqrt.f32 %v3326_v21 }
0x1209   : > { %v4270_v11 = vpop.eup %4269 }
0x120a   : > { %v3329_v62 = vmul.f32 %v4270_v11, %v3313_v34 }
0x120c   : > { %v3338_v4 = vmul.f32 %v3759_v26, %v3329_v62 }
0x120d   : > { %v4272_v54 = vpop.eup %4271 }
0x120e   : > { %v3347_v33 = vadd.f32 %v3760_v30, %v3338_v4  ;;  %v3330_v36 = vmul.f32 %v4272_v54, %v3314_v1 }
0x1210   : > { %3349 = vst.msk [vmem:[%s4606_s18] sm:$0xff] %vm1146_vm1, %v3347_v33  ;;  %v3339_v35 = vmul.f32 %v3759_v26, %v3330_v36 }
0x1212   : > { %v3348_v42 = vadd.f32 %v3760_v30, %v3339_v35 }
0x1214   : > { %3350 = vst.msk [vmem:[%s4606_s18 + $0x8] sm:$0xff] %vm1146_vm1, %v3348_v42 }
0x1215 PF: > { %s5367_s27 = sld [smem:[#allocation5_spill]]  ;;  %s5368_s5 = sld [smem:[#allocation3_spill]] }
0x1216   : > { %s5369_s26 = sld [smem:[#allocation4_spill]]  ;;  %s5371_s28 = sld [smem:[#allocation7_spill]] }
0x121b   : > { %s34_s6 = sadd.s32 1, %s5367_s27   ;;  %s5370_s27 = sld [smem:[#allocation6_spill]] }
0x121c   : > { %p31_p10 = scmp.ge.s32.totalorder %s34_s6, 6  }
0x121e   :  { %33 = sbr.rel (!%p31_p10) target bundleno = 21 (0x15), region = 225 }

</bundles_post_ra>
